<compile_context>
chip_gen: v7x
topology: tpu7x:2x2x1
jax: 0.10.0
libtpu: 0.0.40
codegen_flags: <defaults>
</compile_context>

<pallas_src>
import functools

import jax
import jax.numpy as jnp
from jax.experimental import pallas as pl
from jax.experimental.pallas import tpu as pltpu

_LN2 = 0.6931471805599453  # log(1 + 1): value of log(onehot + 1) at the hot class


def _msle_kernel(pred_ref, label_ref, out_ref, acc_ref, *, batch, tile_b):
    # pred_ref:  (TB, C)     logits tile (natural layout, batch on sublanes)
    # label_ref: (TB, 1)     int8 class labels
    # out_ref:   (1, 8, 128) per-core partial sum (scalar broadcast over block)
    # acc_ref:   (TB, C)     f32 elementwise accumulator, resident per core
    c = pl.program_id(0)   # core split (parallel)
    i = pl.program_id(1)   # batch-tile sweep (arbitrary / reduction)
    n_i = pl.num_programs(1)

    @pl.when(i == 0)
    def _init():
        acc_ref[...] = jnp.zeros_like(acc_ref)

    x = pred_ref[...].astype(jnp.float32)              # (TB, C)
    tb, n_cls = x.shape

    # numerically stable softmax over the class (lane) axis, fused into the log:
    #   log(softmax + 1) = log(e + denom) - log(denom),  e = exp(x - max)
    m = jnp.max(x, axis=1, keepdims=True)               # (TB, 1)
    e = jnp.exp(x - m)                                   # (TB, C)
    denom = jnp.sum(e, axis=1, keepdims=True)            # (TB, 1)
    log_pred1 = jnp.log(e + denom) - jnp.log(denom)      # == log(softmax + 1)

    # one-hot target term: log(onehot + 1) == onehot * ln(2)
    cls = jax.lax.broadcasted_iota(jnp.int32, (tb, n_cls), 1)
    labels = label_ref[...].astype(jnp.int32)            # (TB, 1)
    target = jnp.where(labels == cls, _LN2, 0.0)
    diff = log_pred1 - target
    sq = diff * diff                                     # (TB, C)

    tile_idx = c * n_i + i        # global batch-tile index (may exceed n_tiles)
    n_full = batch // tile_b      # static: number of guaranteed-full tiles

    # full tiles accumulate unmasked; only edge / out-of-range tiles pay the mask
    @pl.when(tile_idx < n_full)
    def _acc_full():
        acc_ref[...] += sq

    @pl.when(tile_idx >= n_full)
    def _acc_edge():
        row = jax.lax.broadcasted_iota(jnp.int32, (tb, n_cls), 0)
        valid = (tile_idx * tile_b + row) < batch
        acc_ref[...] += jnp.where(valid, sq, 0.0)        # select: gates garbage/NaN

    @pl.when(i == n_i - 1)
    def _finalize():
        s = jnp.sum(acc_ref[...])                        # one cross-lane reduce per core
        out_ref[...] = jnp.broadcast_to(s, out_ref.shape)


def msle_loss(predicted, actual, n_classes=10, tile_b=8192, num_cores=2):
    """predicted: [B, n_classes] float logits; actual: [B] int class labels."""
    B, C = predicted.shape
    assert C == n_classes

    # labels as int8 (10 classes fit) -> 4x less label HBM traffic
    labels = actual.astype(jnp.int8).reshape(B, 1)

    # batch tile: multiple of 512 rows (covers f32 (8,128) and int8 (32,128)
    # sublane tiling), clamped so tiny batches use one small tile. No wrapper
    # pad: the kernel masks the ragged tail.
    tile_b = max(512, (tile_b // 512) * 512)
    tile_b = min(tile_b, pl.cdiv(B, 512) * 512)

    n_tiles = pl.cdiv(B, tile_b)
    n_per_core = pl.cdiv(n_tiles, num_cores)
    grid = (num_cores, n_per_core)

    def in_idx(c, i):
        # clamp so over-allocated core-split steps re-read a valid tile;
        # the kernel masks their contribution to exactly zero.
        return (jnp.minimum(c * n_per_core + i, n_tiles - 1), 0)

    kernel = functools.partial(_msle_kernel, batch=B, tile_b=tile_b)

    out = pl.pallas_call(
        kernel,
        out_shape=jax.ShapeDtypeStruct((num_cores, 8, 128), jnp.float32),
        grid=grid,
        in_specs=[
            pl.BlockSpec((tile_b, C), in_idx),
            pl.BlockSpec((tile_b, 1), in_idx),
        ],
        out_specs=pl.BlockSpec((1, 8, 128), lambda c, i: (c, 0, 0)),
        scratch_shapes=[pltpu.VMEM((tile_b, C), jnp.float32)],
        compiler_params=pltpu.CompilerParams(
            dimension_semantics=("parallel", "arbitrary"),
            vmem_limit_bytes=32 * 1024 * 1024,
        ),
        cost_estimate=pl.CostEstimate(
            flops=12 * B * C,
            transcendentals=2 * B * C + B,  # exp + log per element, log(denom) per row
            bytes_accessed=B * C * predicted.dtype.itemsize + B + num_cores * 8 * 128 * 4,
        ),
    )(predicted, labels)

    partials = out[:, 0, 0]              # one partial sum per core
    return jnp.sum(partials) * (1.0 / (B * C))


def _reference(predicted, actual, n_classes=10):
    sm = jax.nn.softmax(predicted.astype(jnp.float32), axis=-1)
    onehot = (actual.reshape(-1, 1) == jnp.arange(n_classes).reshape(1, -1)).astype(
        jnp.float32
    )
    return jnp.mean((jnp.log(sm + 1.0) - jnp.log(onehot + 1.0)) ** 2)


if __name__ == "__main__":
    key = jax.random.PRNGKey(0)
    k1, k2, k3, k4 = jax.random.split(key, 4)
    n_classes = 10

    # case 1: small ragged batch -> one partial tile + one fully-masked
    # core-split step (B=300 < tile_b)
    B1 = 300
    pred1 = jax.random.normal(k1, (B1, n_classes), dtype=jnp.float32)
    act1 = jax.random.randint(k2, (B1,), 0, n_classes, dtype=jnp.int32)
    loss1 = msle_loss(pred1, act1, n_classes=n_classes)
    jax.block_until_ready(loss1)
    ref1 = _reference(pred1, act1, n_classes=n_classes)
    assert jnp.allclose(loss1, ref1, rtol=1e-5, atol=1e-6), (loss1, ref1)

    # case 2: multi-tile, ragged tail, both grid "cores" active
    # (B=1300, tile_b=512 -> 3 real tiles, grid (2, 2), last step fully masked)
    B2 = 1300
    pred2 = jax.random.normal(k3, (B2, n_classes), dtype=jnp.float32)
    act2 = jax.random.randint(k4, (B2,), 0, n_classes, dtype=jnp.int32)
    loss2 = msle_loss(pred2, act2, n_classes=n_classes, tile_b=512)
    jax.block_until_ready(loss2)
    ref2 = _reference(pred2, act2, n_classes=n_classes)
    assert jnp.allclose(loss2, ref2, rtol=1e-5, atol=1e-6), (loss2, ref2)

    print("KERNEL_OK")
</pallas_src>

<mosaic_0001>
module attributes {stable_mosaic.version = 11 : i64} {
  func.func @_msle_kernel(%arg0: i32, %arg1: i32, %arg2: memref<512x10xf32, #tpu.memory_space<vmem>>, %arg3: memref<512x1xi8, #tpu.memory_space<vmem>>, %arg4: memref<1x8x128xf32, #tpu.memory_space<vmem>>, %arg5: memref<512x10xf32, #tpu.memory_space<vmem>>) attributes {dimension_semantics = [#tpu.dimension_semantics<parallel>, #tpu.dimension_semantics<arbitrary>], iteration_bounds = array<i64: 2, 1>, scalar_prefetch = 0 : i64, scratch_operands = 1 : i64, tpu.core_type = #tpu.core_type<tc>, window_params = [{transform_indices = @transform_0, window_bounds = array<i64: 512, 10>}, {transform_indices = @transform_1, window_bounds = array<i64: 512, 1>}, {transform_indices = @transform_2, window_bounds = array<i64: 1, 8, 128>}]} {
    %c0_i32 = arith.constant 0 : i32
    %0 = arith.cmpi eq, %arg1, %c0_i32 : i32
    %1 = arith.extui %0 : i1 to i32
    %c0_i32_0 = arith.constant 0 : i32
    %2 = arith.cmpi ne, %1, %c0_i32_0 : i32
    scf.if %2 {
      %cst_13 = arith.constant 0.000000e+00 : f32
      %38 = vector.broadcast %cst_13 : f32 to vector<512x10xf32>
      %c0_14 = arith.constant 0 : index
      %c0_15 = arith.constant 0 : index
      %39 = vector.load %arg5[%c0_14, %c0_15] : memref<512x10xf32, #tpu.memory_space<vmem>>, vector<512x10xf32>
      tpu.vector_store %arg5[%c0_14, %c0_15], %38 {strides = array<i32>} : memref<512x10xf32, #tpu.memory_space<vmem>>, vector<512x10xf32>,
    } else {
    }
    %c0 = arith.constant 0 : index
    %c0_1 = arith.constant 0 : index
    %3 = vector.load %arg2[%c0, %c0_1] : memref<512x10xf32, #tpu.memory_space<vmem>>, vector<512x10xf32>
    %cst = arith.constant dense<0xFF800000> : vector<512xf32>
    %4 = vector.multi_reduction <maximumf>, %3, %cst [1] : vector<512x10xf32> to vector<512xf32>
    %5 = vector.shape_cast %4 : vector<512xf32> to vector<512x1xf32>
    %6 = vector.broadcast %5 : vector<512x1xf32> to vector<512x10xf32>
    %7 = arith.subf %3, %6 : vector<512x10xf32>
    %8 = math.exp %7 : vector<512x10xf32>
    %cst_2 = arith.constant dense<0.000000e+00> : vector<512xf32>
    %9 = vector.multi_reduction <add>, %8, %cst_2 [1] : vector<512x10xf32> to vector<512xf32>
    %10 = vector.shape_cast %9 : vector<512xf32> to vector<512x1xf32>
    %11 = vector.broadcast %10 : vector<512x1xf32> to vector<512x10xf32>
    %12 = arith.addf %8, %11 : vector<512x10xf32>
    %13 = math.log %12 : vector<512x10xf32>
    %14 = math.log %10 : vector<512x1xf32>
    %15 = vector.broadcast %14 : vector<512x1xf32> to vector<512x10xf32>
    %16 = arith.subf %13, %15 : vector<512x10xf32>
    %17 = tpu.iota {dimensions = array<i32: 1>} : vector<512x10xi32>
    %c0_3 = arith.constant 0 : index
    %c0_4 = arith.constant 0 : index
    %18 = vector.load %arg3[%c0_3, %c0_4] : memref<512x1xi8, #tpu.memory_space<vmem>>, vector<512x1xi8>
    %19 = arith.extsi %18 : vector<512x1xi8> to vector<512x1xi32>
    %20 = vector.broadcast %19 : vector<512x1xi32> to vector<512x10xi32>
    %21 = arith.cmpi eq, %20, %17 : vector<512x10xi32>
    %cst_5 = arith.constant 0.693147182 : f32
    %cst_6 = arith.constant 0.000000e+00 : f32
    %22 = vector.broadcast %cst_5 : f32 to vector<512x10xf32>
    %23 = vector.broadcast %cst_6 : f32 to vector<512x10xf32>
    %24 = arith.select %21, %22, %23 : vector<512x10xi1>, vector<512x10xf32>
    %25 = arith.subf %16, %24 : vector<512x10xf32>
    %26 = arith.mulf %25, %25 : vector<512x10xf32>
    %c1_i32 = arith.constant 1 : i32
    %27 = arith.muli %arg0, %c1_i32 : i32
    %28 = arith.addi %27, %arg1 : i32
    %c0_i32_7 = arith.constant 0 : i32
    %29 = arith.cmpi slt, %28, %c0_i32_7 : i32
    %30 = arith.extui %29 : i1 to i32
    %c0_i32_8 = arith.constant 0 : i32
    %31 = arith.cmpi ne, %30, %c0_i32_8 : i32
    scf.if %31 {
      %c0_13 = arith.constant 0 : index
      %c0_14 = arith.constant 0 : index
      %38 = vector.load %arg5[%c0_13, %c0_14] : memref<512x10xf32, #tpu.memory_space<vmem>>, vector<512x10xf32>
      %39 = arith.addf %38, %26 : vector<512x10xf32>
      %c0_15 = arith.constant 0 : index
      %c0_16 = arith.constant 0 : index
      %40 = vector.load %arg5[%c0_15, %c0_16] : memref<512x10xf32, #tpu.memory_space<vmem>>, vector<512x10xf32>
      tpu.vector_store %arg5[%c0_15, %c0_16], %39 {strides = array<i32>} : memref<512x10xf32, #tpu.memory_space<vmem>>, vector<512x10xf32>,
    } else {
    }
    %c0_i32_9 = arith.constant 0 : i32
    %32 = arith.cmpi sge, %28, %c0_i32_9 : i32
    %33 = arith.extui %32 : i1 to i32
    %c0_i32_10 = arith.constant 0 : i32
    %34 = arith.cmpi ne, %33, %c0_i32_10 : i32
    scf.if %34 {
      %38 = tpu.iota {dimensions = array<i32: 0>} : vector<512x10xi32>
      %c512_i32 = arith.constant 512 : i32
      %39 = arith.muli %28, %c512_i32 : i32
      %40 = vector.broadcast %39 : i32 to vector<512x10xi32>
      %41 = arith.addi %40, %38 : vector<512x10xi32>
      %c300_i32 = arith.constant 300 : i32
      %42 = vector.broadcast %c300_i32 : i32 to vector<512x10xi32>
      %43 = arith.cmpi slt, %41, %42 : vector<512x10xi32>
      %c0_13 = arith.constant 0 : index
      %c0_14 = arith.constant 0 : index
      %44 = vector.load %arg5[%c0_13, %c0_14] : memref<512x10xf32, #tpu.memory_space<vmem>>, vector<512x10xf32>
      %cst_15 = arith.constant 0.000000e+00 : f32
      %45 = vector.broadcast %cst_15 : f32 to vector<512x10xf32>
      %46 = arith.select %43, %26, %45 : vector<512x10xi1>, vector<512x10xf32>
      %47 = arith.addf %44, %46 : vector<512x10xf32>
      %c0_16 = arith.constant 0 : index
      %c0_17 = arith.constant 0 : index
      %48 = vector.load %arg5[%c0_16, %c0_17] : memref<512x10xf32, #tpu.memory_space<vmem>>, vector<512x10xf32>
      tpu.vector_store %arg5[%c0_16, %c0_17], %47 {strides = array<i32>} : memref<512x10xf32, #tpu.memory_space<vmem>>, vector<512x10xf32>,
    } else {
    }
    %c0_i32_11 = arith.constant 0 : i32
    %35 = arith.cmpi eq, %arg1, %c0_i32_11 : i32
    %36 = arith.extui %35 : i1 to i32
    %c0_i32_12 = arith.constant 0 : i32
    %37 = arith.cmpi ne, %36, %c0_i32_12 : i32
    scf.if %37 {
      %c0_13 = arith.constant 0 : index
      %c0_14 = arith.constant 0 : index
      %38 = vector.load %arg5[%c0_13, %c0_14] : memref<512x10xf32, #tpu.memory_space<vmem>>, vector<512x10xf32>
      %39 = vector.shape_cast %38 : vector<512x10xf32> to vector<1x512x10xf32>
      %cst_15 = arith.constant dense<0.000000e+00> : vector<1xf32>
      %40 = vector.multi_reduction <add>, %39, %cst_15 [1, 2] : vector<1x512x10xf32> to vector<1xf32>
      %41 = vector.shape_cast %40 : vector<1xf32> to vector<1x1x1xf32>
      %42 = vector.extract %41[0, 0, 0] : f32 from vector<1x1x1xf32>
      %43 = vector.broadcast %42 : f32 to vector<1x8x128xf32>
      %c0_16 = arith.constant 0 : index
      %c0_17 = arith.constant 0 : index
      %c0_18 = arith.constant 0 : index
      %44 = vector.load %arg4[%c0_16, %c0_17, %c0_18] : memref<1x8x128xf32, #tpu.memory_space<vmem>>, vector<1x8x128xf32>
      tpu.vector_store %arg4[%c0_16, %c0_17, %c0_18], %43 {strides = array<i32>} : memref<1x8x128xf32, #tpu.memory_space<vmem>>, vector<1x8x128xf32>,
    } else {
    }
    return
  }
  func.func @transform_0(%arg0: i32, %arg1: i32) -> (i32, i32) {
    %c1_i32 = arith.constant 1 : i32
    %0 = arith.muli %arg0, %c1_i32 : i32
    %1 = arith.addi %0, %arg1 : i32
    %c0_i32 = arith.constant 0 : i32
    %2 = arith.minsi %1, %c0_i32 : i32
    %c0_i32_0 = arith.constant 0 : i32
    %c0_i32_1 = arith.constant 0 : i32
    return %2, %c0_i32_0 : i32, i32
  }
  func.func @transform_1(%arg0: i32, %arg1: i32) -> (i32, i32) {
    %c1_i32 = arith.constant 1 : i32
    %0 = arith.muli %arg0, %c1_i32 : i32
    %1 = arith.addi %0, %arg1 : i32
    %c0_i32 = arith.constant 0 : i32
    %2 = arith.minsi %1, %c0_i32 : i32
    %c0_i32_0 = arith.constant 0 : i32
    %c0_i32_1 = arith.constant 0 : i32
    return %2, %c0_i32_0 : i32, i32
  }
  func.func @transform_2(%arg0: i32, %arg1: i32) -> (i32, i32, i32) {
    %c0_i32 = arith.constant 0 : i32
    %c0_i32_0 = arith.constant 0 : i32
    %c0_i32_1 = arith.constant 0 : i32
    return %arg0, %c0_i32, %c0_i32_0 : i32, i32, i32
  }
}

</mosaic_0001>

<bundles_post_ra>
// kernel: tpu_custom_call.1
= control target key start
LH: loop header
LB: loop body
LE: loop exit
PB: predicated region body
PF: predicated region fallthrough
CT: control target
= control target key end

     0   :  { %7 = vsyncpa [#allocation4], 0  ;;  %s6060_s0 = inlined_call_operand.vmem [shape: f32[300,10], index: 0, kind: input, shape index: {}]   ;;  %s6061_s1 = inlined_call_operand.vmem [shape: s8[300,1], index: 1, kind: input, shape index: {}]   ;;  %s6062_s2 = inlined_call_operand.hbm [shape: f32[2,8,128], index: 2, kind: output, shape index: {}]  }
   0x1   :  { %9 = vsyncpa [#allocation4 + $0x1], 0  ;;  %s3581_s9 = smov 0   ;;  %s3583_s10 = smov 0  }
   0x2   :  { %s3585_s11 = smov 0   ;;  %s3587_s12 = smov 0  }
   0x3   :  { %s3589_s13 = smov 0   ;;  %s3591_s14 = smov 0  }
   0x4 LB: > { %s2862_s15 = sadd.s32 4294967295, %s3561_s14   ;;  %s2863_s16 = sadd.s32 4294967294, %s3561_s14   ;;  %s3561_s14 = sphi %s3591_s14, %s15_s14   ;;  %s3557_s13 = sphi %s3589_s13, %s6475_s13   ;;  %s3553_s12 = sphi %s3587_s12, %s6474_s12   ;;  %s3549_s11 = sphi %s3585_s11, %s6473_s11   ;;  %s3545_s10 = sphi %s3583_s10, %s6472_s10   ;;  %s3541_s9 = sphi %s3581_s9, %s6471_s9  }
   0x5   : > { %s27_s17 = sadd.s32 1, %s3557_s13  ;;  %s98_s18 = sadd.s32 1, %s3549_s11 }
   0x6   : > { %p29_p0 = scmp.ge.s32.totalorder %s27_s17, 2  ;;  %p108_p1 = scmp.ne.s32.totalorder %s3549_s11, %s3545_s10 }
   0x7   : > { %p109_p2 = scmp.eq.s32.totalorder %s2862_s15, 1  ;;  %p114_p3 = scmp.ne.s32.totalorder %s3545_s10, %s3541_s9 }
   0x8   : > { %s6477_s17 = smov (%p29_p0, %s27_s17), 0  ;;  %p115_p5 = scmp.eq.s32.totalorder %s2863_s16, 1 }
   0x9   : > { %p3621_p4 = por %p109_p2, %p108_p1  ;;  %s95_s20 = ssub.s32 %s3557_s13, %s6477_s17 }
   0xa   : > { %p2866_p6 = scmp.ge.s32.totalorder %s3561_s14, 1  ;;  %p96_p7 = scmp.eq.s32.totalorder %s95_s20, 0 }
   0xb   : > { %p3628_p8 = por %p115_p5, %p114_p3  ;;  %p171_p9 = scmp.lt.s32.totalorder %s3561_s14, 3 }
   0xc   : > { %s3634_s22 = scalar_select %p96_p7, %s3549_s11, %s98_s18  }
   0xd   : > { %p172_p10 = pnand %p2866_p6, %p171_p9 }
   0xf   : > { %175 = sbr.rel (%p172_p10) target bundleno = 1074 (0x432), region = 28 }
  0x16   : > { %p209_p11 = scmp.lt.s32.totalorder %s3553_s12, 0  ;;  %vm244_vm0 = vcmask 80896   ;;  %s205_s5 = sand.u32 1, %s3545_s10  }
  0x17   : > { %s5007_s6 = sshll.u32 %s205_s5, 3  ;;  %p2872_p13 = scmp.ge.s32.totalorder %s3553_s12, 0 }
  0x18   : > { %s210_s23 = scalar_select %p209_p11, %s3553_s12, 0 }
  0x19   : > { %s207_s7 = scalar_lea.vmem [#allocation3], %s5007_s6 }
  0x1a   : > { %s2868_s24 = sshll.u32 %s210_s23, 6 }
  0x1b   : > { %p214_p12 = scmp.lt.s32.totalorder %s2868_s24, 37 }
  0x1d   : > { %s6479_s24 = smov (!%p214_p12, %s2868_s24), 37 }
  0x1e   : > { %s2869_s25 = sshll.u32 %s6479_s24, 3  ;;  %s2871_s29 = sshll.u32 %s6479_s24, 1 }
  0x1f   : > { %s3646_s28 = scalar_lea.vmem %s6060_s0, %s2869_s25  ;;  %s4292_s4 = scalar_lea.vmem %s6061_s1, %s2871_s29 }
  0x20   : > { %v3649_v0 = vld [vmem:[%s3646_s28] sm:$0xff]  ;;  %v3652_v1 = vld [vmem:[%s3646_s28 + $0x10] sm:$0xff]  ;;  %v3655_v2 = vld [vmem:[%s3646_s28 + $0x8] sm:$0xff] }
  0x21   : > { %v374_v3 = vsel %vm244_vm0, %v3649_v0, -inf  ;;  %v380_v4 = vsel %vm244_vm0, %v3652_v1, -inf  ;;  %v3662_v5 = vld [vmem:[%s3646_s28 + $0x18] sm:$0xff]  ;;  %v377_v6 = vsel %vm244_vm0, %v3655_v2, -inf  ;;  %v3669_v8 = vld [vmem:[%s3646_s28 + $0x20] sm:$0xff]  ;;  %v3672_v9 = vld [vmem:[%s3646_s28 + $0x28] sm:$0xff] }
  0x22   : > { %375 = vmax.xlane.f32.xlu0 %v374_v3  ;;  %381 = vmax.xlane.f32.xlu1 %v380_v4  ;;  %v383_v7 = vsel %vm244_vm0, %v3662_v5, -inf  ;;  %v386_v10 = vsel %vm244_vm0, %v3669_v8, -inf  ;;  %v389_v11 = vsel %vm244_vm0, %v3672_v9, -inf  ;;  %v3679_v12 = vld [vmem:[%s3646_s28 + $0x30] sm:$0xff]  ;;  %v3682_v13 = vld [vmem:[%s3646_s28 + $0x38] sm:$0xff]  ;;  %v3689_v16 = vld [vmem:[%s3646_s28 + $0x40] sm:$0xff] }
  0x23   : > { %v392_v14 = vsel %vm244_vm0, %v3679_v12, -inf  ;;  %v395_v15 = vsel %vm244_vm0, %v3682_v13, -inf  ;;  %v3692_v17 = vld [vmem:[%s3646_s28 + $0x48] sm:$0xff]  ;;  %v398_v18 = vsel %vm244_vm0, %v3689_v16, -inf  ;;  %v3699_v20 = vld [vmem:[%s3646_s28 + $0x50] sm:$0xff]  ;;  %v3702_v21 = vld [vmem:[%s3646_s28 + $0x58] sm:$0xff] }
  0x24   : > { %v401_v19 = vsel %vm244_vm0, %v3692_v17, -inf  ;;  %v404_v22 = vsel %vm244_vm0, %v3699_v20, -inf  ;;  %v407_v23 = vsel %vm244_vm0, %v3702_v21, -inf  ;;  %v3709_v24 = vld [vmem:[%s3646_s28 + $0x60] sm:$0xff]  ;;  %v3712_v25 = vld [vmem:[%s3646_s28 + $0x68] sm:$0xff]  ;;  %v3719_v28 = vld [vmem:[%s3646_s28 + $0x70] sm:$0xff] }
  0x25   : > { %v410_v26 = vsel %vm244_vm0, %v3709_v24, -inf  ;;  %v413_v27 = vsel %vm244_vm0, %v3712_v25, -inf  ;;  %v3722_v29 = vld [vmem:[%s3646_s28 + $0x78] sm:$0xff]  ;;  %v416_v30 = vsel %vm244_vm0, %v3719_v28, -inf  ;;  %v3729_v32 = vld [vmem:[%s3646_s28 + $0x80] sm:$0xff]  ;;  %v3732_v33 = vld [vmem:[%s3646_s28 + $0x88] sm:$0xff] }
  0x26   : > { %378 = vmax.xlane.f32.xlu0 %v377_v6  ;;  %384 = vmax.xlane.f32.xlu1 %v383_v7  ;;  %v419_v31 = vsel %vm244_vm0, %v3722_v29, -inf  ;;  %v422_v34 = vsel %vm244_vm0, %v3729_v32, -inf  ;;  %v425_v35 = vsel %vm244_vm0, %v3732_v33, -inf  ;;  %v3739_v36 = vld [vmem:[%s3646_s28 + $0x90] sm:$0xff]  ;;  %v3742_v37 = vld [vmem:[%s3646_s28 + $0x98] sm:$0xff]  ;;  %v3749_v40 = vld [vmem:[%s3646_s28 + $0xa0] sm:$0xff] }
  0x27   : > { %v428_v38 = vsel %vm244_vm0, %v3739_v36, -inf  ;;  %v431_v39 = vsel %vm244_vm0, %v3742_v37, -inf  ;;  %v3752_v41 = vld [vmem:[%s3646_s28 + $0xa8] sm:$0xff]  ;;  %v434_v42 = vsel %vm244_vm0, %v3749_v40, -inf  ;;  %v3759_v44 = vld [vmem:[%s3646_s28 + $0xb0] sm:$0xff]  ;;  %v3762_v45 = vld [vmem:[%s3646_s28 + $0xb8] sm:$0xff] }
  0x28   : > { %v437_v43 = vsel %vm244_vm0, %v3752_v41, -inf  ;;  %v440_v46 = vsel %vm244_vm0, %v3759_v44, -inf  ;;  %v443_v47 = vsel %vm244_vm0, %v3762_v45, -inf  ;;  %v3769_v48 = vld [vmem:[%s3646_s28 + $0xc0] sm:$0xff]  ;;  %v3772_v49 = vld [vmem:[%s3646_s28 + $0xc8] sm:$0xff]  ;;  %v3779_v52 = vld [vmem:[%s3646_s28 + $0xd0] sm:$0xff] }
  0x29   : > { %v446_v50 = vsel %vm244_vm0, %v3769_v48, -inf  ;;  %v449_v51 = vsel %vm244_vm0, %v3772_v49, -inf  ;;  %v3782_v53 = vld [vmem:[%s3646_s28 + $0xd8] sm:$0xff]  ;;  %v452_v54 = vsel %vm244_vm0, %v3779_v52, -inf  ;;  %v3789_v56 = vld [vmem:[%s3646_s28 + $0xe0] sm:$0xff]  ;;  %v3792_v57 = vld [vmem:[%s3646_s28 + $0xe8] sm:$0xff] }
  0x2a   : > { %387 = vmax.xlane.f32.xlu0 %v386_v10  ;;  %390 = vmax.xlane.f32.xlu1 %v389_v11  ;;  %v455_v55 = vsel %vm244_vm0, %v3782_v53, -inf  ;;  %v458_v58 = vsel %vm244_vm0, %v3789_v56, -inf  ;;  %v461_v59 = vsel %vm244_vm0, %v3792_v57, -inf  ;;  %v3799_v60 = vld [vmem:[%s3646_s28 + $0xf0] sm:$0xff]  ;;  %v3802_v61 = vld [vmem:[%s3646_s28 + $0xf8] sm:$0xff]  ;;  %v3809_v3 = vld [vmem:[%s3646_s28 + $0x100] sm:$0xff] }
  0x2b   : > { %v464_v62 = vsel %vm244_vm0, %v3799_v60, -inf  ;;  %v467_v63 = vsel %vm244_vm0, %v3802_v61, -inf  ;;  %v3812_v4 = vld [vmem:[%s3646_s28 + $0x108] sm:$0xff]  ;;  %v470_v6 = vsel %vm244_vm0, %v3809_v3, -inf  ;;  %v3819_v10 = vld [vmem:[%s3646_s28 + $0x110] sm:$0xff]  ;;  %v3822_v11 = vld [vmem:[%s3646_s28 + $0x118] sm:$0xff] }
  0x2c   : > { %v473_v7 = vsel %vm244_vm0, %v3812_v4, -inf }
  0x2e   : > { %393 = vmax.xlane.f32.xlu0 %v392_v14  ;;  %396 = vmax.xlane.f32.xlu1 %v395_v15  ;;  %v476_v14 = vsel %vm244_vm0, %v3819_v10, -inf  ;;  %v479_v15 = vsel %vm244_vm0, %v3822_v11, -inf }
  0x32   : > { %399 = vmax.xlane.f32.xlu0 %v398_v18  ;;  %402 = vmax.xlane.f32.xlu1 %v401_v19  ;;  %v3829_v18 = vld [vmem:[%s3646_s28 + $0x120] sm:$0xff]  ;;  %v3832_v19 = vld [vmem:[%s3646_s28 + $0x128] sm:$0xff] }
  0x36   : > { %405 = vmax.xlane.f32.xlu0 %v404_v22  ;;  %408 = vmax.xlane.f32.xlu1 %v407_v23  ;;  %v482_v22 = vsel %vm244_vm0, %v3829_v18, -inf  ;;  %v485_v23 = vsel %vm244_vm0, %v3832_v19, -inf }
  0x3a   : > { %411 = vmax.xlane.f32.xlu0 %v410_v26  ;;  %414 = vmax.xlane.f32.xlu1 %v413_v27  ;;  %v3839_v26 = vld [vmem:[%s3646_s28 + $0x130] sm:$0xff]  ;;  %v3842_v27 = vld [vmem:[%s3646_s28 + $0x138] sm:$0xff] }
  0x3e   : > { %417 = vmax.xlane.f32.xlu0 %v416_v30  ;;  %420 = vmax.xlane.f32.xlu1 %v419_v31  ;;  %v488_v30 = vsel %vm244_vm0, %v3839_v26, -inf  ;;  %v491_v31 = vsel %vm244_vm0, %v3842_v27, -inf }
  0x42   : > { %423 = vmax.xlane.f32.xlu0 %v422_v34  ;;  %426 = vmax.xlane.f32.xlu1 %v425_v35  ;;  %v3849_v34 = vld [vmem:[%s3646_s28 + $0x140] sm:$0xff]  ;;  %v3852_v35 = vld [vmem:[%s3646_s28 + $0x148] sm:$0xff] }
  0x46   : > { %429 = vmax.xlane.f32.xlu0 %v428_v38  ;;  %432 = vmax.xlane.f32.xlu1 %v431_v39  ;;  %v494_v38 = vsel %vm244_vm0, %v3849_v34, -inf  ;;  %v497_v39 = vsel %vm244_vm0, %v3852_v35, -inf }
  0x4a   : > { %435 = vmax.xlane.f32.xlu0 %v434_v42  ;;  %438 = vmax.xlane.f32.xlu1 %v437_v43  ;;  %v3859_v42 = vld [vmem:[%s3646_s28 + $0x150] sm:$0xff]  ;;  %v3862_v43 = vld [vmem:[%s3646_s28 + $0x158] sm:$0xff] }
  0x4e   : > { %441 = vmax.xlane.f32.xlu0 %v440_v46  ;;  %444 = vmax.xlane.f32.xlu1 %v443_v47  ;;  %v500_v46 = vsel %vm244_vm0, %v3859_v42, -inf  ;;  %v503_v47 = vsel %vm244_vm0, %v3862_v43, -inf }
  0x52   : > { %447 = vmax.xlane.f32.xlu0 %v446_v50  ;;  %450 = vmax.xlane.f32.xlu1 %v449_v51  ;;  %v3869_v50 = vld [vmem:[%s3646_s28 + $0x160] sm:$0xff]  ;;  %v3872_v51 = vld [vmem:[%s3646_s28 + $0x168] sm:$0xff] }
  0x56   : > { %453 = vmax.xlane.f32.xlu0 %v452_v54  ;;  %456 = vmax.xlane.f32.xlu1 %v455_v55  ;;  %v506_v54 = vsel %vm244_vm0, %v3869_v50, -inf  ;;  %v509_v55 = vsel %vm244_vm0, %v3872_v51, -inf }
  0x5a   : > { %459 = vmax.xlane.f32.xlu0 %v458_v58  ;;  %462 = vmax.xlane.f32.xlu1 %v461_v59  ;;  %v3879_v58 = vld [vmem:[%s3646_s28 + $0x170] sm:$0xff]  ;;  %v3882_v59 = vld [vmem:[%s3646_s28 + $0x178] sm:$0xff] }
  0x5e   : > { %465 = vmax.xlane.f32.xlu0 %v464_v62  ;;  %468 = vmax.xlane.f32.xlu1 %v467_v63  ;;  %v512_v62 = vsel %vm244_vm0, %v3879_v58, -inf  ;;  %v515_v63 = vsel %vm244_vm0, %v3882_v59, -inf }
  0x62   : > { %471 = vmax.xlane.f32.xlu0 %v470_v6  ;;  %474 = vmax.xlane.f32.xlu1 %v473_v7  ;;  %v3889_v6 = vld [vmem:[%s3646_s28 + $0x180] sm:$0xff]  ;;  %v3892_v7 = vld [vmem:[%s3646_s28 + $0x188] sm:$0xff] }
  0x63   : > { %6167 = vst [vmem:[#allocation6_spill] sm:$0xff] %v3892_v7 }
  0x66   : > { %477 = vmax.xlane.f32.xlu0 %v476_v14  ;;  %480 = vmax.xlane.f32.xlu1 %v479_v15  ;;  %v518_v14 = vsel %vm244_vm0, %v3889_v6, -inf  ;;  %v521_v15 = vsel %vm244_vm0, %v3892_v7, -inf }
  0x6a   : > { %483 = vmax.xlane.f32.xlu0 %v482_v22  ;;  %486 = vmax.xlane.f32.xlu1 %v485_v23  ;;  %v3899_v22 = vld [vmem:[%s3646_s28 + $0x190] sm:$0xff]  ;;  %v3902_v23 = vld [vmem:[%s3646_s28 + $0x198] sm:$0xff] }
  0x6b   : > { %6168 = vst [vmem:[#allocation7_spill] sm:$0xff] %v3899_v22  ;;  %6169 = vst [vmem:[#allocation8_spill] sm:$0xff] %v3902_v23 }
  0x6e   : > { %489 = vmax.xlane.f32.xlu0 %v488_v30  ;;  %492 = vmax.xlane.f32.xlu1 %v491_v31  ;;  %v524_v30 = vsel %vm244_vm0, %v3899_v22, -inf  ;;  %v527_v31 = vsel %vm244_vm0, %v3902_v23, -inf }
  0x72   : > { %495 = vmax.xlane.f32.xlu0 %v494_v38  ;;  %498 = vmax.xlane.f32.xlu1 %v497_v39  ;;  %v3909_v38 = vld [vmem:[%s3646_s28 + $0x1a0] sm:$0xff]  ;;  %v3912_v39 = vld [vmem:[%s3646_s28 + $0x1a8] sm:$0xff] }
  0x73   : > { %6170 = vst [vmem:[#allocation9_spill] sm:$0xff] %v3909_v38  ;;  %6171 = vst [vmem:[#allocation10_spill] sm:$0xff] %v3912_v39 }
  0x76   : > { %501 = vmax.xlane.f32.xlu0 %v500_v46  ;;  %504 = vmax.xlane.f32.xlu1 %v503_v47  ;;  %v530_v46 = vsel %vm244_vm0, %v3909_v38, -inf  ;;  %v533_v47 = vsel %vm244_vm0, %v3912_v39, -inf }
  0x7a   : > { %507 = vmax.xlane.f32.xlu0 %v506_v54  ;;  %510 = vmax.xlane.f32.xlu1 %v509_v55  ;;  %v3919_v54 = vld [vmem:[%s3646_s28 + $0x1b0] sm:$0xff]  ;;  %v3922_v55 = vld [vmem:[%s3646_s28 + $0x1b8] sm:$0xff] }
  0x7b   : > { %6172 = vst [vmem:[#allocation11_spill] sm:$0xff] %v3919_v54  ;;  %6173 = vst [vmem:[#allocation12_spill] sm:$0xff] %v3922_v55 }
  0x7e   : > { %513 = vmax.xlane.f32.xlu0 %v512_v62  ;;  %516 = vmax.xlane.f32.xlu1 %v515_v63  ;;  %v536_v62 = vsel %vm244_vm0, %v3919_v54, -inf  ;;  %v539_v63 = vsel %vm244_vm0, %v3922_v55, -inf  ;;  %v3952_v54 = vld [vmem:[%s3646_s28 + $0x1e8] sm:$0xff] }
  0x7f   : > { %6179 = vst [vmem:[#allocation18_spill] sm:$0xff] %v3952_v54 }
  0x82   : > { %519 = vmax.xlane.f32.xlu0 %v518_v14  ;;  %522 = vmax.xlane.f32.xlu1 %v521_v15  ;;  %v3929_v14 = vld [vmem:[%s3646_s28 + $0x1c0] sm:$0xff]  ;;  %v3932_v15 = vld [vmem:[%s3646_s28 + $0x1c8] sm:$0xff] }
  0x83   : > { %6174 = vst [vmem:[#allocation13_spill] sm:$0xff] %v3929_v14  ;;  %6175 = vst [vmem:[#allocation14_spill] sm:$0xff] %v3932_v15 }
  0x86   : > { %525 = vmax.xlane.f32.xlu0 %v524_v30  ;;  %528 = vmax.xlane.f32.xlu1 %v527_v31  ;;  %v542_v30 = vsel %vm244_vm0, %v3929_v14, -inf  ;;  %v545_v31 = vsel %vm244_vm0, %v3932_v15, -inf  ;;  %v557_v14 = vsel %vm244_vm0, %v3952_v54, -inf }
  0x8a   : > { %531 = vmax.xlane.f32.xlu0 %v530_v46  ;;  %534 = vmax.xlane.f32.xlu1 %v533_v47  ;;  %v3939_v46 = vld [vmem:[%s3646_s28 + $0x1d0] sm:$0xff]  ;;  %v3942_v47 = vld [vmem:[%s3646_s28 + $0x1d8] sm:$0xff] }
  0x8b   : > { %6176 = vst [vmem:[#allocation15_spill] sm:$0xff] %v3939_v46  ;;  %6177 = vst [vmem:[#allocation16_spill] sm:$0xff] %v3942_v47  ;;  %v548_v55 = vsel %vm244_vm0, %v3939_v46, -inf }
  0x8e   : > { %537 = vmax.xlane.f32.xlu0 %v536_v62  ;;  %540 = vmax.xlane.f32.xlu1 %v539_v63  ;;  %v551_v62 = vsel %vm244_vm0, %v3942_v47, -inf  ;;  %v3949_v63 = vld [vmem:[%s3646_s28 + $0x1e0] sm:$0xff] }
  0x8f   : > { %6178 = vst [vmem:[#allocation17_spill] sm:$0xff] %v3949_v63  ;;  %v554_v15 = vsel %vm244_vm0, %v3949_v63, -inf }
  0x92   : > { %543 = vmax.xlane.f32.xlu0 %v542_v30  ;;  %546 = vmax.xlane.f32.xlu1 %v545_v31  ;;  %v3959_v30 = vld [vmem:[%s3646_s28 + $0x1f0] sm:$0xff]  ;;  %v3962_v31 = vld [vmem:[%s3646_s28 + $0x1f8] sm:$0xff] }
  0x93   : > { %6180 = vst [vmem:[#allocation19_spill] sm:$0xff] %v3959_v30  ;;  %6181 = vst [vmem:[#allocation20_spill] sm:$0xff] %v3962_v31  ;;  %v560_v47 = vsel %vm244_vm0, %v3959_v30, -inf  ;;  %v563_v46 = vsel %vm244_vm0, %v3962_v31, -inf }
  0x96   : > { %549 = vmax.xlane.f32.xlu0 %v548_v55  ;;  %552 = vmax.xlane.f32.xlu1 %v551_v62 }
  0x9a   : > { %555 = vmax.xlane.f32.xlu0 %v554_v15  ;;  %558 = vmax.xlane.f32.xlu1 %v557_v14 }
  0x9e   : > { %561 = vmax.xlane.f32.xlu0 %v560_v47  ;;  %564 = vmax.xlane.f32.xlu1 %v563_v46 }
  0xaf   : > { %v376_v55 = vpop.xlane.xlu0 %375  ;;  %v382_v62 = vpop.xlane.xlu1 %381 }
  0xb0   : > { %v566_v63 = vsub.f32 %v3649_v0, %v376_v55  ;;  %v568_v54 = vsub.f32 %v3652_v1, %v382_v62 }
  0xb2   : > { %v630_v39 = vmul.f32 1.442695, %v566_v63  ;;  %v634_v38 = vmul.f32 1.442695, %v568_v54 }
  0xb3   : > { %v379_v23 = vpop.xlane.xlu0 %378  ;;  %v385_v22 = vpop.xlane.xlu1 %384 }
  0xb4   : > { %3099 = vpow2.f32 %v630_v39  ;;  %v567_v14 = vsub.f32 %v3655_v2, %v379_v23  ;;  %v569_v15 = vsub.f32 %v3662_v5, %v385_v22 }
  0xb5   : > { %3101 = vpow2.f32 %v634_v38 }
  0xb6   : > { %v632_v30 = vmul.f32 1.442695, %v567_v14  ;;  %v636_v31 = vmul.f32 1.442695, %v569_v15 }
  0xb7   : > { %v388_v47 = vpop.xlane.xlu0 %387  ;;  %v391_v46 = vpop.xlane.xlu1 %390 }
  0xb8   : > { %3103 = vpow2.f32 %v632_v30  ;;  %v570_v7 = vsub.f32 %v3669_v8, %v388_v47  ;;  %v571_v0 = vsub.f32 %v3672_v9, %v391_v46 }
  0xb9   : > { %3105 = vpow2.f32 %v636_v31 }
  0xba   : > { %v638_v1 = vmul.f32 1.442695, %v570_v7  ;;  %v640_v54 = vmul.f32 1.442695, %v571_v0 }
  0xbb   : > { %v394_v63 = vpop.xlane.xlu0 %393  ;;  %v397_v55 = vpop.xlane.xlu1 %396 }
  0xbc   : > { %3107 = vpow2.f32 %v638_v1  ;;  %v572_v2 = vsub.f32 %v3679_v12, %v394_v63  ;;  %v573_v5 = vsub.f32 %v3682_v13, %v397_v55 }
  0xbd   : > { %3109 = vpow2.f32 %v640_v54 }
  0xbe   : > { %v3976_v22 = vpop.eup %3099  ;;  %v642_v23 = vmul.f32 1.442695, %v572_v2  ;;  %v644_v38 = vmul.f32 1.442695, %v573_v5 }
  0xbf   : > { %v3978_v39 = vpop.eup %3101  ;;  %v400_v8 = vpop.xlane.xlu0 %399  ;;  %v758_v9 = vsel %vm244_vm0, %v3976_v22, 0.0 }
  0xc0   : > { %v403_v7 = vpop.xlane.xlu1 %402  ;;  %3111 = vpow2.f32 %v642_v23  ;;  %v574_v30 = vsub.f32 %v3689_v16, %v400_v8  ;;  %759 = vadd.xlane.f32.xlu0 %v758_v9  ;;  %v764_v13 = vsel %vm244_vm0, %v3978_v39, 0.0 }
  0xc1   : > { %v575_v12 = vsub.f32 %v3692_v17, %v403_v7  ;;  %3113 = vpow2.f32 %v644_v38 }
  0xc2   : > { %v3986_v31 = vpop.eup %3103  ;;  %v646_v62 = vmul.f32 1.442695, %v574_v30 }
  0xc3   : > { %v648_v14 = vmul.f32 1.442695, %v575_v12  ;;  %v3988_v15 = vpop.eup %3105  ;;  %v406_v47 = vpop.xlane.xlu0 %405  ;;  %v761_v46 = vsel %vm244_vm0, %v3986_v31, 0.0 }
  0xc4   : > { %v409_v0 = vpop.xlane.xlu1 %408  ;;  %3115 = vpow2.f32 %v646_v62  ;;  %v576_v16 = vsub.f32 %v3699_v20, %v406_v47  ;;  %765 = vadd.xlane.f32.xlu0 %v764_v13  ;;  %762 = vadd.xlane.f32.xlu1 %v761_v46  ;;  %v767_v1 = vsel %vm244_vm0, %v3988_v15, 0.0 }
  0xc5   : > { %v577_v17 = vsub.f32 %v3702_v21, %v409_v0  ;;  %3117 = vpow2.f32 %v648_v14 }
  0xc6   : > { %v3996_v54 = vpop.eup %3107  ;;  %v650_v63 = vmul.f32 1.442695, %v576_v16 }
  0xc7   : > { %v652_v55 = vmul.f32 1.442695, %v577_v17  ;;  %v3998_v2 = vpop.eup %3109  ;;  %v412_v5 = vpop.xlane.xlu0 %411  ;;  %v770_v23 = vsel %vm244_vm0, %v3996_v54, 0.0 }
  0xc8   : > { %v415_v38 = vpop.xlane.xlu1 %414  ;;  %3119 = vpow2.f32 %v650_v63  ;;  %v578_v20 = vsub.f32 %v3709_v24, %v412_v5  ;;  %768 = vadd.xlane.f32.xlu1 %v767_v1  ;;  %771 = vadd.xlane.f32.xlu0 %v770_v23  ;;  %v773_v8 = vsel %vm244_vm0, %v3998_v2, 0.0  ;;  %v3563_v23 = vmov 0  }
  0xc9   : > { %v579_v21 = vsub.f32 %v3712_v25, %v415_v38  ;;  %3121 = vpow2.f32 %v652_v55  ;;  %3098 = vset.pattern.permute.xlu1 %v3563_v23  ;;  %3097 = vset.pattern.permute.xlu0 %v3563_v23 }
  0xca   : > { %v4006_v9 = vpop.eup %3111  ;;  %v654_v7 = vmul.f32 1.442695, %v578_v20 }
  0xcb   : > { %v656_v30 = vmul.f32 1.442695, %v579_v21  ;;  %v4008_v12 = vpop.eup %3113  ;;  %v418_v13 = vpop.xlane.xlu0 %417  ;;  %v776_v62 = vsel %vm244_vm0, %v4006_v9, 0.0 }
  0xcc   : > { %v421_v14 = vpop.xlane.xlu1 %420  ;;  %3123 = vpow2.f32 %v654_v7  ;;  %v580_v24 = vsub.f32 %v3719_v28, %v418_v13  ;;  %774 = vadd.xlane.f32.xlu1 %v773_v8  ;;  %777 = vadd.xlane.f32.xlu0 %v776_v62  ;;  %v779_v47 = vsel %vm244_vm0, %v4008_v12, 0.0 }
  0xcd   : > { %v581_v25 = vsub.f32 %v3722_v29, %v421_v14  ;;  %3125 = vpow2.f32 %v656_v30 }
  0xce   : > { %v4016_v46 = vpop.eup %3115  ;;  %v658_v0 = vmul.f32 1.442695, %v580_v24 }
  0xcf   : > { %v660_v16 = vmul.f32 1.442695, %v581_v25  ;;  %v4018_v17 = vpop.eup %3117  ;;  %v424_v1 = vpop.xlane.xlu0 %423  ;;  %v782_v63 = vsel %vm244_vm0, %v4016_v46, 0.0 }
  0xd0   : > { %v427_v55 = vpop.xlane.xlu1 %426  ;;  %3127 = vpow2.f32 %v658_v0  ;;  %v582_v28 = vsub.f32 %v3729_v32, %v424_v1  ;;  %780 = vadd.xlane.f32.xlu1 %v779_v47  ;;  %783 = vadd.xlane.f32.xlu0 %v782_v63  ;;  %v785_v5 = vsel %vm244_vm0, %v4018_v17, 0.0 }
  0xd1   : > { %v583_v29 = vsub.f32 %v3732_v33, %v427_v55  ;;  %3129 = vpow2.f32 %v660_v16 }
  0xd2   : > { %v4026_v38 = vpop.eup %3119  ;;  %v662_v20 = vmul.f32 1.442695, %v582_v28 }
  0xd3   : > { %v664_v21 = vmul.f32 1.442695, %v583_v29  ;;  %v4028_v8 = vpop.eup %3121  ;;  %v430_v7 = vpop.xlane.xlu0 %429  ;;  %v788_v32 = vsel %vm244_vm0, %v4026_v38, 0.0 }
  0xd4   : > { %v433_v30 = vpop.xlane.xlu1 %432  ;;  %3131 = vpow2.f32 %v662_v20  ;;  %v584_v33 = vsub.f32 %v3739_v36, %v430_v7  ;;  %786 = vadd.xlane.f32.xlu1 %v785_v5  ;;  %789 = vadd.xlane.f32.xlu0 %v788_v32  ;;  %v791_v62 = vsel %vm244_vm0, %v4028_v8, 0.0 }
  0xd5   : > { %v585_v13 = vsub.f32 %v3742_v37, %v433_v30  ;;  %3133 = vpow2.f32 %v664_v21 }
  0xd6   : > { %v4036_v14 = vpop.eup %3123  ;;  %v666_v24 = vmul.f32 1.442695, %v584_v33 }
  0xd7   : > { %v668_v25 = vmul.f32 1.442695, %v585_v13  ;;  %v4038_v47 = vpop.eup %3125  ;;  %v436_v0 = vpop.xlane.xlu0 %435  ;;  %v794_v16 = vsel %vm244_vm0, %v4036_v14, 0.0 }
  0xd8   : > { %v439_v1 = vpop.xlane.xlu1 %438  ;;  %3135 = vpow2.f32 %v666_v24  ;;  %v586_v36 = vsub.f32 %v3749_v40, %v436_v0  ;;  %792 = vadd.xlane.f32.xlu1 %v791_v62  ;;  %795 = vadd.xlane.f32.xlu0 %v794_v16  ;;  %v797_v63 = vsel %vm244_vm0, %v4038_v47, 0.0 }
  0xd9   : > { %v587_v37 = vsub.f32 %v3752_v41, %v439_v1  ;;  %3137 = vpow2.f32 %v668_v25 }
  0xda   : > { %v4046_v55 = vpop.eup %3127  ;;  %v670_v28 = vmul.f32 1.442695, %v586_v36 }
  0xdb   : > { %v672_v29 = vmul.f32 1.442695, %v587_v37  ;;  %v4048_v5 = vpop.eup %3129  ;;  %v442_v23 = vpop.xlane.xlu0 %441  ;;  %v800_v20 = vsel %vm244_vm0, %v4046_v55, 0.0 }
  0xdc   : > { %v445_v21 = vpop.xlane.xlu1 %444  ;;  %3139 = vpow2.f32 %v670_v28  ;;  %v588_v40 = vsub.f32 %v3759_v44, %v442_v23  ;;  %798 = vadd.xlane.f32.xlu1 %v797_v63  ;;  %801 = vadd.xlane.f32.xlu0 %v800_v20  ;;  %v803_v7 = vsel %vm244_vm0, %v4048_v5, 0.0 }
  0xdd   : > { %v589_v41 = vsub.f32 %v3762_v45, %v445_v21  ;;  %3141 = vpow2.f32 %v672_v29 }
  0xde   : > { %v4056_v32 = vpop.eup %3131  ;;  %v674_v30 = vmul.f32 1.442695, %v588_v40 }
  0xdf   : > { %v676_v33 = vmul.f32 1.442695, %v589_v41  ;;  %v4058_v13 = vpop.eup %3133  ;;  %v448_v62 = vpop.xlane.xlu0 %447  ;;  %v806_v24 = vsel %vm244_vm0, %v4056_v32, 0.0 }
  0xe0   : > { %v451_v25 = vpop.xlane.xlu1 %450  ;;  %3143 = vpow2.f32 %v674_v30  ;;  %v590_v44 = vsub.f32 %v3769_v48, %v448_v62  ;;  %804 = vadd.xlane.f32.xlu1 %v803_v7  ;;  %807 = vadd.xlane.f32.xlu0 %v806_v24  ;;  %v809_v0 = vsel %vm244_vm0, %v4058_v13, 0.0 }
  0xe1   : > { %v591_v45 = vsub.f32 %v3772_v49, %v451_v25  ;;  %3145 = vpow2.f32 %v676_v33 }
  0xe2   : > { %v4066_v16 = vpop.eup %3135  ;;  %v678_v1 = vmul.f32 1.442695, %v590_v44 }
  0xe3   : > { %v680_v36 = vmul.f32 1.442695, %v591_v45  ;;  %v4068_v37 = vpop.eup %3137  ;;  %v454_v63 = vpop.xlane.xlu0 %453  ;;  %v812_v28 = vsel %vm244_vm0, %v4066_v16, 0.0 }
  0xe4   : > { %v457_v29 = vpop.xlane.xlu1 %456  ;;  %3147 = vpow2.f32 %v678_v1  ;;  %v592_v48 = vsub.f32 %v3779_v52, %v454_v63  ;;  %810 = vadd.xlane.f32.xlu1 %v809_v0  ;;  %813 = vadd.xlane.f32.xlu0 %v812_v28  ;;  %v815_v23 = vsel %vm244_vm0, %v4068_v37, 0.0 }
  0xe5   : > { %v593_v49 = vsub.f32 %v3782_v53, %v457_v29  ;;  %3149 = vpow2.f32 %v680_v36 }
  0xe6   : > { %v4076_v20 = vpop.eup %3139  ;;  %v682_v21 = vmul.f32 1.442695, %v592_v48 }
  0xe7   : > { %v684_v40 = vmul.f32 1.442695, %v593_v49  ;;  %v4078_v41 = vpop.eup %3141  ;;  %v460_v7 = vpop.xlane.xlu0 %459  ;;  %v818_v30 = vsel %vm244_vm0, %v4076_v20, 0.0 }
  0xe8   : > { %v463_v33 = vpop.xlane.xlu1 %462  ;;  %3151 = vpow2.f32 %v682_v21  ;;  %v594_v52 = vsub.f32 %v3789_v56, %v460_v7  ;;  %816 = vadd.xlane.f32.xlu1 %v815_v23  ;;  %819 = vadd.xlane.f32.xlu0 %v818_v30  ;;  %v821_v62 = vsel %vm244_vm0, %v4078_v41, 0.0 }
  0xe9   : > { %v595_v53 = vsub.f32 %v3792_v57, %v463_v33  ;;  %3153 = vpow2.f32 %v684_v40 }
  0xea   : > { %v4086_v24 = vpop.eup %3143  ;;  %v686_v25 = vmul.f32 1.442695, %v594_v52 }
  0xeb   : > { %v688_v44 = vmul.f32 1.442695, %v595_v53  ;;  %v4088_v45 = vpop.eup %3145  ;;  %v466_v0 = vpop.xlane.xlu0 %465  ;;  %v824_v1 = vsel %vm244_vm0, %v4086_v24, 0.0 }
  0xec   : > { %v469_v36 = vpop.xlane.xlu1 %468  ;;  %3155 = vpow2.f32 %v686_v25  ;;  %v596_v56 = vsub.f32 %v3799_v60, %v466_v0  ;;  %822 = vadd.xlane.f32.xlu1 %v821_v62  ;;  %825 = vadd.xlane.f32.xlu0 %v824_v1  ;;  %v827_v63 = vsel %vm244_vm0, %v4088_v45, 0.0 }
  0xed   : > { %v597_v57 = vsub.f32 %v3802_v61, %v469_v36  ;;  %3157 = vpow2.f32 %v688_v44 }
  0xee   : > { %v4096_v28 = vpop.eup %3147  ;;  %v690_v29 = vmul.f32 1.442695, %v596_v56 }
  0xef   : > { %6182 = vst [vmem:[#allocation21_spill] sm:$0xff] %v4096_v28  ;;  %v692_v48 = vmul.f32 1.442695, %v597_v57  ;;  %v4098_v49 = vpop.eup %3149  ;;  %v472_v23 = vpop.xlane.xlu0 %471  ;;  %v830_v21 = vsel %vm244_vm0, %v4096_v28, 0.0  ;;  %v4510_v28 = vld [vmem:[%s4292_s4 + $0x48] sm:$0xff]  }
  0xf0   : > { %6183 = vst [vmem:[#allocation22_spill] sm:$0xff] %v4098_v49  ;;  %v475_v40 = vpop.xlane.xlu1 %474  ;;  %3159 = vpow2.f32 %v690_v29  ;;  %v598_v60 = vsub.f32 %v3809_v3, %v472_v23  ;;  %828 = vadd.xlane.f32.xlu1 %v827_v63  ;;  %831 = vadd.xlane.f32.xlu0 %v830_v21  ;;  %v833_v7 = vsel %vm244_vm0, %v4098_v49, 0.0 }
  0xf1   : > { %v599_v61 = vsub.f32 %v3812_v4, %v475_v40  ;;  %3161 = vpow2.f32 %v692_v48 }
  0xf2   : > { %v4106_v30 = vpop.eup %3151  ;;  %v694_v33 = vmul.f32 1.442695, %v598_v60 }
  0xf3   : > { %6184 = vst [vmem:[#allocation23_spill] sm:$0xff] %v4106_v30  ;;  %v696_v52 = vmul.f32 1.442695, %v599_v61  ;;  %v4108_v53 = vpop.eup %3153  ;;  %v478_v62 = vpop.xlane.xlu0 %477  ;;  %v836_v25 = vsel %vm244_vm0, %v4106_v30, 0.0 }
  0xf4   : > { %6185 = vst [vmem:[#allocation24_spill] sm:$0xff] %v4108_v53  ;;  %v481_v44 = vpop.xlane.xlu1 %480  ;;  %3163 = vpow2.f32 %v694_v33  ;;  %v600_v3 = vsub.f32 %v3819_v10, %v478_v62  ;;  %834 = vadd.xlane.f32.xlu1 %v833_v7  ;;  %837 = vadd.xlane.f32.xlu0 %v836_v25  ;;  %v839_v0 = vsel %vm244_vm0, %v4108_v53, 0.0 }
  0xf5   : > { %v601_v4 = vsub.f32 %v3822_v11, %v481_v44  ;;  %3165 = vpow2.f32 %v696_v52 }
  0xf6   : > { %v4116_v1 = vpop.eup %3155  ;;  %v698_v36 = vmul.f32 1.442695, %v600_v3 }
  0xf7   : > { %6186 = vst [vmem:[#allocation25_spill] sm:$0xff] %v4116_v1  ;;  %v700_v56 = vmul.f32 1.442695, %v601_v4  ;;  %v4118_v57 = vpop.eup %3157  ;;  %v484_v63 = vpop.xlane.xlu0 %483  ;;  %v842_v29 = vsel %vm244_vm0, %v4116_v1, 0.0 }
  0xf8   : > { %6187 = vst [vmem:[#allocation26_spill] sm:$0xff] %v4118_v57  ;;  %v487_v48 = vpop.xlane.xlu1 %486  ;;  %3167 = vpow2.f32 %v698_v36  ;;  %v602_v10 = vsub.f32 %v3829_v18, %v484_v63  ;;  %840 = vadd.xlane.f32.xlu1 %v839_v0  ;;  %843 = vadd.xlane.f32.xlu0 %v842_v29  ;;  %v845_v23 = vsel %vm244_vm0, %v4118_v57, 0.0 }
  0xf9   : > { %v603_v11 = vsub.f32 %v3832_v19, %v487_v48  ;;  %3169 = vpow2.f32 %v700_v56 }
  0xfa   : > { %v4126_v21 = vpop.eup %3159  ;;  %v702_v40 = vmul.f32 1.442695, %v602_v10 }
  0xfb   : > { %6188 = vst [vmem:[#allocation27_spill] sm:$0xff] %v4126_v21  ;;  %v704_v60 = vmul.f32 1.442695, %v603_v11  ;;  %v4128_v61 = vpop.eup %3161  ;;  %v490_v7 = vpop.xlane.xlu0 %489  ;;  %v848_v33 = vsel %vm244_vm0, %v4126_v21, 0.0 }
  0xfc   : > { %6189 = vst [vmem:[#allocation28_spill] sm:$0xff] %v4128_v61  ;;  %v493_v52 = vpop.xlane.xlu1 %492  ;;  %3171 = vpow2.f32 %v702_v40  ;;  %v604_v18 = vsub.f32 %v3839_v26, %v490_v7  ;;  %846 = vadd.xlane.f32.xlu1 %v845_v23  ;;  %849 = vadd.xlane.f32.xlu0 %v848_v33  ;;  %v851_v62 = vsel %vm244_vm0, %v4128_v61, 0.0 }
  0xfd   : > { %v605_v19 = vsub.f32 %v3842_v27, %v493_v52  ;;  %3173 = vpow2.f32 %v704_v60 }
  0xfe   : > { %v4136_v25 = vpop.eup %3163  ;;  %v706_v44 = vmul.f32 1.442695, %v604_v18 }
  0xff   : > { %6190 = vst [vmem:[#allocation29_spill] sm:$0xff] %v4136_v25  ;;  %v708_v3 = vmul.f32 1.442695, %v605_v19  ;;  %v4138_v4 = vpop.eup %3165  ;;  %v496_v0 = vpop.xlane.xlu0 %495  ;;  %v854_v36 = vsel %vm244_vm0, %v4136_v25, 0.0 }
 0x100   : > { %6191 = vst [vmem:[#allocation30_spill] sm:$0xff] %v4138_v4  ;;  %v499_v56 = vpop.xlane.xlu1 %498  ;;  %3175 = vpow2.f32 %v706_v44  ;;  %v606_v26 = vsub.f32 %v3849_v34, %v496_v0  ;;  %852 = vadd.xlane.f32.xlu1 %v851_v62  ;;  %855 = vadd.xlane.f32.xlu0 %v854_v36  ;;  %v857_v63 = vsel %vm244_vm0, %v4138_v4, 0.0 }
 0x101   : > { %v607_v27 = vsub.f32 %v3852_v35, %v499_v56  ;;  %3177 = vpow2.f32 %v708_v3 }
 0x102   : > { %v4146_v29 = vpop.eup %3167  ;;  %v710_v48 = vmul.f32 1.442695, %v606_v26 }
 0x103   : > { %6192 = vst [vmem:[#allocation31_spill] sm:$0xff] %v4146_v29  ;;  %v712_v10 = vmul.f32 1.442695, %v607_v27  ;;  %v4148_v11 = vpop.eup %3169  ;;  %v502_v23 = vpop.xlane.xlu0 %501  ;;  %v860_v40 = vsel %vm244_vm0, %v4146_v29, 0.0 }
 0x104   : > { %6193 = vst [vmem:[#allocation32_spill] sm:$0xff] %v4148_v11  ;;  %v505_v60 = vpop.xlane.xlu1 %504  ;;  %3179 = vpow2.f32 %v710_v48  ;;  %v608_v34 = vsub.f32 %v3859_v42, %v502_v23  ;;  %858 = vadd.xlane.f32.xlu1 %v857_v63  ;;  %861 = vadd.xlane.f32.xlu0 %v860_v40  ;;  %v863_v7 = vsel %vm244_vm0, %v4148_v11, 0.0 }
 0x105   : > { %v609_v35 = vsub.f32 %v3862_v43, %v505_v60  ;;  %3181 = vpow2.f32 %v712_v10 }
 0x106   : > { %v4156_v33 = vpop.eup %3171  ;;  %v714_v52 = vmul.f32 1.442695, %v608_v34 }
 0x107   : > { %6194 = vst [vmem:[#allocation33_spill] sm:$0xff] %v4156_v33  ;;  %v716_v18 = vmul.f32 1.442695, %v609_v35  ;;  %v4158_v19 = vpop.eup %3173  ;;  %v508_v62 = vpop.xlane.xlu0 %507  ;;  %v866_v44 = vsel %vm244_vm0, %v4156_v33, 0.0  ;;  %v3018_v33 = vld [vmem:[%s4292_s4 + $0x30] sm:$0xff]  }
 0x108   : > { %6195 = vst [vmem:[#allocation34_spill] sm:$0xff] %v4158_v19  ;;  %v511_v3 = vpop.xlane.xlu1 %510  ;;  %3183 = vpow2.f32 %v714_v52  ;;  %v610_v42 = vsub.f32 %v3869_v50, %v508_v62  ;;  %864 = vadd.xlane.f32.xlu1 %v863_v7  ;;  %867 = vadd.xlane.f32.xlu0 %v866_v44  ;;  %v869_v0 = vsel %vm244_vm0, %v4158_v19, 0.0 }
 0x109   : > { %v611_v43 = vsub.f32 %v3872_v51, %v511_v3  ;;  %3185 = vpow2.f32 %v716_v18 }
 0x10a   : > { %v4166_v36 = vpop.eup %3175  ;;  %v718_v56 = vmul.f32 1.442695, %v610_v42 }
 0x10b   : > { %6196 = vst [vmem:[#allocation35_spill] sm:$0xff] %v4166_v36  ;;  %v720_v26 = vmul.f32 1.442695, %v611_v43  ;;  %v4168_v27 = vpop.eup %3177  ;;  %v514_v63 = vpop.xlane.xlu0 %513  ;;  %v872_v48 = vsel %vm244_vm0, %v4166_v36, 0.0 }
 0x10c   : > { %6197 = vst [vmem:[#allocation36_spill] sm:$0xff] %v4168_v27  ;;  %v517_v10 = vpop.xlane.xlu1 %516  ;;  %3187 = vpow2.f32 %v718_v56  ;;  %v612_v50 = vsub.f32 %v3879_v58, %v514_v63  ;;  %870 = vadd.xlane.f32.xlu1 %v869_v0  ;;  %873 = vadd.xlane.f32.xlu0 %v872_v48  ;;  %v875_v23 = vsel %vm244_vm0, %v4168_v27, 0.0 }
 0x10d   : > { %v613_v51 = vsub.f32 %v3882_v59, %v517_v10  ;;  %3189 = vpow2.f32 %v720_v26  ;;  %v6200_v59 = vld [vmem:[#allocation6_spill] sm:$0xff]  ;;  %v6204_v10 = vld [vmem:[#allocation8_spill] sm:$0xff] }
 0x10e   : > { %v4176_v40 = vpop.eup %3179  ;;  %v722_v60 = vmul.f32 1.442695, %v612_v50 }
 0x10f   : > { %6198 = vst [vmem:[#allocation37_spill] sm:$0xff] %v4176_v40  ;;  %v724_v34 = vmul.f32 1.442695, %v613_v51  ;;  %v4178_v35 = vpop.eup %3181  ;;  %v520_v7 = vpop.xlane.xlu0 %519  ;;  %v878_v52 = vsel %vm244_vm0, %v4176_v40, 0.0 }
 0x110   : > { %6199 = vst [vmem:[#allocation38_spill] sm:$0xff] %v4178_v35  ;;  %v523_v18 = vpop.xlane.xlu1 %522  ;;  %3191 = vpow2.f32 %v722_v60  ;;  %v614_v58 = vsub.f32 %v3889_v6, %v520_v7  ;;  %876 = vadd.xlane.f32.xlu1 %v875_v23  ;;  %879 = vadd.xlane.f32.xlu0 %v878_v52  ;;  %v881_v44 = vsel %vm244_vm0, %v4178_v35, 0.0  ;;  %v6203_v6 = vld [vmem:[#allocation7_spill] sm:$0xff] }
 0x111   : > { %v615_v62 = vsub.f32 %v6200_v59, %v523_v18  ;;  %3193 = vpow2.f32 %v724_v34  ;;  %v6207_v59 = vld [vmem:[#allocation9_spill] sm:$0xff] }
 0x112   : > { %v4186_v3 = vpop.eup %3183  ;;  %v726_v42 = vmul.f32 1.442695, %v614_v58 }
 0x113   : > { %6201 = vst [vmem:[#allocation6_spill] sm:$0xff] %v4186_v3  ;;  %v728_v43 = vmul.f32 1.442695, %v615_v62  ;;  %v4188_v0 = vpop.eup %3185  ;;  %v526_v56 = vpop.xlane.xlu0 %525  ;;  %v884_v26 = vsel %vm244_vm0, %v4186_v3, 0.0 }
 0x114   : > { %6202 = vst [vmem:[#allocation39_spill] sm:$0xff] %v4188_v0  ;;  %v529_v63 = vpop.xlane.xlu1 %528  ;;  %3195 = vpow2.f32 %v726_v42  ;;  %v616_v48 = vsub.f32 %v6203_v6, %v526_v56  ;;  %882 = vadd.xlane.f32.xlu1 %v881_v44  ;;  %885 = vadd.xlane.f32.xlu0 %v884_v26  ;;  %v887_v51 = vsel %vm244_vm0, %v4188_v0, 0.0  ;;  %v6208_v44 = vld [vmem:[#allocation10_spill] sm:$0xff] }
 0x115   : > { %v617_v50 = vsub.f32 %v6204_v10, %v529_v63  ;;  %3197 = vpow2.f32 %v728_v43 }
 0x116   : > { %v4196_v23 = vpop.eup %3187  ;;  %v730_v60 = vmul.f32 1.442695, %v616_v48 }
 0x117   : > { %6205 = vst [vmem:[#allocation7_spill] sm:$0xff] %v4196_v23  ;;  %v732_v34 = vmul.f32 1.442695, %v617_v50  ;;  %v4198_v7 = vpop.eup %3189  ;;  %v532_v52 = vpop.xlane.xlu0 %531  ;;  %v890_v18 = vsel %vm244_vm0, %v4196_v23, 0.0 }
 0x118   : > { %6206 = vst [vmem:[#allocation8_spill] sm:$0xff] %v4198_v7  ;;  %v535_v58 = vpop.xlane.xlu1 %534  ;;  %3199 = vpow2.f32 %v730_v60  ;;  %v618_v62 = vsub.f32 %v6207_v59, %v532_v52  ;;  %888 = vadd.xlane.f32.xlu1 %v887_v51  ;;  %891 = vadd.xlane.f32.xlu0 %v890_v18  ;;  %v893_v43 = vsel %vm244_vm0, %v4198_v7, 0.0  ;;  %v6211_v51 = vld [vmem:[#allocation11_spill] sm:$0xff]  ;;  %v3014_v7 = vld [vmem:[%s4292_s4 + $0x20] sm:$0xff]  }
 0x119   : > { %v619_v42 = vsub.f32 %v6208_v44, %v535_v58  ;;  %3201 = vpow2.f32 %v732_v34  ;;  %v6212_v34 = vld [vmem:[#allocation12_spill] sm:$0xff]  ;;  %v2914_v3 = vunpack.c.1.s8 %v3014_v7  ;;  %v2918_v40 = vunpack.c.3.s8 %v3014_v7 }
 0x11a   : > { %v4206_v56 = vpop.eup %3191  ;;  %v734_v26 = vmul.f32 1.442695, %v618_v62  ;;  %v2913_v21 = vunpack.c.0.s8 %v3014_v7  ;;  %v2917_v1 = vunpack.c.2.s8 %v3014_v7 }
 0x11b   : > { %6209 = vst [vmem:[#allocation9_spill] sm:$0xff] %v4206_v56  ;;  %v736_v63 = vmul.f32 1.442695, %v619_v42  ;;  %v4208_v6 = vpop.eup %3193  ;;  %v538_v48 = vpop.xlane.xlu0 %537  ;;  %v896_v10 = vsel %vm244_vm0, %v4206_v56, 0.0 }
 0x11c   : > { %6210 = vst [vmem:[#allocation10_spill] sm:$0xff] %v4208_v6  ;;  %v541_v50 = vpop.xlane.xlu1 %540  ;;  %3203 = vpow2.f32 %v734_v26  ;;  %v620_v60 = vsub.f32 %v6211_v51, %v538_v48  ;;  %894 = vadd.xlane.f32.xlu1 %v893_v43  ;;  %897 = vadd.xlane.f32.xlu0 %v896_v10  ;;  %v899_v18 = vsel %vm244_vm0, %v4208_v6, 0.0  ;;  %v6215_v43 = vld [vmem:[#allocation13_spill] sm:$0xff] }
 0x11d   : > { %v621_v52 = vsub.f32 %v6212_v34, %v541_v50  ;;  %3205 = vpow2.f32 %v736_v63  ;;  %v6216_v63 = vld [vmem:[#allocation14_spill] sm:$0xff] }
 0x11e   : > { %v4216_v58 = vpop.eup %3195  ;;  %v738_v59 = vmul.f32 1.442695, %v620_v60 }
 0x11f   : > { %6213 = vst [vmem:[#allocation11_spill] sm:$0xff] %v4216_v58  ;;  %v740_v62 = vmul.f32 1.442695, %v621_v52  ;;  %v4218_v44 = vpop.eup %3197  ;;  %v544_v42 = vpop.xlane.xlu0 %543  ;;  %v902_v26 = vsel %vm244_vm0, %v4216_v58, 0.0 }
 0x120   : > { %6214 = vst [vmem:[#allocation12_spill] sm:$0xff] %v4218_v44  ;;  %v547_v56 = vpop.xlane.xlu1 %546  ;;  %3207 = vpow2.f32 %v738_v59  ;;  %v622_v48 = vsub.f32 %v6215_v43, %v544_v42  ;;  %900 = vadd.xlane.f32.xlu1 %v899_v18  ;;  %903 = vadd.xlane.f32.xlu0 %v902_v26  ;;  %v905_v50 = vsel %vm244_vm0, %v4218_v44, 0.0  ;;  %v6219_v18 = vld [vmem:[#allocation15_spill] sm:$0xff] }
 0x121   : > { %v623_v10 = vsub.f32 %v6216_v63, %v547_v56  ;;  %3209 = vpow2.f32 %v740_v62  ;;  %v6220_v56 = vld [vmem:[#allocation16_spill] sm:$0xff] }
 0x122   : > { %v4226_v51 = vpop.eup %3199  ;;  %v742_v60 = vmul.f32 1.442695, %v622_v48 }
 0x123   : > { %6217 = vst [vmem:[#allocation13_spill] sm:$0xff] %v4226_v51  ;;  %v744_v34 = vmul.f32 1.442695, %v623_v10  ;;  %v4228_v52 = vpop.eup %3201  ;;  %v550_v6 = vpop.xlane.xlu0 %549  ;;  %v908_v59 = vsel %vm244_vm0, %v4226_v51, 0.0 }
 0x124   : > { %6218 = vst [vmem:[#allocation14_spill] sm:$0xff] %v4228_v52  ;;  %v553_v58 = vpop.xlane.xlu1 %552  ;;  %3211 = vpow2.f32 %v742_v60  ;;  %v624_v42 = vsub.f32 %v6219_v18, %v550_v6  ;;  %906 = vadd.xlane.f32.xlu1 %v905_v50  ;;  %909 = vadd.xlane.f32.xlu0 %v908_v59  ;;  %v911_v26 = vsel %vm244_vm0, %v4228_v52, 0.0  ;;  %v6223_v6 = vld [vmem:[#allocation17_spill] sm:$0xff] }
 0x125   : > { %v625_v62 = vsub.f32 %v6220_v56, %v553_v58  ;;  %3213 = vpow2.f32 %v744_v34  ;;  %v6224_v58 = vld [vmem:[#allocation18_spill] sm:$0xff] }
 0x126   : > { %v4236_v43 = vpop.eup %3203  ;;  %v746_v48 = vmul.f32 1.442695, %v624_v42 }
 0x127   : > { %6221 = vst [vmem:[#allocation15_spill] sm:$0xff] %v4236_v43  ;;  %v748_v63 = vmul.f32 1.442695, %v625_v62  ;;  %v4238_v10 = vpop.eup %3205  ;;  %v556_v44 = vpop.xlane.xlu0 %555  ;;  %v914_v60 = vsel %vm244_vm0, %v4236_v43, 0.0 }
 0x128   : > { %6222 = vst [vmem:[#allocation16_spill] sm:$0xff] %v4238_v10  ;;  %v559_v51 = vpop.xlane.xlu1 %558  ;;  %3215 = vpow2.f32 %v746_v48  ;;  %v626_v50 = vsub.f32 %v6223_v6, %v556_v44  ;;  %912 = vadd.xlane.f32.xlu1 %v911_v26  ;;  %915 = vadd.xlane.f32.xlu0 %v914_v60  ;;  %v917_v59 = vsel %vm244_vm0, %v4238_v10, 0.0  ;;  %v6227_v44 = vld [vmem:[#allocation19_spill] sm:$0xff] }
 0x129   : > { %v627_v34 = vsub.f32 %v6224_v58, %v559_v51  ;;  %3217 = vpow2.f32 %v748_v63  ;;  %v6228_v51 = vld [vmem:[#allocation20_spill] sm:$0xff] }
 0x12a   : > { %v4246_v18 = vpop.eup %3207  ;;  %v750_v42 = vmul.f32 1.442695, %v626_v50 }
 0x12b   : > { %6225 = vst [vmem:[#allocation17_spill] sm:$0xff] %v4246_v18  ;;  %v752_v56 = vmul.f32 1.442695, %v627_v34  ;;  %v4248_v62 = vpop.eup %3209  ;;  %v562_v52 = vpop.xlane.xlu0 %561  ;;  %v920_v48 = vsel %vm244_vm0, %v4246_v18, 0.0 }
 0x12c   : > { %6226 = vst [vmem:[#allocation18_spill] sm:$0xff] %v4248_v62  ;;  %v565_v43 = vpop.xlane.xlu1 %564  ;;  %3219 = vpow2.f32 %v750_v42  ;;  %v628_v26 = vsub.f32 %v6227_v44, %v562_v52  ;;  %918 = vadd.xlane.f32.xlu1 %v917_v59  ;;  %921 = vadd.xlane.f32.xlu0 %v920_v48  ;;  %v923_v60 = vsel %vm244_vm0, %v4248_v62, 0.0 }
 0x12d   : > { %v629_v63 = vsub.f32 %v6228_v51, %v565_v43  ;;  %3221 = vpow2.f32 %v752_v56 }
 0x12e   : > { %v4256_v6 = vpop.eup %3211  ;;  %v754_v50 = vmul.f32 1.442695, %v628_v26 }
 0x12f   : > { %6229 = vst [vmem:[#allocation19_spill] sm:$0xff] %v4256_v6  ;;  %v756_v58 = vmul.f32 1.442695, %v629_v63  ;;  %v4258_v34 = vpop.eup %3213  ;;  %v926_v18 = vsel %vm244_vm0, %v4256_v6, 0.0 }
 0x130   : > { %6230 = vst [vmem:[#allocation20_spill] sm:$0xff] %v4258_v34  ;;  %3223 = vpow2.f32 %v754_v50  ;;  %924 = vadd.xlane.f32.xlu1 %v923_v60  ;;  %927 = vadd.xlane.f32.xlu0 %v926_v18  ;;  %v929_v52 = vsel %vm244_vm0, %v4258_v34, 0.0 }
 0x131   : > { %3225 = vpow2.f32 %v756_v58  ;;  %v4295_v58 = vld [vmem:[%s4292_s4] sm:$0xff]  }
 0x132   : > { %v4264_v43 = vpop.eup %3215 }
 0x133   : > { %6231 = vst [vmem:[#allocation40_spill] sm:$0xff] %v4264_v43  ;;  %v4266_v59 = vpop.eup %3217  ;;  %v932_v42 = vsel %vm244_vm0, %v4264_v43, 0.0 }
 0x134   : > { %6232 = vst [vmem:[#allocation41_spill] sm:$0xff] %v4266_v59  ;;  %930 = vadd.xlane.f32.xlu1 %v929_v52  ;;  %933 = vadd.xlane.f32.xlu0 %v932_v42  ;;  %v935_v56 = vsel %vm244_vm0, %v4266_v59, 0.0  ;;  %v2882_v42 = vunpack.c.1.s8 %v4295_v58 }
 0x136   : > { %v4272_v48 = vpop.eup %3219 }
 0x137   : > { %6233 = vst [vmem:[#allocation42_spill] sm:$0xff] %v4272_v48  ;;  %v4274_v18 = vpop.eup %3221  ;;  %v938_v44 = vsel %vm244_vm0, %v4272_v48, 0.0  ;;  %v6093_v48 = vmov 0.0  }
 0x138   : > { %6234 = vst [vmem:[#allocation43_spill] sm:$0xff] %v4274_v18  ;;  %936 = vadd.xlane.f32.xlu1 %v935_v56  ;;  %939 = vadd.xlane.f32.xlu0 %v938_v44  ;;  %v941_v26 = vsel %vm244_vm0, %v4274_v18, 0.0  ;;  %v2881_v56 = vunpack.c.0.s8 %v4295_v58  ;;  %v4302_v44 = vld [vmem:[%s4292_s4 + $0x10] sm:$0xff]   ;;  %245 = vst.msk [vmem:[#allocation2] sm:$0xff] %vm244_vm0, %v6093_v48  ;;  %v3012_v18 = vld [vmem:[%s4292_s4 + $0x18] sm:$0xff]  }
 0x139   : > { %246 = vst.msk [vmem:[#allocation2 + $0x8] sm:$0xff] %vm244_vm0, %v6093_v48  ;;  %247 = vst.msk [vmem:[#allocation2 + $0x10] sm:$0xff] %vm244_vm0, %v6093_v48  ;;  %v6237_v43 = vunpack.c.1.s8 %v4302_v44  ;;  %v2902_v6 = vunpack.c.3.s8 %v4302_v44  ;;  %v2906_v34 = vunpack.c.1.s8 %v3012_v18  ;;  %v2897_v36 = vunpack.c.0.s8 %v4302_v44 }
 0x13a   : > { %v4280_v51 = vpop.eup %3223  ;;  %248 = vst.msk [vmem:[#allocation2 + $0x18] sm:$0xff] %vm244_vm0, %v6093_v48  ;;  %249 = vst.msk [vmem:[#allocation2 + $0x20] sm:$0xff] %vm244_vm0, %v6093_v48  ;;  %v2905_v29 = vunpack.c.0.s8 %v3012_v18  ;;  %v2909_v25 = vunpack.c.2.s8 %v3012_v18 }
 0x13b   : > { %6235 = vst [vmem:[#allocation44_spill] sm:$0xff] %v4280_v51  ;;  %v4282_v63 = vpop.eup %3225  ;;  %v944_v60 = vsel %vm244_vm0, %v4280_v51, 0.0  ;;  %250 = vst.msk [vmem:[#allocation2 + $0x28] sm:$0xff] %vm244_vm0, %v6093_v48  ;;  %v2886_v51 = vunpack.c.3.s8 %v4295_v58 }
 0x13c   : > { %6236 = vst [vmem:[#allocation45_spill] sm:$0xff] %v4282_v63  ;;  %942 = vadd.xlane.f32.xlu1 %v941_v26  ;;  %945 = vadd.xlane.f32.xlu0 %v944_v60  ;;  %v947_v50 = vsel %vm244_vm0, %v4282_v63, 0.0  ;;  %251 = vst.msk [vmem:[#allocation2 + $0x30] sm:$0xff] %vm244_vm0, %v6093_v48  ;;  %v3008_v63 = vld [vmem:[%s4292_s4 + $0x8] sm:$0xff]  }
 0x13d   : > { %252 = vst.msk [vmem:[#allocation2 + $0x38] sm:$0xff] %vm244_vm0, %v6093_v48  ;;  %253 = vst.msk [vmem:[#allocation2 + $0x40] sm:$0xff] %vm244_vm0, %v6093_v48  ;;  %v2890_v10 = vunpack.c.1.s8 %v3008_v63  ;;  %v2893_v0 = vunpack.c.2.s8 %v3008_v63  ;;  %v2894_v35 = vunpack.c.3.s8 %v3008_v63 }
 0x13e   : > { %254 = vst.msk [vmem:[#allocation2 + $0x48] sm:$0xff] %vm244_vm0, %v6093_v48  ;;  %255 = vst.msk [vmem:[#allocation2 + $0x50] sm:$0xff] %vm244_vm0, %v6093_v48 }
 0x13f   : > { %256 = vst.msk [vmem:[#allocation2 + $0x58] sm:$0xff] %vm244_vm0, %v6093_v48  ;;  %257 = vst.msk [vmem:[#allocation2 + $0x60] sm:$0xff] %vm244_vm0, %v6093_v48 }
 0x140   : > { %948 = vadd.xlane.f32.xlu1 %v947_v50  ;;  %v2885_v50 = vunpack.c.2.s8 %v4295_v58  ;;  %258 = vst.msk [vmem:[#allocation2 + $0x68] sm:$0xff] %vm244_vm0, %v6093_v48  ;;  %259 = vst.msk [vmem:[#allocation2 + $0x70] sm:$0xff] %vm244_vm0, %v6093_v48 }
 0x141   : > { %260 = vst.msk [vmem:[#allocation2 + $0x78] sm:$0xff] %vm244_vm0, %v6093_v48  ;;  %261 = vst.msk [vmem:[#allocation2 + $0x80] sm:$0xff] %vm244_vm0, %v6093_v48 }
 0x142   : > { %262 = vst.msk [vmem:[#allocation2 + $0x88] sm:$0xff] %vm244_vm0, %v6093_v48  ;;  %263 = vst.msk [vmem:[#allocation2 + $0x90] sm:$0xff] %vm244_vm0, %v6093_v48 }
 0x143   : > { %264 = vst.msk [vmem:[#allocation2 + $0x98] sm:$0xff] %vm244_vm0, %v6093_v48  ;;  %265 = vst.msk [vmem:[#allocation2 + $0xa0] sm:$0xff] %vm244_vm0, %v6093_v48 }
 0x144   : > { %266 = vst.msk [vmem:[#allocation2 + $0xa8] sm:$0xff] %vm244_vm0, %v6093_v48  ;;  %267 = vst.msk [vmem:[#allocation2 + $0xb0] sm:$0xff] %vm244_vm0, %v6093_v48 }
 0x145   : > { %268 = vst.msk [vmem:[#allocation2 + $0xb8] sm:$0xff] %vm244_vm0, %v6093_v48  ;;  %269 = vst.msk [vmem:[#allocation2 + $0xc0] sm:$0xff] %vm244_vm0, %v6093_v48 }
 0x146   : > { %270 = vst.msk [vmem:[#allocation2 + $0xc8] sm:$0xff] %vm244_vm0, %v6093_v48  ;;  %271 = vst.msk [vmem:[#allocation2 + $0xd0] sm:$0xff] %vm244_vm0, %v6093_v48 }
 0x147   : > { %272 = vst.msk [vmem:[#allocation2 + $0xd8] sm:$0xff] %vm244_vm0, %v6093_v48  ;;  %273 = vst.msk [vmem:[#allocation2 + $0xe0] sm:$0xff] %vm244_vm0, %v6093_v48 }
 0x148   : > { %274 = vst.msk [vmem:[#allocation2 + $0xe8] sm:$0xff] %vm244_vm0, %v6093_v48  ;;  %275 = vst.msk [vmem:[#allocation2 + $0xf0] sm:$0xff] %vm244_vm0, %v6093_v48 }
 0x149   : > { %276 = vst.msk [vmem:[#allocation2 + $0xf8] sm:$0xff] %vm244_vm0, %v6093_v48  ;;  %277 = vst.msk [vmem:[#allocation2 + $0x100] sm:$0xff] %vm244_vm0, %v6093_v48 }
 0x14a   : > { %278 = vst.msk [vmem:[#allocation2 + $0x108] sm:$0xff] %vm244_vm0, %v6093_v48  ;;  %279 = vst.msk [vmem:[#allocation2 + $0x110] sm:$0xff] %vm244_vm0, %v6093_v48 }
 0x14b   : > { %280 = vst.msk [vmem:[#allocation2 + $0x118] sm:$0xff] %vm244_vm0, %v6093_v48  ;;  %281 = vst.msk [vmem:[#allocation2 + $0x120] sm:$0xff] %vm244_vm0, %v6093_v48 }
 0x14c   : > { %282 = vst.msk [vmem:[#allocation2 + $0x128] sm:$0xff] %vm244_vm0, %v6093_v48  ;;  %283 = vst.msk [vmem:[#allocation2 + $0x130] sm:$0xff] %vm244_vm0, %v6093_v48 }
 0x14d   : > { %v4297_v52 = vpop.xlane.xlu0 %759  ;;  %284 = vst.msk [vmem:[#allocation2 + $0x138] sm:$0xff] %vm244_vm0, %v6093_v48  ;;  %285 = vst.msk [vmem:[#allocation2 + $0x140] sm:$0xff] %vm244_vm0, %v6093_v48 }
 0x14e   : > { %286 = vst.msk [vmem:[#allocation2 + $0x148] sm:$0xff] %vm244_vm0, %v6093_v48  ;;  %287 = vst.msk [vmem:[#allocation2 + $0x150] sm:$0xff] %vm244_vm0, %v6093_v48  ;;  %3227 = vlog2.f32 %v4297_v52 }
 0x14f   : > { %288 = vst.msk [vmem:[#allocation2 + $0x158] sm:$0xff] %vm244_vm0, %v6093_v48  ;;  %289 = vst.msk [vmem:[#allocation2 + $0x160] sm:$0xff] %vm244_vm0, %v6093_v48 }
 0x150   : > { %290 = vst.msk [vmem:[#allocation2 + $0x168] sm:$0xff] %vm244_vm0, %v6093_v48  ;;  %291 = vst.msk [vmem:[#allocation2 + $0x170] sm:$0xff] %vm244_vm0, %v6093_v48 }
 0x151   : > { %1468 = vperm.xlu1 %3098, %v2882_v42   ;;  %v4304_v26 = vpop.xlane.xlu1 %762  ;;  %v4306_v60 = vpop.xlane.xlu0 %765  ;;  %292 = vst.msk [vmem:[#allocation2 + $0x178] sm:$0xff] %vm244_vm0, %v6093_v48  ;;  %293 = vst.msk [vmem:[#allocation2 + $0x180] sm:$0xff] %vm244_vm0, %v6093_v48 }
 0x152   : > { %1465 = vperm.xlu0 %3097, %v2881_v56   ;;  %294 = vst.msk [vmem:[#allocation2 + $0x188] sm:$0xff] %vm244_vm0, %v6093_v48  ;;  %295 = vst.msk [vmem:[#allocation2 + $0x190] sm:$0xff] %vm244_vm0, %v6093_v48 }
 0x153   : > { %296 = vst.msk [vmem:[#allocation2 + $0x198] sm:$0xff] %vm244_vm0, %v6093_v48  ;;  %297 = vst.msk [vmem:[#allocation2 + $0x1a0] sm:$0xff] %vm244_vm0, %v6093_v48 }
 0x154   : > { %298 = vst.msk [vmem:[#allocation2 + $0x1a8] sm:$0xff] %vm244_vm0, %v6093_v48  ;;  %299 = vst.msk [vmem:[#allocation2 + $0x1b0] sm:$0xff] %vm244_vm0, %v6093_v48 }
 0x155   : > { %300 = vst.msk [vmem:[#allocation2 + $0x1b8] sm:$0xff] %vm244_vm0, %v6093_v48  ;;  %301 = vst.msk [vmem:[#allocation2 + $0x1c0] sm:$0xff] %vm244_vm0, %v6093_v48  ;;  %1471 = vperm.xlu1 %3098, %v2885_v50   ;;  %v4440_v42 = vpop.xlane.xlu1 %768  ;;  %v4442_v56 = vpop.xlane.xlu0 %771  ;;  %v2889_v50 = vunpack.c.0.s8 %v3008_v63  ;;  %v2901_v63 = vunpack.c.2.s8 %v4302_v44  ;;  %v2934_v44 = vunpack.c.3.s8 %v3018_v33 }
 0x156   : > { %302 = vst.msk [vmem:[#allocation2 + $0x1c8] sm:$0xff] %vm244_vm0, %v6093_v48  ;;  %303 = vst.msk [vmem:[#allocation2 + $0x1d0] sm:$0xff] %vm244_vm0, %v6093_v48  ;;  %1492 = vperm.xlu0 %3097, %v6237_v43   ;;  %v2910_v43 = vunpack.c.3.s8 %v3012_v18 }
 0x157   : > { %304 = vst.msk [vmem:[#allocation2 + $0x1d8] sm:$0xff] %vm244_vm0, %v6093_v48  ;;  %305 = vst.msk [vmem:[#allocation2 + $0x1e0] sm:$0xff] %vm244_vm0, %v6093_v48 }
 0x158   : > { %306 = vst.msk [vmem:[#allocation2 + $0x1e8] sm:$0xff] %vm244_vm0, %v6093_v48  ;;  %307 = vst.msk [vmem:[#allocation2 + $0x1f0] sm:$0xff] %vm244_vm0, %v6093_v48 }
 0x159   : > { %308 = vst.msk [vmem:[#allocation2 + $0x1f8] sm:$0xff] %vm244_vm0, %v6093_v48  ;;  %1474 = vperm.xlu1 %3098, %v2886_v51   ;;  %v4450_v59 = vpop.xlane.xlu1 %774  ;;  %v4452_v48 = vpop.xlane.xlu0 %777 }
 0x15a   : > { %1498 = vperm.xlu0 %3097, %v2902_v6  }
 0x15d   : > { %1477 = vperm.xlu1 %3098, %v2889_v50   ;;  %v4454_v62 = vpop.xlane.xlu1 %780  ;;  %v4456_v58 = vpop.xlane.xlu0 %783 }
 0x15e   : > { %1504 = vperm.xlu0 %3097, %v2906_v34   ;;  %v3016_v34 = vld [vmem:[%s4292_s4 + $0x28] sm:$0xff]  }
 0x15f   : > { %v2921_v30 = vunpack.c.0.s8 %v3016_v34  ;;  %v2925_v7 = vunpack.c.2.s8 %v3016_v34 }
 0x161   : > { %1480 = vperm.xlu1 %3098, %v2890_v10   ;;  %v4459_v23 = vpop.xlane.xlu1 %786  ;;  %v4461_v51 = vpop.xlane.xlu0 %789 }
 0x162   : > { %1510 = vperm.xlu0 %3097, %v2910_v43   ;;  %v2922_v43 = vunpack.c.1.s8 %v3016_v34 }
 0x165   : > { %1483 = vperm.xlu1 %3098, %v2893_v0   ;;  %v4463_v6 = vpop.xlane.xlu1 %792  ;;  %v4465_v50 = vpop.xlane.xlu0 %795 }
 0x166   : > { %1516 = vperm.xlu0 %3097, %v2914_v3   ;;  %v2926_v3 = vunpack.c.3.s8 %v3016_v34  ;;  %v2933_v34 = vunpack.c.2.s8 %v3018_v33 }
 0x169   : > { %1486 = vperm.xlu1 %3098, %v2894_v35   ;;  %v4468_v27 = vpop.xlane.xlu1 %798  ;;  %v4470_v10 = vpop.xlane.xlu0 %801 }
 0x16a   : > { %1522 = vperm.xlu0 %3097, %v2918_v40   ;;  %v2930_v40 = vunpack.c.1.s8 %v3018_v33 }
 0x16d   : > { %1489 = vperm.xlu1 %3098, %v2897_v36   ;;  %v4473_v0 = vpop.xlane.xlu1 %804  ;;  %v4475_v19 = vpop.xlane.xlu0 %807 }
 0x16e   : > { %1528 = vperm.xlu0 %3097, %v2922_v43   ;;  %v3020_v43 = vld [vmem:[%s4292_s4 + $0x38] sm:$0xff]  }
 0x16f   : > { %v2938_v57 = vunpack.c.1.s8 %v3020_v43  ;;  %v2942_v18 = vunpack.c.3.s8 %v3020_v43 }
 0x171   : > { %1495 = vperm.xlu1 %3098, %v2901_v63   ;;  %v4479_v35 = vpop.xlane.xlu1 %810  ;;  %v4481_v11 = vpop.xlane.xlu0 %813 }
 0x172   : > { %1534 = vperm.xlu0 %3097, %v2926_v3  }
 0x175   : > { %1501 = vperm.xlu1 %3098, %v2905_v29   ;;  %v4483_v36 = vpop.xlane.xlu1 %816  ;;  %v4485_v4 = vpop.xlane.xlu0 %819 }
 0x176   : > { %1540 = vperm.xlu0 %3097, %v2930_v40   ;;  %v4497_v40 = vld [vmem:[%s4292_s4 + $0x40] sm:$0xff]  }
 0x179   : > { %1507 = vperm.xlu1 %3098, %v2909_v25   ;;  %v4488_v61 = vpop.xlane.xlu1 %822  ;;  %v4490_v63 = vpop.xlane.xlu0 %825 }
 0x17a   : > { %1546 = vperm.xlu0 %3097, %v2934_v44   ;;  %v2946_v44 = vunpack.c.1.s8 %v4497_v40 }
 0x17d   : > { %1513 = vperm.xlu1 %3098, %v2913_v21   ;;  %v4492_v3 = vpop.xlane.xlu1 %828  ;;  %v4494_v29 = vpop.xlane.xlu0 %831 }
 0x17e   : > { %1552 = vperm.xlu0 %3097, %v2938_v57   ;;  %v2950_v57 = vunpack.c.3.s8 %v4497_v40 }
 0x181   : > { %1519 = vperm.xlu1 %3098, %v2917_v1   ;;  %v4499_v25 = vpop.xlane.xlu1 %834  ;;  %v4501_v53 = vpop.xlane.xlu0 %837 }
 0x182   : > { %6238 = vst [vmem:[#allocation46_spill] sm:$0xff] %v4499_v25  ;;  %6239 = vst [vmem:[#allocation47_spill] sm:$0xff] %v4501_v53  ;;  %1558 = vperm.xlu0 %3097, %v2942_v18   ;;  %v2929_v18 = vunpack.c.0.s8 %v3018_v33  ;;  %v4523_v25 = vld [vmem:[%s4292_s4 + $0x50] sm:$0xff]   ;;  %v2941_v33 = vunpack.c.2.s8 %v3020_v43 }
 0x185   : > { %1525 = vperm.xlu1 %3098, %v2921_v30   ;;  %v4504_v21 = vpop.xlane.xlu1 %840  ;;  %v4506_v49 = vpop.xlane.xlu0 %843  ;;  %v2954_v30 = vunpack.c.1.s8 %v4510_v28 }
 0x186   : > { %6240 = vst [vmem:[#allocation48_spill] sm:$0xff] %v4504_v21  ;;  %6241 = vst [vmem:[#allocation49_spill] sm:$0xff] %v4506_v49  ;;  %1564 = vperm.xlu0 %3097, %v2946_v44   ;;  %v2958_v44 = vunpack.c.3.s8 %v4510_v28 }
 0x189   : > { %1531 = vperm.xlu1 %3098, %v2925_v7   ;;  %v4512_v1 = vpop.xlane.xlu1 %846  ;;  %v4514_v53 = vpop.xlane.xlu0 %849 }
 0x18a   : > { %6242 = vst [vmem:[#allocation50_spill] sm:$0xff] %v4512_v1  ;;  %6243 = vst [vmem:[#allocation51_spill] sm:$0xff] %v4514_v53  ;;  %1570 = vperm.xlu0 %3097, %v2950_v57   ;;  %v2937_v57 = vunpack.c.0.s8 %v3020_v43  ;;  %v4536_v1 = vld [vmem:[%s4292_s4 + $0x58] sm:$0xff]   ;;  %v951_v43 = vadd.f32 %v3986_v31, %v4304_v26  ;;  %v954_v31 = vadd.f32 %v3996_v54, %v4442_v56 }
 0x18b   : > { %v956_v54 = vadd.f32 %v4006_v9, %v4452_v48 }
 0x18d   : > { %1537 = vperm.xlu1 %3098, %v2929_v18   ;;  %v4517_v21 = vpop.xlane.xlu1 %852  ;;  %v4519_v49 = vpop.xlane.xlu0 %855  ;;  %v2962_v18 = vunpack.c.1.s8 %v4523_v25 }
 0x18e   : > { %6244 = vst [vmem:[#allocation52_spill] sm:$0xff] %v4517_v21  ;;  %6245 = vst [vmem:[#allocation53_spill] sm:$0xff] %v4519_v49  ;;  %1576 = vperm.xlu0 %3097, %v2954_v30   ;;  %v2966_v30 = vunpack.c.3.s8 %v4523_v25 }
 0x191   : > { %1543 = vperm.xlu1 %3098, %v2933_v34   ;;  %v4525_v7 = vpop.xlane.xlu1 %858  ;;  %v4527_v53 = vpop.xlane.xlu0 %861  ;;  %v950_v34 = vadd.f32 %v3976_v22, %v4297_v52  ;;  %v952_v22 = vadd.f32 %v3978_v39, %v4306_v60  ;;  %v4560_v52 = vld [vmem:[%s4292_s4 + $0x60] sm:$0xff]   ;;  %v953_v39 = vadd.f32 %v3988_v15, %v4440_v42  ;;  %v955_v15 = vadd.f32 %v3998_v2, %v4450_v59  ;;  %v4591_v2 = vld [vmem:[%s4292_s4 + $0x68] sm:$0xff]  }
 0x192   : > { %6246 = vst [vmem:[#allocation54_spill] sm:$0xff] %v4527_v53  ;;  %1582 = vperm.xlu0 %3097, %v2958_v44  }
 0x193   : > { %3229 = vlog2.f32 %v950_v34 }
 0x194   : > { %3231 = vlog2.f32 %v4304_v26  ;;  %v2978_v26 = vunpack.c.1.s8 %v4560_v52 }
 0x195   : > { %1549 = vperm.xlu1 %3098, %v2937_v57   ;;  %v4530_v21 = vpop.xlane.xlu1 %864  ;;  %v4532_v49 = vpop.xlane.xlu0 %867  ;;  %v2945_v57 = vunpack.c.0.s8 %v4497_v40  ;;  %3233 = vlog2.f32 %v4306_v60 }
 0x196   : > { %6247 = vst [vmem:[#allocation55_spill] sm:$0xff] %v4532_v49  ;;  %1588 = vperm.xlu0 %3097, %v2962_v18   ;;  %v2970_v49 = vunpack.c.1.s8 %v4536_v1  ;;  %3235 = vlog2.f32 %v951_v43 }
 0x197   : > { %3237 = vlog2.f32 %v952_v22  ;;  %v957_v22 = vadd.f32 %v4008_v12, %v4454_v62  ;;  %v2986_v12 = vunpack.c.1.s8 %v4591_v2 }
 0x198   : > { %3239 = vlog2.f32 %v4440_v42  ;;  %v2957_v42 = vunpack.c.2.s8 %v4510_v28 }
 0x199   : > { %1555 = vperm.xlu1 %3098, %v2941_v33   ;;  %v4540_v53 = vpop.xlane.xlu1 %870  ;;  %v4542_v44 = vpop.xlane.xlu0 %873  ;;  %3241 = vlog2.f32 %v4442_v56  ;;  %v2982_v56 = vunpack.c.3.s8 %v4560_v52 }
 0x19a   : > { %6248 = vst [vmem:[#allocation56_spill] sm:$0xff] %v4542_v44  ;;  %1594 = vperm.xlu0 %3097, %v2966_v30   ;;  %v2949_v44 = vunpack.c.2.s8 %v4497_v40  ;;  %v2974_v30 = vunpack.c.3.s8 %v4536_v1  ;;  %3243 = vlog2.f32 %v953_v39 }
 0x19b   : > { %3245 = vlog2.f32 %v954_v31 }
 0x19c   : > { %3247 = vlog2.f32 %v4450_v59  ;;  %v958_v59 = vadd.f32 %v4016_v46, %v4456_v58  ;;  %v959_v46 = vadd.f32 %v4018_v17, %v4459_v23  ;;  %v2990_v17 = vunpack.c.3.s8 %v4591_v2 }
 0x19d   : > { %1561 = vperm.xlu1 %3098, %v2945_v57   ;;  %v4551_v18 = vpop.xlane.xlu1 %876  ;;  %v4553_v33 = vpop.xlane.xlu0 %879  ;;  %3249 = vlog2.f32 %v4452_v48  ;;  %v2961_v48 = vunpack.c.0.s8 %v4523_v25 }
 0x19e   : > { %1600 = vperm.xlu0 %3097, %v2970_v49   ;;  %v2953_v49 = vunpack.c.0.s8 %v4510_v28  ;;  %v4583_v57 = vpop.eup %3227  ;;  %3251 = vlog2.f32 %v955_v15 }
 0x19f   : > { %v4587_v43 = vpop.eup %3229  ;;  %3253 = vlog2.f32 %v956_v54 }
 0x1a0   : > { %v4593_v9 = vpop.eup %3231  ;;  %3255 = vlog2.f32 %v4454_v62  ;;  %v960_v62 = vadd.f32 %v4026_v38, %v4461_v51 }
 0x1a1   : > { %1567 = vperm.xlu1 %3098, %v2949_v44   ;;  %v4566_v34 = vpop.xlane.xlu1 %882  ;;  %v4568_v40 = vpop.xlane.xlu0 %885  ;;  %3257 = vlog2.f32 %v4456_v58  ;;  %v2965_v58 = vunpack.c.2.s8 %v4523_v25 }
 0x1a2   : > { %6249 = vst [vmem:[#allocation57_spill] sm:$0xff] %v4566_v34  ;;  %6250 = vst [vmem:[#allocation58_spill] sm:$0xff] %v4568_v40  ;;  %1606 = vperm.xlu0 %3097, %v2974_v30   ;;  %v4597_v28 = vpop.eup %3233  ;;  %3259 = vlog2.f32 %v957_v22 }
 0x1a3   : > { %v4606_v31 = vpop.eup %3235  ;;  %3261 = vlog2.f32 %v958_v59  ;;  %v4634_v59 = vld [vmem:[%s4292_s4 + $0x70] sm:$0xff]  }
 0x1a4   : > { %3263 = vlog2.f32 %v4459_v23  ;;  %v962_v23 = vadd.f32 %v4036_v14, %v4465_v50  ;;  %v963_v14 = vadd.f32 %v4038_v47, %v4468_v27  ;;  %v2998_v47 = vunpack.c.3.s8 %v4634_v59 }
 0x1a5   : > { %1573 = vperm.xlu1 %3098, %v2953_v49   ;;  %v4578_v60 = vpop.xlane.xlu1 %888  ;;  %v4580_v44 = vpop.xlane.xlu0 %891  ;;  %3265 = vlog2.f32 %v4461_v51  ;;  %v2969_v51 = vunpack.c.0.s8 %v4536_v1 }
 0x1a6   : > { %6251 = vst [vmem:[#allocation59_spill] sm:$0xff] %v4578_v60  ;;  %6252 = vst [vmem:[#allocation60_spill] sm:$0xff] %v4580_v44  ;;  %1612 = vperm.xlu0 %3097, %v2978_v26   ;;  %v4610_v49 = vpop.eup %3237  ;;  %3267 = vlog2.f32 %v959_v46  ;;  %v6263_v44 = vlaneseq }
 0x1a7   : > { %v4613_v26 = vpop.eup %3239  ;;  %3269 = vlog2.f32 %v960_v62 }
 0x1a8   : > { %v4617_v15 = vpop.eup %3241  ;;  %3271 = vlog2.f32 %v4463_v6 }
 0x1a9   : > { %1579 = vperm.xlu1 %3098, %v2957_v42   ;;  %v4601_v30 = vpop.xlane.xlu1 %894  ;;  %v4603_v39 = vpop.xlane.xlu0 %897  ;;  %3273 = vlog2.f32 %v4465_v50  ;;  %v2973_v50 = vunpack.c.2.s8 %v4536_v1  ;;  %v965_v1 = vadd.f32 %v4048_v5, %v4473_v0 }
 0x1aa   : > { %6253 = vst [vmem:[#allocation61_spill] sm:$0xff] %v4601_v30  ;;  %6254 = vst [vmem:[#allocation62_spill] sm:$0xff] %v4603_v39  ;;  %1618 = vperm.xlu0 %3097, %v2982_v56   ;;  %v4626_v56 = vpop.eup %3243 }
 0x1ab   : > { %v4630_v22 = vpop.eup %3245 }
 0x1ac   : > { %v4636_v38 = vpop.eup %3247 }
 0x1ad   : > { %1585 = vperm.xlu1 %3098, %v2961_v48   ;;  %v4621_v54 = vpop.xlane.xlu1 %900  ;;  %v4623_v42 = vpop.xlane.xlu0 %903  ;;  %v961_v48 = vadd.f32 %v4028_v8, %v4463_v6  ;;  %v2994_v8 = vunpack.c.1.s8 %v4634_v59  ;;  %v964_v6 = vadd.f32 %v4046_v55, %v4470_v10  ;;  %v2977_v55 = vunpack.c.0.s8 %v4560_v52 }
 0x1ae   : > { %6255 = vst [vmem:[#allocation63_spill] sm:$0xff] %v4621_v54  ;;  %6256 = vst [vmem:[#allocation64_spill] sm:$0xff] %v4623_v42  ;;  %1624 = vperm.xlu0 %3097, %v2986_v12   ;;  %v4640_v25 = vpop.eup %3249 }
 0x1af   : > { %v4649_v39 = vpop.eup %3251  ;;  %3275 = vlog2.f32 %v961_v48 }
 0x1b0   : > { %v4653_v46 = vpop.eup %3253  ;;  %3277 = vlog2.f32 %v962_v23 }
 0x1b1   : > { %1591 = vperm.xlu1 %3098, %v2965_v58   ;;  %v4644_v12 = vpop.xlane.xlu1 %906  ;;  %v4646_v42 = vpop.xlane.xlu0 %909  ;;  %v4661_v58 = vld [vmem:[%s4292_s4 + $0x78] sm:$0xff]   ;;  %3279 = vlog2.f32 %v4468_v27  ;;  %v2981_v27 = vunpack.c.2.s8 %v4560_v52  ;;  %v4723_v52 = vmul.f32 0.6931472, %v4610_v49  ;;  %v4738_v49 = vmul.f32 0.6931472, %v4593_v9 }
 0x1b2   : > { %6257 = vst [vmem:[#allocation65_spill] sm:$0xff] %v4644_v12  ;;  %6258 = vst [vmem:[#allocation66_spill] sm:$0xff] %v4646_v42  ;;  %1630 = vperm.xlu0 %3097, %v2990_v17   ;;  %v4656_v62 = vpop.eup %3255  ;;  %3281 = vlog2.f32 %v4470_v10  ;;  %v3002_v23 = vunpack.c.1.s8 %v4661_v58  ;;  %v966_v10 = vadd.f32 %v4056_v32, %v4475_v19  ;;  %v4703_v32 = vmul.f32 0.6931472, %v4587_v43 }
 0x1b3   : > { %v4663_v42 = vpop.eup %3257  ;;  %3283 = vlog2.f32 %v963_v14  ;;  %v4712_v14 = vand.u32 127, %v6263_v44  ;;  %v4720_v43 = vmul.f32 0.6931472, %v4606_v31  ;;  %v4754_v9 = vmul.f32 0.6931472, %v4630_v22 }
 0x1b4   : > { %v4672_v54 = vpop.eup %3259  ;;  %3285 = vlog2.f32 %v964_v6  ;;  %v967_v6 = vadd.f32 %v4058_v13, %v4479_v35  ;;  %v4735_v13 = vmul.f32 0.6931472, %v4626_v56  ;;  %v4750_v56 = vmul.f32 0.6931472, %v4617_v15 }
 0x1b5   : > { %1597 = vperm.xlu1 %3098, %v2969_v51   ;;  %v4667_v17 = vpop.xlane.xlu1 %912  ;;  %v4669_v12 = vpop.xlane.xlu0 %915  ;;  %3287 = vlog2.f32 %v4473_v0  ;;  %v4763_v15 = vmul.f32 0.6931472, %v4636_v38  ;;  %v4778_v38 = vmul.f32 0.6931472, %v4649_v39  ;;  %v971_v39 = vadd.f32 %v4078_v41, %v4488_v61 }
 0x1b6   : > { %6259 = vst [vmem:[#allocation67_spill] sm:$0xff] %v4667_v17  ;;  %6260 = vst [vmem:[#allocation68_spill] sm:$0xff] %v4669_v12  ;;  %1636 = vperm.xlu0 %3097, %v2994_v8   ;;  %v4676_v48 = vpop.eup %3261  ;;  %v3006_v8 = vunpack.c.3.s8 %v4661_v58  ;;  %3289 = vlog2.f32 %v4475_v19  ;;  %v968_v19 = vadd.f32 %v4066_v16, %v4481_v11 }
 0x1b7   : > { %v4681_v17 = vpop.eup %3263  ;;  %3291 = vlog2.f32 %v965_v1 }
 0x1b8   : > { %v4687_v12 = vpop.eup %3265  ;;  %3293 = vlog2.f32 %v966_v10  ;;  %v4747_v10 = vmul.f32 0.6931472, %v4613_v26 }
 0x1b9   : > { %1603 = vperm.xlu1 %3098, %v2973_v50   ;;  %v4691_v30 = vpop.xlane.xlu1 %918  ;;  %v4693_v51 = vpop.xlane.xlu0 %921  ;;  %3295 = vlog2.f32 %v4479_v35  ;;  %v969_v35 = vadd.f32 %v4068_v37, %v4483_v36  ;;  %v6268_v37 = vunpack.c.0.s8 %v4591_v2 }
 0x1ba   : > { %6261 = vst [vmem:[#allocation69_spill] sm:$0xff] %v4691_v30  ;;  %6262 = vst [vmem:[#allocation70_spill] sm:$0xff] %v4693_v51  ;;  %v4697_v5 = vpop.eup %3267  ;;  %1642 = vperm.xlu0 %3097, %v2998_v47   ;;  %v4708_v51 = vmul.f32 0.6931472, %v4583_v57  ;;  %v4741_v30 = vmul.f32 0.6931472, %v4597_v28  ;;  %3297 = vlog2.f32 %v4481_v11  ;;  %v970_v11 = vadd.f32 %v4076_v20, %v4485_v4 }
 0x1bb   : > { %v4705_v50 = vpop.eup %3269  ;;  %3299 = vlog2.f32 %v967_v6  ;;  %v4781_v20 = vmul.f32 0.6931472, %v4653_v46  ;;  %v4798_v46 = vmul.f32 0.6931472, %v4676_v48  ;;  %v4814_v48 = vmul.f32 0.6931472, %v4681_v17 }
 0x1bc   : > { %v4715_v47 = vpop.eup %3271  ;;  %3301 = vlog2.f32 %v968_v19  ;;  %v4784_v19 = vmul.f32 0.6931472, %v4656_v62 }
 0x1bd   : > { %v4725_v57 = vpop.eup %3273  ;;  %1609 = vperm.xlu1 %3098, %v2977_v55   ;;  %v4729_v44 = vpop.xlane.xlu1 %924  ;;  %3303 = vlog2.f32 %v4483_v36 }
 0x1be   : > { %6264 = vst [vmem:[#allocation71_spill] sm:$0xff] %v4729_v44  ;;  %v4731_v0 = vpop.xlane.xlu0 %927  ;;  %v3276_v31 = vpop.eup %3275  ;;  %1648 = vperm.xlu0 %3097, %v3002_v23   ;;  %v4774_v23 = vmul.f32 0.6931472, %v4640_v25  ;;  %3305 = vlog2.f32 %v4485_v4  ;;  %v4790_v25 = vmul.f32 0.6931472, %v4672_v54 }
 0x1bf   : > { %6265 = vst [vmem:[#allocation72_spill] sm:$0xff] %v4731_v0  ;;  %v3278_v55 = vpop.eup %3277  ;;  %3307 = vlog2.f32 %v969_v35  ;;  %v4801_v4 = vmul.f32 0.6931472, %v4687_v12  ;;  %v4811_v35 = vmul.f32 0.6931472, %v4705_v50 }
 0x1c0   : > { %v3280_v28 = vpop.eup %3279  ;;  %3309 = vlog2.f32 %v970_v11  ;;  %v4826_v26 = vmul.f32 0.6931472, %v3276_v31  ;;  %v4835_v12 = vmul.f32 0.6931472, %v3278_v55  ;;  %v6271_v31 = vunpack.c.2.s8 %v4591_v2 }
 0x1c1   : > { %v3282_v1 = vpop.eup %3281  ;;  %1615 = vperm.xlu1 %3098, %v2981_v27   ;;  %v4767_v22 = vpop.xlane.xlu1 %930  ;;  %3311 = vlog2.f32 %v4488_v61  ;;  %v4850_v55 = vmul.f32 0.6931472, %v3280_v28 }
 0x1c2   : > { %6266 = vst [vmem:[#allocation73_spill] sm:$0xff] %v4767_v22  ;;  %v4769_v6 = vpop.xlane.xlu0 %933  ;;  %v3284_v16 = vpop.eup %3283  ;;  %1654 = vperm.xlu0 %3097, %v3006_v8   ;;  %v4793_v8 = vmul.f32 0.6931472, %v4663_v42  ;;  %v4808_v42 = vmul.f32 0.6931472, %v4697_v5  ;;  %v972_v5 = vadd.f32 %v4086_v24, %v4490_v63  ;;  %3313 = vlog2.f32 %v4490_v63 }
 0x1c3   : > { %6267 = vst [vmem:[#allocation74_spill] sm:$0xff] %v4769_v6  ;;  %v3286_v27 = vpop.eup %3285  ;;  %v4831_v6 = vmul.f32 0.6931472, %v4725_v57  ;;  %3315 = vlog2.f32 %v971_v39  ;;  %v4838_v63 = vmul.f32 0.6931472, %v4715_v47  ;;  %v973_v47 = vadd.f32 %v4088_v45, %v4492_v3 }
 0x1c4   : > { %v3288_v36 = vpop.eup %3287  ;;  %v4846_v57 = vmul.f32 0.6931472, %v3284_v16  ;;  %v4852_v0 = vmul.f32 0.6931472, %v3282_v1  ;;  %v4856_v2 = vmul.f32 0.6931472, %v3286_v27  ;;  %3317 = vlog2.f32 %v972_v5 }
 0x1c5   : > { %v3290_v62 = vpop.eup %3289  ;;  %1621 = vperm.xlu1 %3098, %v6268_v37   ;;  %v4805_v54 = vpop.xlane.xlu1 %936  ;;  %3319 = vlog2.f32 %v4492_v3  ;;  %v4871_v5 = vmul.f32 0.6931472, %v3288_v36 }
 0x1c6   : > { %6269 = vst [vmem:[#allocation75_spill] sm:$0xff] %v4805_v54  ;;  %v3292_v41 = vpop.eup %3291  ;;  %v4824_v50 = vpop.xlane.xlu0 %939  ;;  %6273 = vst [vmem:[#allocation78_spill] sm:$0xff] %v4852_v0  ;;  %v4864_v28 = vmul.f32 0.6931472, %v3290_v62  ;;  %3321 = vlog2.f32 %v4494_v29  ;;  %v6295_v0 = vunpack.c.0.s8 %v4661_v58 }
 0x1c7   : > { %v3294_v37 = vpop.eup %3293  ;;  %6270 = vst [vmem:[#allocation76_spill] sm:$0xff] %v4824_v50  ;;  %6274 = vst [vmem:[#allocation79_spill] sm:$0xff] %v4856_v2  ;;  %v4862_v54 = vmul.f32 0.6931472, %v3292_v41  ;;  %v6279_v41 = vunpack.c.0.s8 %v4634_v59  ;;  %3323 = vlog2.f32 %v973_v47  ;;  %v6286_v47 = vld [vmem:[#allocation23_spill] sm:$0xff] }
 0x1c8   : > { %v3296_v61 = vpop.eup %3295  ;;  %v4869_v1 = vmul.f32 0.6931472, %v3294_v37 }
 0x1c9   : > { %v3298_v24 = vpop.eup %3297  ;;  %1627 = vperm.xlu1 %3098, %v6271_v31   ;;  %v4842_v50 = vpop.xlane.xlu1 %942  ;;  %v4890_v22 = vmul.f32 0.6931472, %v3296_v61 }
 0x1ca   : > { %6272 = vst [vmem:[#allocation77_spill] sm:$0xff] %v4842_v50  ;;  %v3300_v11 = vpop.eup %3299  ;;  %v6275_v50 = vld [vmem:[#allocation21_spill] sm:$0xff]  ;;  %6277 = vst [vmem:[#allocation80_spill] sm:$0xff] %v4869_v1  ;;  %v4884_v37 = vmul.f32 0.6931472, %v3298_v24  ;;  %v6285_v24 = vld [vmem:[#allocation47_spill] sm:$0xff] }
 0x1cb   : > { %v3302_v31 = vpop.eup %3301  ;;  %v974_v17 = vadd.f32 %v6275_v50, %v4494_v29  ;;  %6276 = vst [vmem:[#allocation21_spill] sm:$0xff] %v4864_v28  ;;  %v4874_v50 = vpop.xlane.xlu0 %945  ;;  %v4882_v62 = vmul.f32 0.6931472, %v3300_v11  ;;  %v976_v36 = vadd.f32 %v6286_v47, %v6285_v24 }
 0x1cc   : > { %v3304_v39 = vpop.eup %3303  ;;  %6278 = vst [vmem:[#allocation81_spill] sm:$0xff] %v4874_v50  ;;  %6281 = vst [vmem:[#allocation83_spill] sm:$0xff] %v4884_v37  ;;  %v4888_v29 = vmul.f32 0.6931472, %v3302_v31 }
 0x1cd   : > { %v3306_v27 = vpop.eup %3305  ;;  %1633 = vperm.xlu1 %3098, %v6279_v41   ;;  %v4878_v16 = vpop.xlane.xlu1 %948  ;;  %3325 = vlog2.f32 %v974_v17  ;;  %v6283_v41 = vld [vmem:[#allocation46_spill] sm:$0xff]  ;;  %v4896_v60 = vmul.f32 0.6931472, %v3304_v39  ;;  %v6287_v17 = vunpack.c.2.s8 %v4634_v59  ;;  %v6288_v59 = vmov 0.0   ;;  %v6290_v39 = vld [vmem:[#allocation24_spill] sm:$0xff] }
 0x1ce   : > { %6280 = vst [vmem:[#allocation82_spill] sm:$0xff] %v4878_v16  ;;  %v3308_v45 = vpop.eup %3307  ;;  %6282 = vst [vmem:[#allocation84_spill] sm:$0xff] %v4888_v29  ;;  %v6284_v16 = vld [vmem:[#allocation22_spill] sm:$0xff]  ;;  %3327 = vlog2.f32 %v6283_v41  ;;  %v4903_v40 = vmul.f32 0.6931472, %v3306_v27  ;;  %v6292_v27 = vsub.f32 %v4703_v32, %v4708_v51  ;;  %v6294_v29 = vld [vmem:[#allocation25_spill] sm:$0xff] }
 0x1cf   : > { %v3310_v50 = vpop.eup %3309  ;;  %v975_v44 = vadd.f32 %v6284_v16, %v6283_v41  ;;  %3329 = vlog2.f32 %v6285_v24  ;;  %v4910_v41 = vmul.f32 0.6931472, %v3308_v45  ;;  %v6289_v45 = vld [vmem:[#allocation48_spill] sm:$0xff] }
 0x1d0   : > { %v3312_v3 = vpop.eup %3311  ;;  %v4916_v47 = vmul.f32 0.6931472, %v3310_v50  ;;  %v977_v28 = vadd.f32 %v6290_v39, %v6289_v45 }
 0x1d1   : > { %v3314_v61 = vpop.eup %3313  ;;  %1639 = vperm.xlu1 %3098, %v6287_v17   ;;  %v1469_v16 = vpop.permute.xlu1 %1468  ;;  %v4918_v24 = vmul.f32 0.6931472, %v3312_v3  ;;  %3331 = vlog2.f32 %v975_v44  ;;  %v6293_v44 = vld [vmem:[#allocation49_spill] sm:$0xff] }
 0x1d2   : > { %v1466_v11 = vpop.permute.xlu0 %1465  ;;  %v3316_v34 = vpop.eup %3315  ;;  %vm1657_vm1 = vcmp.eq.s32.totalorder %v1469_v16, %v4712_v14  ;;  %3333 = vlog2.f32 %v976_v36  ;;  %v6291_v16 = vsub.f32 %v4720_v43, %v4738_v49  ;;  %v4930_v3 = vmul.f32 0.6931472, %v3314_v61 }
 0x1d3   : > { %vm1656_vm2 = vcmp.eq.s32.totalorder %v1466_v11, %v4712_v14  ;;  %v1721_v17 = vsel %vm1657_vm1, 0.6931472, %v6288_v59  ;;  %v3318_v37 = vpop.eup %3317  ;;  %v978_v1 = vadd.f32 %v6294_v29, %v6293_v44  ;;  %v4938_v43 = vmul.f32 0.6931472, %v3316_v34 }
 0x1d4   : > { %v1720_v31 = vsel %vm1656_vm2, 0.6931472, %v6288_v59  ;;  %v1785_v11 = vsub.f32 %v6291_v16, %v1721_v17  ;;  %v3320_v49 = vpop.eup %3319  ;;  %3335 = vlog2.f32 %v6289_v45  ;;  %v6296_v61 = vsub.f32 %v4723_v52, %v4741_v30 }
 0x1d5   : > { %v1784_v50 = vsub.f32 %v6292_v27, %v1720_v31  ;;  %1645 = vperm.xlu1 %3098, %v6295_v0   ;;  %v1472_v36 = vpop.permute.xlu1 %1471  ;;  %v3322_v29 = vpop.eup %3321  ;;  %3337 = vlog2.f32 %v6293_v44  ;;  %v4955_v45 = vmul.f32 0.6931472, %v3318_v37  ;;  %v6298_v44 = vunpack.c.2.s8 %v4661_v58 }
 0x1d6   : > { %v1493_v2 = vpop.permute.xlu0 %1492  ;;  %v4941_v51 = vmul.f32 %v1785_v11, %v1785_v11  ;;  %vm1658_vm3 = vcmp.eq.s32.totalorder %v1472_v36, %v4712_v14  ;;  %v3324_v31 = vpop.eup %3323  ;;  %3339 = vlog2.f32 %v977_v28  ;;  %v4957_v11 = vmul.f32 0.6931472, %v3320_v49 }
 0x1d7   : > { %v4943_v32 = vmul.f32 %v1784_v50, %v1784_v50  ;;  %v1722_v0 = vsel %vm1658_vm3, 0.6931472, %v6288_v59  ;;  %vm1665_vm4 = vcmp.eq.s32.totalorder %v1493_v2, %v4712_v14  ;;  %v3326_v16 = vpop.eup %3325  ;;  %3341 = vlog2.f32 %v978_v1 }
 0x1d8   : > { %v1786_v27 = vsub.f32 %v6296_v61, %v1722_v0  ;;  %v1729_v17 = vsel %vm1665_vm4, 0.6931472, %v6288_v59  ;;  %v6297_v2 = vsub.f32 %v4808_v42, %v4814_v48  ;;  %v3328_v52 = vpop.eup %3327  ;;  %v4966_v0 = vmul.f32 0.6931472, %v3322_v29  ;;  %v6300_v42 = vld [vmem:[#allocation50_spill] sm:$0xff]  ;;  %v6303_v29 = vld [vmem:[#allocation51_spill] sm:$0xff] }
 0x1d9   : > { %1651 = vperm.xlu1 %3098, %v6298_v44   ;;  %v1475_v28 = vpop.permute.xlu1 %1474  ;;  %v3330_v1 = vpop.eup %3329  ;;  %v6301_v48 = vld [vmem:[#allocation26_spill] sm:$0xff]  ;;  %3343 = vlog2.f32 %v6300_v42  ;;  %v6305_v44 = vsub.f32 %v4735_v13, %v4747_v10  ;;  %v4987_v34 = vmul.f32 0.6931472, %v3326_v16  ;;  %v4989_v30 = vmul.f32 0.6931472, %v3328_v52  ;;  %v6308_v16 = vld [vmem:[#allocation52_spill] sm:$0xff] }
 0x1da   : > { %v1793_v50 = vsub.f32 %v6297_v2, %v1729_v17  ;;  %v1499_v36 = vpop.permute.xlu0 %1498  ;;  %v4968_v37 = vmul.f32 %v1786_v27, %v1786_v27  ;;  %vm1659_vm5 = vcmp.eq.s32.totalorder %v1475_v28, %v4712_v14  ;;  %v979_v49 = vadd.f32 %v6301_v48, %v6300_v42  ;;  %v6304_v2 = vld [vmem:[#allocation27_spill] sm:$0xff]  ;;  %v6309_v52 = vld [vmem:[#allocation28_spill] sm:$0xff] }
 0x1db   : > { %vm1667_vm6 = vcmp.eq.s32.totalorder %v1499_v36, %v4712_v14  ;;  %v1723_v61 = vsel %vm1659_vm5, 0.6931472, %v6288_v59  ;;  %v980_v27 = vadd.f32 %v6304_v2, %v6303_v29  ;;  %v6306_v36 = vsub.f32 %v4826_v26, %v4838_v63 }
 0x1dc   : > { %6299 = vst [vmem:[#allocation46_spill] sm:$0xff] %v4968_v37  ;;  %v4974_v58 = vmul.f32 %v1793_v50, %v1793_v50  ;;  %v1731_v17 = vsel %vm1667_vm6, 0.6931472, %v6288_v59  ;;  %v1787_v28 = vsub.f32 %v6305_v44, %v1723_v61  ;;  %v3332_v50 = vpop.eup %3331  ;;  %3345 = vlog2.f32 %v6303_v29 }
 0x1dd   : > { %v1795_v48 = vsub.f32 %v6306_v36, %v1731_v17  ;;  %v1478_v42 = vpop.permute.xlu1 %1477  ;;  %v3334_v2 = vpop.eup %3333  ;;  %3347 = vlog2.f32 %v979_v49  ;;  %v981_v61 = vadd.f32 %v6309_v52, %v6308_v16  ;;  %v6311_v49 = vsub.f32 %v4846_v57, %v4850_v55  ;;  %v6313_v36 = vld [vmem:[#allocation29_spill] sm:$0xff] }
 0x1de   : > { %6302 = vst [vmem:[#allocation22_spill] sm:$0xff] %v4974_v58  ;;  %v1505_v39 = vpop.permute.xlu0 %1504  ;;  %v4992_v58 = vmul.f32 0.6931472, %v3324_v31  ;;  %v4994_v37 = vmul.f32 %v1787_v28, %v1787_v28  ;;  %vm1660_vm7 = vcmp.eq.s32.totalorder %v1478_v42, %v4712_v14  ;;  %v3336_v31 = vpop.eup %3335  ;;  %3349 = vlog2.f32 %v980_v27  ;;  %v6312_v28 = vld [vmem:[#allocation53_spill] sm:$0xff] }
 0x1df   : > { %v4996_v13 = vmul.f32 %v1795_v48, %v1795_v48  ;;  %vm1669_vm8 = vcmp.eq.s32.totalorder %v1505_v39, %v4712_v14  ;;  %v1724_v10 = vsel %vm1660_vm7, 0.6931472, %v6288_v59  ;;  %v6310_v39 = vsub.f32 %v4754_v9, %v4750_v56  ;;  %v3338_v44 = vpop.eup %3337 }
 0x1e0   : > { %v1733_v26 = vsel %vm1669_vm8, 0.6931472, %v6288_v59  ;;  %3351 = vlog2.f32 %v6308_v16  ;;  %v982_v48 = vadd.f32 %v6313_v36, %v6312_v28  ;;  %v5022_v52 = vmul.f32 0.6931472, %v3332_v50 }
 0x1e1   : > { %6307 = vst [vmem:[#allocation47_spill] sm:$0xff] %v4996_v13  ;;  %v1788_v17 = vsub.f32 %v6310_v39, %v1724_v10  ;;  %v1797_v29 = vsub.f32 %v6311_v49, %v1733_v26  ;;  %v1481_v42 = vpop.permute.xlu1 %1480  ;;  %v3340_v13 = vpop.eup %3339  ;;  %v5030_v55 = vmul.f32 0.6931472, %v3330_v1  ;;  %3353 = vlog2.f32 %v6312_v28 }
 0x1e2   : > { %v1511_v63 = vpop.permute.xlu0 %1510  ;;  %vm1661_vm9 = vcmp.eq.s32.totalorder %v1481_v42, %v4712_v14  ;;  %v3342_v57 = vpop.eup %3341  ;;  %3355 = vlog2.f32 %v981_v61  ;;  %v6314_v50 = vsub.f32 %v4778_v38, %v4763_v15  ;;  %v6315_v39 = vsub.f32 %v4862_v54, %v4871_v5 }
 0x1e3   : > { %v5024_v56 = vmul.f32 %v1788_v17, %v1788_v17  ;;  %v5026_v9 = vmul.f32 %v1797_v29, %v1797_v29  ;;  %vm1671_vm10 = vcmp.eq.s32.totalorder %v1511_v63, %v4712_v14  ;;  %v1725_v10 = vsel %vm1661_vm9, 0.6931472, %v6288_v59  ;;  %v3344_v36 = vpop.eup %3343 }
 0x1e4   : > { %v1735_v26 = vsel %vm1671_vm10, 0.6931472, %v6288_v59  ;;  %v1789_v16 = vsub.f32 %v6314_v50, %v1725_v10  ;;  %v5043_v1 = vmul.f32 0.6931472, %v3334_v2  ;;  %v5045_v49 = vmul.f32 0.6931472, %v3336_v31 }
 0x1e5   : > { %v1799_v17 = vsub.f32 %v6315_v39, %v1735_v26  ;;  %3357 = vlog2.f32 %v982_v48  ;;  %v1484_v29 = vpop.permute.xlu1 %1483  ;;  %v5055_v5 = vmul.f32 0.6931472, %v3338_v44  ;;  %v6316_v2 = vld [vmem:[#allocation30_spill] sm:$0xff]  ;;  %v6318_v26 = vld [vmem:[#allocation31_spill] sm:$0xff]  ;;  %v6320_v44 = vsub.f32 %v4882_v62, %v4890_v22 }
 0x1e6   : > { %v1517_v28 = vpop.permute.xlu0 %1516  ;;  %v5049_v15 = vmul.f32 %v1789_v16, %v1789_v16  ;;  %vm1662_vm11 = vcmp.eq.s32.totalorder %v1484_v29, %v4712_v14  ;;  %v3346_v54 = vpop.eup %3345  ;;  %v983_v31 = vadd.f32 %v6316_v2, %v4525_v7  ;;  %3359 = vlog2.f32 %v4525_v7  ;;  %v6317_v10 = vld [vmem:[#allocation54_spill] sm:$0xff] }
 0x1e7   : > { %v5051_v38 = vmul.f32 %v1799_v17, %v1799_v17  ;;  %vm1673_vm12 = vcmp.eq.s32.totalorder %v1517_v28, %v4712_v14  ;;  %v1726_v48 = vsel %vm1662_vm11, 0.6931472, %v6288_v59  ;;  %v984_v50 = vadd.f32 %v6318_v26, %v6317_v10  ;;  %v3348_v29 = vpop.eup %3347 }
 0x1e8   : > { %v1737_v42 = vsel %vm1673_vm12, 0.6931472, %v6288_v59  ;;  %v6319_v16 = vsub.f32 %v4781_v20, %v4774_v23  ;;  %v5070_v28 = vmul.f32 0.6931472, %v3342_v57  ;;  %3361 = vlog2.f32 %v6317_v10  ;;  %v3350_v26 = vpop.eup %3349  ;;  %v6322_v57 = vld [vmem:[#allocation32_spill] sm:$0xff] }
 0x1e9   : > { %v1801_v17 = vsub.f32 %v6320_v44, %v1737_v42  ;;  %v1487_v2 = vpop.permute.xlu1 %1486  ;;  %v5073_v61 = vmul.f32 0.6931472, %v3340_v13  ;;  %v5083_v20 = vmul.f32 0.6931472, %v3344_v36  ;;  %3363 = vlog2.f32 %v983_v31  ;;  %v6325_v36 = vld [vmem:[#allocation55_spill] sm:$0xff]  ;;  %v6326_v31 = vld [vmem:[#allocation33_spill] sm:$0xff] }
 0x1ea   : > { %v1790_v39 = vsub.f32 %v6319_v16, %v1726_v48  ;;  %v1523_v63 = vpop.permute.xlu0 %1522  ;;  %vm1663_vm13 = vcmp.eq.s32.totalorder %v1487_v2, %v4712_v14  ;;  %v3352_v22 = vpop.eup %3351  ;;  %3365 = vlog2.f32 %v984_v50  ;;  %v985_v48 = vadd.f32 %v6322_v57, %v4530_v21 }
 0x1eb   : > { %v5079_v23 = vmul.f32 %v1801_v17, %v1801_v17  ;;  %vm1675_vm14 = vcmp.eq.s32.totalorder %v1523_v63, %v4712_v14  ;;  %v1727_v62 = vsel %vm1663_vm13, 0.6931472, %v6288_v59  ;;  %v6323_v42 = vsub.f32 %v4790_v25, %v4784_v19 }
 0x1ec   : > { %v5077_v27 = vmul.f32 %v1790_v39, %v1790_v39  ;;  %v1739_v13 = vsel %vm1675_vm14, 0.6931472, %v6288_v59  ;;  %v6324_v16 = vsub.f32 %v4910_v41, %v4896_v60  ;;  %v3354_v39 = vpop.eup %3353  ;;  %3367 = vlog2.f32 %v4530_v21 }
 0x1ed   : > { %6321 = vst [vmem:[#allocation23_spill] sm:$0xff] %v5079_v23  ;;  %v1791_v10 = vsub.f32 %v6323_v42, %v1727_v62  ;;  %v986_v44 = vadd.f32 %v6326_v31, %v6325_v36  ;;  %v1490_v17 = vpop.permute.xlu1 %1489  ;;  %v5100_v57 = vmul.f32 0.6931472, %v3348_v29  ;;  %v3356_v7 = vpop.eup %3355  ;;  %v5108_v60 = vmul.f32 0.6931472, %v3346_v54 }
 0x1ee   : > { %v1803_v63 = vsub.f32 %v6324_v16, %v1739_v13  ;;  %v1529_v2 = vpop.permute.xlu0 %1528  ;;  %vm1664_vm15 = vcmp.eq.s32.totalorder %v1490_v17, %v4712_v14  ;;  %3369 = vlog2.f32 %v6325_v36  ;;  %v6328_v29 = vsub.f32 %v4798_v46, %v4793_v8 }
 0x1ef   : > { %v5102_v19 = vmul.f32 %v1791_v10, %v1791_v10  ;;  %vm1677_vm1 = vcmp.eq.s32.totalorder %v1529_v2, %v4712_v14  ;;  %v3358_v21 = vpop.eup %3357  ;;  %v1728_v41 = vsel %vm1664_vm15, 0.6931472, %v6288_v59  ;;  %3371 = vlog2.f32 %v985_v48 }
 0x1f0   : > { %v5104_v25 = vmul.f32 %v1803_v63, %v1803_v63  ;;  %v1741_v62 = vsel %vm1677_vm1, 0.6931472, %v6288_v59  ;;  %v1792_v13 = vsub.f32 %v6328_v29, %v1728_v41  ;;  %v6329_v42 = vsub.f32 %v4938_v43, %v4918_v24  ;;  %v3360_v17 = vpop.eup %3359  ;;  %v6332_v41 = vld [vmem:[#allocation56_spill] sm:$0xff] }
 0x1f1   : > { %v5121_v54 = vmul.f32 0.6931472, %v3350_v26  ;;  %v5123_v63 = vmul.f32 0.6931472, %v3352_v22  ;;  %3373 = vlog2.f32 %v986_v44  ;;  %v1496_v36 = vpop.permute.xlu1 %1495  ;;  %v5133_v43 = vmul.f32 0.6931472, %v3354_v39 }
 0x1f2   : > { %6327 = vst [vmem:[#allocation48_spill] sm:$0xff] %v5104_v25  ;;  %v1805_v10 = vsub.f32 %v6329_v42, %v1741_v62  ;;  %v1535_v31 = vpop.permute.xlu0 %1534  ;;  %v5127_v8 = vmul.f32 %v1792_v13, %v1792_v13  ;;  %vm1666_vm2 = vcmp.eq.s32.totalorder %v1496_v36, %v4712_v14  ;;  %v3362_v24 = vpop.eup %3361  ;;  %v6331_v26 = vld [vmem:[#allocation34_spill] sm:$0xff]  ;;  %3375 = vlog2.f32 %v4540_v53  ;;  %v6333_v62 = vld [vmem:[#allocation35_spill] sm:$0xff] }
 0x1f3   : > { %vm1679_vm3 = vcmp.eq.s32.totalorder %v1535_v31, %v4712_v14  ;;  %v987_v22 = vadd.f32 %v6331_v26, %v4540_v53  ;;  %v1730_v44 = vsel %vm1666_vm2, 0.6931472, %v6288_v59  ;;  %v988_v29 = vadd.f32 %v6333_v62, %v6332_v41  ;;  %v3364_v36 = vpop.eup %3363 }
 0x1f4   : > { %v5129_v46 = vmul.f32 %v1805_v10, %v1805_v10  ;;  %v1743_v2 = vsel %vm1679_vm3, 0.6931472, %v6288_v59  ;;  %v6334_v13 = vsub.f32 %v4811_v35, %v4801_v4  ;;  %v6335_v39 = vsub.f32 %v4992_v58, %v4957_v11  ;;  %v3366_v62 = vpop.eup %3365 }
 0x1f5   : > { %v5148_v31 = vmul.f32 0.6931472, %v3358_v21  ;;  %3377 = vlog2.f32 %v6332_v41  ;;  %v1502_v26 = vpop.permute.xlu1 %1501  ;;  %v5151_v48 = vmul.f32 0.6931472, %v3356_v7  ;;  %v5161_v11 = vmul.f32 0.6931472, %v3360_v17 }
 0x1f6   : > { %6330 = vst [vmem:[#allocation24_spill] sm:$0xff] %v5129_v46  ;;  %v1794_v42 = vsub.f32 %v6334_v13, %v1730_v44  ;;  %v1807_v10 = vsub.f32 %v6335_v39, %v1743_v2  ;;  %v1541_v16 = vpop.permute.xlu0 %1540  ;;  %vm1668_vm4 = vcmp.eq.s32.totalorder %v1502_v26, %v4712_v14  ;;  %v3368_v35 = vpop.eup %3367  ;;  %3379 = vlog2.f32 %v987_v22  ;;  %v6337_v21 = vld [vmem:[#allocation36_spill] sm:$0xff]  ;;  %v6340_v17 = vld [vmem:[#allocation37_spill] sm:$0xff] }
 0x1f7   : > { %vm1681_vm5 = vcmp.eq.s32.totalorder %v1541_v16, %v4712_v14  ;;  %v1732_v58 = vsel %vm1668_vm4, 0.6931472, %v6288_v59  ;;  %3381 = vlog2.f32 %v988_v29  ;;  %v989_v44 = vadd.f32 %v6337_v21, %v4551_v18 }
 0x1f8   : > { %v5155_v50 = vmul.f32 %v1794_v42, %v1794_v42  ;;  %v5157_v4 = vmul.f32 %v1807_v10, %v1807_v10  ;;  %v1745_v7 = vsel %vm1681_vm5, 0.6931472, %v6288_v59  ;;  %v6338_v2 = vsub.f32 %v4835_v12, %v4831_v6  ;;  %v3370_v42 = vpop.eup %3369 }
 0x1f9   : > { %v6339_v13 = vsub.f32 %v5022_v52, %v4989_v30  ;;  %3383 = vlog2.f32 %v4551_v18  ;;  %v990_v22 = vadd.f32 %v6340_v17, %v4553_v33  ;;  %v1508_v39 = vpop.permute.xlu1 %1507  ;;  %v1301_v29 = vsub.f32 %v5151_v48, %v5123_v63  ;;  %v3372_v21 = vpop.eup %3371  ;;  %v6342_v48 = vld [vmem:[#allocation79_spill] sm:$0xff] }
 0x1fa   : > { %6336 = vst [vmem:[#allocation49_spill] sm:$0xff] %v5157_v4  ;;  %v1796_v41 = vsub.f32 %v6338_v2, %v1732_v58  ;;  %v1547_v10 = vpop.permute.xlu0 %1546  ;;  %v5178_v26 = vmul.f32 0.6931472, %v3364_v36  ;;  %vm1670_vm6 = vcmp.eq.s32.totalorder %v1508_v39, %v4712_v14  ;;  %v5186_v30 = vmul.f32 0.6931472, %v3362_v24  ;;  %v6343_v36 = vld [vmem:[#allocation78_spill] sm:$0xff] }
 0x1fb   : > { %v1809_v16 = vsub.f32 %v6339_v13, %v1745_v7  ;;  %vm1683_vm7 = vcmp.eq.s32.totalorder %v1547_v10, %v4712_v14  ;;  %v3374_v18 = vpop.eup %3373  ;;  %3385 = vlog2.f32 %v4553_v33  ;;  %v1734_v52 = vsel %vm1670_vm6, 0.6931472, %v6288_v59 }
 0x1fc   : > { %v5180_v6 = vmul.f32 %v1796_v41, %v1796_v41  ;;  %v1747_v63 = vsel %vm1683_vm7, 0.6931472, %v6288_v59  ;;  %3387 = vlog2.f32 %v989_v44  ;;  %v6344_v58 = vsub.f32 %v6342_v48, %v6343_v36  ;;  %v3376_v39 = vpop.eup %3375 }
 0x1fd   : > { %v5182_v12 = vmul.f32 %v1809_v16, %v1809_v16  ;;  %v6345_v2 = vsub.f32 %v5073_v61, %v5045_v49  ;;  %v5199_v24 = vmul.f32 0.6931472, %v3366_v62  ;;  %v5201_v16 = vmul.f32 0.6931472, %v3368_v35  ;;  %v1514_v33 = vpop.permute.xlu1 %1513  ;;  %v6347_v62 = vld [vmem:[#allocation57_spill] sm:$0xff]  ;;  %v6348_v35 = vld [vmem:[#allocation38_spill] sm:$0xff] }
 0x1fe   : > { %v1798_v7 = vsub.f32 %v6344_v58, %v1734_v52  ;;  %3389 = vlog2.f32 %v990_v22  ;;  %v1553_v17 = vpop.permute.xlu0 %1552  ;;  %v1303_v44 = vsub.f32 %v5178_v26, %v5161_v11  ;;  %vm1672_vm8 = vcmp.eq.s32.totalorder %v1514_v33, %v4712_v14  ;;  %v6349_v11 = vld [vmem:[#allocation58_spill] sm:$0xff]  ;;  %v6351_v58 = vld [vmem:[#allocation80_spill] sm:$0xff] }
 0x1ff   : > { %6341 = vst [vmem:[#allocation25_spill] sm:$0xff] %v5182_v12  ;;  %v1811_v41 = vsub.f32 %v6345_v2, %v1747_v63  ;;  %vm1685_vm9 = vcmp.eq.s32.totalorder %v1553_v17, %v4712_v14  ;;  %v3378_v49 = vpop.eup %3377  ;;  %v5211_v61 = vmul.f32 0.6931472, %v3370_v42  ;;  %v991_v22 = vadd.f32 %v6348_v35, %v6347_v62  ;;  %v6350_v26 = vld [vmem:[#allocation6_spill] sm:$0xff] }
 0x200   : > { %v5205_v10 = vmul.f32 %v1798_v7, %v1798_v7  ;;  %v1736_v63 = vsel %vm1672_vm8, 0.6931472, %v6288_v59  ;;  %v1749_v48 = vsel %vm1685_vm9, 0.6931472, %v6288_v59  ;;  %3391 = vlog2.f32 %v6347_v62  ;;  %v6352_v7 = vld [vmem:[#allocation21_spill] sm:$0xff]  ;;  %v3380_v17 = vpop.eup %3379 }
 0x201   : > { %v5207_v52 = vmul.f32 %v1811_v41, %v1811_v41  ;;  %v992_v36 = vadd.f32 %v6350_v26, %v6349_v11  ;;  %v6353_v2 = vsub.f32 %v6351_v58, %v6352_v7  ;;  %v6354_v42 = vsub.f32 %v5100_v57, %v5083_v20  ;;  %v1520_v35 = vpop.permute.xlu1 %1519  ;;  %v3382_v26 = vpop.eup %3381  ;;  %v6358_v7 = vld [vmem:[#allocation84_spill] sm:$0xff] }
 0x202   : > { %v5226_v13 = vmul.f32 0.6931472, %v3374_v18  ;;  %3393 = vlog2.f32 %v6349_v11  ;;  %v1559_v53 = vpop.permute.xlu0 %1558  ;;  %vm1674_vm10 = vcmp.eq.s32.totalorder %v1520_v35, %v4712_v14  ;;  %v5237_v57 = vmul.f32 0.6931472, %v3376_v39  ;;  %v6362_v39 = vld [vmem:[#allocation7_spill] sm:$0xff] }
 0x203   : > { %6346 = vst [vmem:[#allocation50_spill] sm:$0xff] %v5207_v52  ;;  %v1800_v41 = vsub.f32 %v6353_v2, %v1736_v63  ;;  %v1813_v33 = vsub.f32 %v6354_v42, %v1749_v48  ;;  %v1085_v52 = vmul.f32 0.6931472, %v3372_v21  ;;  %vm1687_vm11 = vcmp.eq.s32.totalorder %v1559_v53, %v4712_v14  ;;  %v3384_v20 = vpop.eup %3383  ;;  %v6356_v63 = vld [vmem:[#allocation59_spill] sm:$0xff]  ;;  %v6361_v53 = vld [vmem:[#allocation60_spill] sm:$0xff] }
 0x204   : > { %3395 = vlog2.f32 %v991_v22  ;;  %v1738_v18 = vsel %vm1674_vm10, 0.6931472, %v6288_v59  ;;  %v1751_v21 = vsel %vm1687_vm11, 0.6931472, %v6288_v59  ;;  %v6357_v48 = vld [vmem:[#allocation39_spill] sm:$0xff]  ;;  %v994_v22 = vadd.f32 %v6362_v39, %v6361_v53 }
 0x205   : > { %v5231_v12 = vmul.f32 %v1800_v41, %v1800_v41  ;;  %v5233_v58 = vmul.f32 %v1813_v33, %v1813_v33  ;;  %3397 = vlog2.f32 %v992_v36  ;;  %v993_v11 = vadd.f32 %v6357_v48, %v6356_v63  ;;  %v6359_v2 = vld [vmem:[#allocation83_spill] sm:$0xff]  ;;  %v3386_v35 = vpop.eup %3385 }
 0x206   : > { %v6360_v41 = vsub.f32 %v6358_v7, %v6359_v2  ;;  %v1815_v33 = vsub.f32 %v1301_v29, %v1751_v21  ;;  %v5246_v62 = vmul.f32 0.6931472, %v3378_v49  ;;  %3399 = vlog2.f32 %v6356_v63  ;;  %v1565_v4 = vpop.permute.xlu0 %1564  ;;  %v3388_v46 = vpop.eup %3387  ;;  %v6365_v63 = vld [vmem:[#allocation61_spill] sm:$0xff] }
 0x207   : > { %6355 = vst [vmem:[#allocation26_spill] sm:$0xff] %v5233_v58  ;;  %v1526_v58 = vpop.permute.xlu1 %1525  ;;  %v1305_v36 = vsub.f32 %v1085_v52, %v5201_v16  ;;  %vm1689_vm13 = vcmp.eq.s32.totalorder %v1565_v4, %v4712_v14  ;;  %v1089_v49 = vmul.f32 0.6931472, %v3380_v17  ;;  %3401 = vlog2.f32 %v6361_v53  ;;  %v6366_v16 = vld [vmem:[#allocation8_spill] sm:$0xff] }
 0x208   : > { %v1802_v42 = vsub.f32 %v6360_v41, %v1738_v18  ;;  %v5254_v48 = vmul.f32 %v1815_v33, %v1815_v33  ;;  %vm1676_vm12 = vcmp.eq.s32.totalorder %v1526_v58, %v4712_v14  ;;  %v3390_v29 = vpop.eup %3389  ;;  %v1753_v21 = vsel %vm1689_vm13, 0.6931472, %v6288_v59 }
 0x209   : > { %v1740_v18 = vsel %vm1676_vm12, 0.6931472, %v6288_v59  ;;  %3403 = vlog2.f32 %v993_v11  ;;  %v995_v52 = vadd.f32 %v6366_v16, %v6365_v63  ;;  %v6367_v7 = vsub.f32 %v4916_v47, %v4903_v40 }
 0x20a   : > { %v5252_v25 = vmul.f32 %v1802_v42, %v1802_v42  ;;  %6364 = vst [vmem:[#allocation27_spill] sm:$0xff] %v5254_v48  ;;  %v1817_v41 = vsub.f32 %v1303_v44, %v1753_v21  ;;  %v5266_v58 = vmul.f32 0.6931472, %v3382_v26  ;;  %v1221_v4 = vmul.f32 0.6931472, %v3384_v20  ;;  %v1571_v42 = vpop.permute.xlu0 %1570  ;;  %v3392_v53 = vpop.eup %3391  ;;  %v6370_v20 = vld [vmem:[#allocation63_spill] sm:$0xff] }
 0x20b   : > { %v1804_v2 = vsub.f32 %v6367_v7, %v1740_v18  ;;  %3405 = vlog2.f32 %v994_v22  ;;  %v1532_v17 = vpop.permute.xlu1 %1531  ;;  %vm1691_vm15 = vcmp.eq.s32.totalorder %v1571_v42, %v4712_v14  ;;  %v1307_v26 = vsub.f32 %v1089_v49, %v5237_v57  ;;  %v6371_v22 = vld [vmem:[#allocation10_spill] sm:$0xff]  ;;  %v6374_v42 = vld [vmem:[#allocation9_spill] sm:$0xff] }
 0x20c   : > { %6363 = vst [vmem:[#allocation51_spill] sm:$0xff] %v5252_v25  ;;  %v5272_v11 = vmul.f32 %v1817_v41, %v1817_v41  ;;  %vm1678_vm14 = vcmp.eq.s32.totalorder %v1532_v17, %v4712_v14  ;;  %v3394_v40 = vpop.eup %3393  ;;  %3407 = vlog2.f32 %v6365_v63  ;;  %v1755_v44 = vsel %vm1691_vm15, 0.6931472, %v6288_v59  ;;  %v6373_v63 = vld [vmem:[#allocation62_spill] sm:$0xff] }
 0x20d   : > { %v5270_v39 = vmul.f32 %v1804_v2, %v1804_v2  ;;  %v1742_v47 = vsel %vm1678_vm14, 0.6931472, %v6288_v59  ;;  %3409 = vlog2.f32 %v995_v52  ;;  %v997_v18 = vadd.f32 %v6371_v22, %v6370_v20 }
 0x20e   : > { %6369 = vst [vmem:[#allocation28_spill] sm:$0xff] %v5272_v11  ;;  %v6372_v21 = vsub.f32 %v4955_v45, %v4930_v3  ;;  %v1819_v7 = vsub.f32 %v1305_v36, %v1755_v44  ;;  %v3396_v2 = vpop.eup %3395  ;;  %v1093_v41 = vmul.f32 0.6931472, %v3388_v46  ;;  %v5285_v17 = vmul.f32 0.6931472, %v3386_v35  ;;  %v1577_v57 = vpop.permute.xlu0 %1576  ;;  %v6378_v44 = vld [vmem:[#allocation12_spill] sm:$0xff] }
 0x20f   : > { %6368 = vst [vmem:[#allocation52_spill] sm:$0xff] %v5270_v39  ;;  %v996_v33 = vadd.f32 %v6374_v42, %v6373_v63  ;;  %3411 = vlog2.f32 %v6373_v63  ;;  %v1538_v11 = vpop.permute.xlu1 %1537  ;;  %v3398_v49 = vpop.eup %3397  ;;  %vm1693_vm2 = vcmp.eq.s32.totalorder %v1577_v57, %v4712_v14  ;;  %v5296_v45 = vmul.f32 0.6931472, %v3390_v29 }
 0x210   : > { %v1806_v16 = vsub.f32 %v6372_v21, %v1742_v47  ;;  %v5292_v22 = vmul.f32 %v1819_v7, %v1819_v7  ;;  %vm1680_vm1 = vcmp.eq.s32.totalorder %v1538_v11, %v4712_v14  ;;  %v3400_v3 = vpop.eup %3399  ;;  %v1757_v35 = vsel %vm1693_vm2, 0.6931472, %v6288_v59  ;;  %v6377_v47 = vld [vmem:[#allocation65_spill] sm:$0xff] }
 0x211   : > { %v1744_v46 = vsel %vm1680_vm1, 0.6931472, %v6288_v59  ;;  %3413 = vlog2.f32 %v997_v18  ;;  %v999_v21 = vadd.f32 %v6378_v44, %v6377_v47  ;;  %v1821_v7 = vsub.f32 %v1307_v26, %v1757_v35  ;;  %v3402_v63 = vpop.eup %3401 }
 0x212   : > { %v5290_v52 = vmul.f32 %v1806_v16, %v1806_v16  ;;  %6376 = vst [vmem:[#allocation29_spill] sm:$0xff] %v5292_v22  ;;  %v6379_v16 = vsub.f32 %v4987_v34, %v4966_v0  ;;  %v1097_v42 = vmul.f32 0.6931472, %v3396_v2  ;;  %v1225_v29 = vmul.f32 0.6931472, %v3392_v53  ;;  %v1583_v48 = vpop.permute.xlu0 %1582 }
 0x213   : > { %3415 = vlog2.f32 %v6370_v20  ;;  %v1544_v57 = vpop.permute.xlu1 %1543  ;;  %v1309_v22 = vsub.f32 %v1093_v41, %v1221_v4  ;;  %v5310_v18 = vmul.f32 %v1821_v7, %v1821_v7  ;;  %vm1695_vm4 = vcmp.eq.s32.totalorder %v1583_v48, %v4712_v14  ;;  %v6381_v4 = vld [vmem:[#allocation67_spill] sm:$0xff]  ;;  %v6382_v20 = vld [vmem:[#allocation14_spill] sm:$0xff] }
 0x214   : > { %6375 = vst [vmem:[#allocation53_spill] sm:$0xff] %v5290_v52  ;;  %v1808_v11 = vsub.f32 %v6379_v16, %v1744_v46  ;;  %v3404_v52 = vpop.eup %3403  ;;  %vm1682_vm3 = vcmp.eq.s32.totalorder %v1544_v57, %v4712_v14  ;;  %v5316_v0 = vmul.f32 0.6931472, %v3394_v40  ;;  %3417 = vlog2.f32 %v996_v33  ;;  %v6384_v16 = vld [vmem:[#allocation64_spill] sm:$0xff] }
 0x215   : > { %6380 = vst [vmem:[#allocation30_spill] sm:$0xff] %v5310_v18  ;;  %v5314_v34 = vpop.eup %3405  ;;  %v1746_v53 = vsel %vm1682_vm3, 0.6931472, %v6288_v59  ;;  %v1759_v26 = vsel %vm1695_vm4, 0.6931472, %v6288_v59  ;;  %3419 = vlog2.f32 %v999_v21  ;;  %v1001_v2 = vadd.f32 %v6382_v20, %v6381_v4 }
 0x216   : > { %v5308_v39 = vmul.f32 %v1808_v11, %v1808_v11  ;;  %v6383_v41 = vsub.f32 %v5043_v1, %v5030_v55  ;;  %v1823_v35 = vsub.f32 %v1309_v22, %v1759_v26  ;;  %v3408_v44 = vpop.eup %3407  ;;  %v1101_v48 = vmul.f32 0.6931472, %v3404_v52  ;;  %v6385_v11 = vld [vmem:[#allocation11_spill] sm:$0xff]  ;;  %v1589_v57 = vpop.permute.xlu0 %1588 }
 0x217   : > { %v998_v40 = vadd.f32 %v6385_v11, %v6384_v16  ;;  %3421 = vlog2.f32 %v6377_v47  ;;  %v1550_v33 = vpop.permute.xlu1 %1549  ;;  %v1311_v7 = vsub.f32 %v1097_v42, %v1225_v29  ;;  %v3410_v36 = vpop.eup %3409  ;;  %vm1697_vm6 = vcmp.eq.s32.totalorder %v1589_v57, %v4712_v14  ;;  %v6386_v47 = vld [vmem:[#allocation69_spill] sm:$0xff]  ;;  %v6387_v42 = vld [vmem:[#allocation16_spill] sm:$0xff] }
 0x218   : > { %v1810_v46 = vsub.f32 %v6383_v41, %v1746_v53  ;;  %v5330_v18 = vmul.f32 %v1823_v35, %v1823_v35  ;;  %vm1684_vm5 = vcmp.eq.s32.totalorder %v1550_v33, %v4712_v14  ;;  %v1229_v1 = vmul.f32 0.6931472, %v3400_v3 }
 0x219   : > { %v5334_v55 = vpop.eup %3411  ;;  %3423 = vlog2.f32 %v6384_v16  ;;  %v1748_v52 = vsel %vm1684_vm5, 0.6931472, %v6288_v59  ;;  %v1761_v22 = vsel %vm1697_vm6, 0.6931472, %v6288_v59  ;;  %v1003_v29 = vadd.f32 %v6387_v42, %v6386_v47 }
 0x21a   : > { %v5328_v21 = vmul.f32 %v1810_v46, %v1810_v46  ;;  %3425 = vlog2.f32 %v1001_v2  ;;  %v6388_v53 = vsub.f32 %v5070_v28, %v5055_v5  ;;  %v1825_v20 = vsub.f32 %v1311_v7, %v1761_v22  ;;  %v1595_v16 = vpop.permute.xlu0 %1594  ;;  %v6390_v7 = vld [vmem:[#allocation18_spill] sm:$0xff] }
 0x21b   : > { %v5344_v41 = vmul.f32 0.6931472, %v3398_v49  ;;  %v1105_v46 = vmul.f32 0.6931472, %v3410_v36  ;;  %3427 = vlog2.f32 %v6381_v4  ;;  %v1556_v3 = vpop.permute.xlu1 %1555  ;;  %v1313_v35 = vsub.f32 %v1101_v48, %v1229_v1  ;;  %v3414_v11 = vpop.eup %3413  ;;  %v6389_v48 = vld [vmem:[#allocation71_spill] sm:$0xff] }
 0x21c   : > { %v1812_v26 = vsub.f32 %v6388_v53, %v1748_v52  ;;  %v5349_v2 = vmul.f32 %v1825_v20, %v1825_v20  ;;  %vm1686_vm7 = vcmp.eq.s32.totalorder %v1556_v3, %v4712_v14  ;;  %vm1699_vm8 = vcmp.eq.s32.totalorder %v1595_v16, %v4712_v14 }
 0x21d   : > { %v3416_v5 = vpop.eup %3415  ;;  %v1233_v28 = vmul.f32 0.6931472, %v3408_v44  ;;  %v1750_v49 = vsel %vm1686_vm7, 0.6931472, %v6288_v59  ;;  %v1763_v36 = vsel %vm1699_vm8, 0.6931472, %v6288_v59  ;;  %3429 = vlog2.f32 %v1003_v29 }
 0x21e   : > { %v5347_v33 = vmul.f32 %v1812_v26, %v1812_v26  ;;  %v1005_v57 = vadd.f32 %v6390_v7, %v6389_v48  ;;  %v6391_v1 = vsub.f32 %v5121_v54, %v5108_v60  ;;  %v1827_v22 = vsub.f32 %v1313_v35, %v1763_v36  ;;  %v5362_v42 = vpop.eup %3417  ;;  %v1601_v3 = vpop.permute.xlu0 %1600 }
 0x21f   : > { %v5364_v53 = vmul.f32 0.6931472, %v3402_v63  ;;  %v1109_v44 = vmul.f32 0.6931472, %v3414_v11  ;;  %3431 = vlog2.f32 %v6386_v47  ;;  %v1562_v26 = vpop.permute.xlu1 %1561  ;;  %v1315_v20 = vsub.f32 %v1105_v46, %v1233_v28  ;;  %v3420_v16 = vpop.eup %3419  ;;  %v6393_v47 = vld [vmem:[#allocation73_spill] sm:$0xff]  ;;  %v6394_v46 = vld [vmem:[#allocation20_spill] sm:$0xff] }
 0x220   : > { %v1814_v52 = vsub.f32 %v6391_v1, %v1750_v49  ;;  %v5369_v4 = vmul.f32 %v1827_v22, %v1827_v22  ;;  %vm1688_vm9 = vcmp.eq.s32.totalorder %v1562_v26, %v4712_v14  ;;  %vm1701_vm10 = vcmp.eq.s32.totalorder %v1601_v3, %v4712_v14  ;;  %v6397_v22 = vld [vmem:[#allocation13_spill] sm:$0xff] }
 0x221   : > { %v3422_v60 = vpop.eup %3421  ;;  %v1237_v54 = vmul.f32 0.6931472, %v3416_v5  ;;  %3433 = vlog2.f32 %v998_v40  ;;  %v1752_v63 = vsel %vm1688_vm9, 0.6931472, %v6288_v59  ;;  %v1765_v35 = vsel %vm1701_vm10, 0.6931472, %v6288_v59 }
 0x222   : > { %v5367_v29 = vmul.f32 %v1814_v52, %v1814_v52  ;;  %6392 = vst [vmem:[#allocation54_spill] sm:$0xff] %v5369_v4  ;;  %3435 = vlog2.f32 %v1005_v57  ;;  %v1007_v11 = vadd.f32 %v6394_v46, %v6393_v47  ;;  %v6395_v28 = vsub.f32 %v5148_v31, %v5133_v43  ;;  %v6396_v52 = vld [vmem:[#allocation66_spill] sm:$0xff]  ;;  %v1607_v3 = vpop.permute.xlu0 %1606 }
 0x223   : > { %v1829_v36 = vsub.f32 %v1315_v20, %v1765_v35  ;;  %v5380_v7 = vpop.eup %3423  ;;  %v1113_v1 = vmul.f32 0.6931472, %v3420_v16  ;;  %v1000_v5 = vadd.f32 %v6397_v22, %v6396_v52  ;;  %3437 = vlog2.f32 %v6389_v48  ;;  %v1568_v40 = vpop.permute.xlu1 %1567  ;;  %v6400_v16 = vld [vmem:[#allocation41_spill] sm:$0xff] }
 0x224   : > { %v1816_v49 = vsub.f32 %v6395_v28, %v1752_v63  ;;  %v1317_v26 = vsub.f32 %v1109_v44, %v1237_v54  ;;  %v3426_v57 = vpop.eup %3425  ;;  %vm1690_vm11 = vcmp.eq.s32.totalorder %v1568_v40, %v4712_v14  ;;  %vm1703_vm12 = vcmp.eq.s32.totalorder %v1607_v3, %v4712_v14  ;;  %v6399_v44 = vld [vmem:[#allocation75_spill] sm:$0xff] }
 0x225   : > { %v5387_v46 = vmul.f32 %v1829_v36, %v1829_v36  ;;  %v3428_v43 = vpop.eup %3427  ;;  %v1241_v31 = vmul.f32 0.6931472, %v3422_v60  ;;  %3439 = vlog2.f32 %v6396_v52  ;;  %v1754_v20 = vsel %vm1690_vm11, 0.6931472, %v6288_v59 }
 0x226   : > { %v5385_v4 = vmul.f32 %v1816_v49, %v1816_v49  ;;  %v1767_v48 = vsel %vm1703_vm12, 0.6931472, %v6288_v59  ;;  %3441 = vlog2.f32 %v1007_v11  ;;  %v1009_v54 = vadd.f32 %v6400_v16, %v6399_v44  ;;  %v1613_v22 = vpop.permute.xlu0 %1612 }
 0x227   : > { %6398 = vst [vmem:[#allocation31_spill] sm:$0xff] %v5387_v46  ;;  %v6401_v63 = vsub.f32 %v5199_v24, %v5186_v30  ;;  %v1831_v28 = vsub.f32 %v1317_v26, %v1767_v48  ;;  %v5400_v49 = vmul.f32 0.6931472, %v5314_v34  ;;  %v1117_v36 = vmul.f32 0.6931472, %v3426_v57  ;;  %v1574_v60 = vpop.permute.xlu1 %1573  ;;  %v3430_v40 = vpop.eup %3429  ;;  %v6404_v57 = vld [vmem:[#allocation43_spill] sm:$0xff] }
 0x228   : > { %3443 = vlog2.f32 %v6393_v47  ;;  %v1319_v52 = vsub.f32 %v1113_v1, %v1241_v31  ;;  %vm1692_vm13 = vcmp.eq.s32.totalorder %v1574_v60, %v4712_v14  ;;  %vm1705_vm14 = vcmp.eq.s32.totalorder %v1613_v22, %v4712_v14  ;;  %v6403_v1 = vld [vmem:[#allocation77_spill] sm:$0xff] }
 0x229   : > { %v1818_v35 = vsub.f32 %v6401_v63, %v1754_v20  ;;  %v5405_v11 = vmul.f32 %v1831_v28, %v1831_v28  ;;  %v3432_v30 = vpop.eup %3431  ;;  %v1245_v24 = vmul.f32 0.6931472, %v3428_v43  ;;  %v1756_v34 = vsel %vm1692_vm13, 0.6931472, %v6288_v59 }
 0x22a   : > { %v1769_v26 = vsel %vm1705_vm14, 0.6931472, %v6288_v59  ;;  %3445 = vlog2.f32 %v1009_v54  ;;  %v1011_v31 = vadd.f32 %v6404_v57, %v6403_v1  ;;  %v6405_v20 = vsub.f32 %v5226_v13, %v5211_v61  ;;  %v1619_v22 = vpop.permute.xlu0 %1618 }
 0x22b   : > { %v5403_v3 = vmul.f32 %v1818_v35, %v1818_v35  ;;  %6402 = vst [vmem:[#allocation32_spill] sm:$0xff] %v5405_v11  ;;  %v1833_v16 = vsub.f32 %v1319_v52, %v1769_v26  ;;  %v3434_v63 = vpop.eup %3433  ;;  %v5419_v35 = vmul.f32 0.6931472, %v5334_v55  ;;  %v1121_v43 = vmul.f32 0.6931472, %v3430_v40  ;;  %v1580_v28 = vpop.permute.xlu1 %1579 }
 0x22c   : > { %v1820_v48 = vsub.f32 %v6405_v20, %v1756_v34  ;;  %3447 = vlog2.f32 %v6399_v44  ;;  %v1321_v60 = vsub.f32 %v1117_v36, %v1245_v24  ;;  %v3436_v47 = vpop.eup %3435  ;;  %vm1694_vm15 = vcmp.eq.s32.totalorder %v1580_v28, %v4712_v14  ;;  %v6407_v44 = vld [vmem:[#allocation82_spill] sm:$0xff]  ;;  %v6408_v36 = vld [vmem:[#allocation45_spill] sm:$0xff]  ;;  %v6410_v20 = vld [vmem:[#allocation68_spill] sm:$0xff] }
 0x22d   : > { %v5424_v11 = vmul.f32 %v1833_v16, %v1833_v16  ;;  %vm1707_vm1 = vcmp.eq.s32.totalorder %v1619_v22, %v4712_v14  ;;  %v3438_v13 = vpop.eup %3437  ;;  %3449 = vlog2.f32 %v1000_v5  ;;  %v1249_v61 = vmul.f32 0.6931472, %v3432_v30 }
 0x22e   : > { %v5422_v54 = vmul.f32 %v1820_v48, %v1820_v48  ;;  %v1758_v55 = vsel %vm1694_vm15, 0.6931472, %v6288_v59  ;;  %v1771_v52 = vsel %vm1707_vm1, 0.6931472, %v6288_v59  ;;  %3451 = vlog2.f32 %v1011_v31  ;;  %v6411_v48 = vld [vmem:[#allocation15_spill] sm:$0xff]  ;;  %v1625_v22 = vpop.permute.xlu0 %1624 }
 0x22f   : > { %6406 = vst [vmem:[#allocation55_spill] sm:$0xff] %v5424_v11  ;;  %v1013_v40 = vadd.f32 %v6408_v36, %v6407_v44  ;;  %v6409_v24 = vsub.f32 %v5266_v58, %v5246_v62  ;;  %v1835_v26 = vsub.f32 %v1321_v60, %v1771_v52  ;;  %v3440_v57 = vpop.eup %3439  ;;  %v1002_v16 = vadd.f32 %v6411_v48, %v6410_v20  ;;  %v1586_v5 = vpop.permute.xlu1 %1585 }
 0x230   : > { %v1125_v28 = vmul.f32 0.6931472, %v3436_v47  ;;  %3453 = vlog2.f32 %v6403_v1  ;;  %v1323_v30 = vsub.f32 %v1121_v43, %v1249_v61  ;;  %v3442_v11 = vpop.eup %3441  ;;  %vm1696_vm2 = vcmp.eq.s32.totalorder %v1586_v5, %v4712_v14 }
 0x231   : > { %v1822_v34 = vsub.f32 %v6409_v24, %v1758_v55  ;;  %v5440_v46 = vmul.f32 %v1835_v26, %v1835_v26  ;;  %vm1709_vm3 = vcmp.eq.s32.totalorder %v1625_v22, %v4712_v14  ;;  %3455 = vlog2.f32 %v6410_v20 }
 0x232   : > { %v3444_v62 = vpop.eup %3443  ;;  %v1253_v58 = vmul.f32 0.6931472, %v3438_v13  ;;  %v1760_v47 = vsel %vm1696_vm2, 0.6931472, %v6288_v59  ;;  %v1773_v1 = vsel %vm1709_vm3, 0.6931472, %v6288_v59  ;;  %3457 = vlog2.f32 %v1013_v40 }
 0x233   : > { %v5438_v31 = vmul.f32 %v1822_v34, %v1822_v34  ;;  %v6412_v43 = vsub.f32 %v5296_v45, %v5285_v17  ;;  %v1837_v61 = vsub.f32 %v1323_v30, %v1773_v1  ;;  %v1314_v55 = vsub.f32 %v5400_v49, %v5364_v53  ;;  %v1592_v24 = vpop.permute.xlu1 %1591  ;;  %v1631_v34 = vpop.permute.xlu0 %1630 }
 0x234   : > { %v1107_v52 = vmul.f32 0.6931472, %v5362_v42  ;;  %v1129_v36 = vmul.f32 0.6931472, %v3442_v11  ;;  %3459 = vlog2.f32 %v6407_v44  ;;  %v1325_v13 = vsub.f32 %v1125_v28, %v1253_v58  ;;  %v3446_v26 = vpop.eup %3445  ;;  %v6413_v11 = vld [vmem:[#allocation70_spill] sm:$0xff]  ;;  %v6414_v44 = vld [vmem:[#allocation17_spill] sm:$0xff] }
 0x235   : > { %v1824_v60 = vsub.f32 %v6412_v43, %v1760_v47  ;;  %v5456_v40 = vmul.f32 %v1837_v61, %v1837_v61  ;;  %vm1698_vm4 = vcmp.eq.s32.totalorder %v1592_v24, %v4712_v14  ;;  %vm1711_vm5 = vcmp.eq.s32.totalorder %v1631_v34, %v4712_v14 }
 0x236   : > { %v3448_v17 = vpop.eup %3447  ;;  %3461 = vlog2.f32 %v1002_v16  ;;  %v1257_v45 = vmul.f32 0.6931472, %v3444_v62  ;;  %v1762_v42 = vsel %vm1698_vm4, 0.6931472, %v6288_v59  ;;  %v1775_v53 = vsel %vm1711_vm5, 0.6931472, %v6288_v59 }
 0x237   : > { %v5454_v20 = vmul.f32 %v1824_v60, %v1824_v60  ;;  %v5463_v49 = vmul.f32 0.6931472, %v5380_v7  ;;  %v1004_v48 = vadd.f32 %v6414_v44, %v6413_v11  ;;  %v6415_v28 = vsub.f32 %v5344_v41, %v5316_v0  ;;  %v3450_v22 = vpop.eup %3449  ;;  %v1598_v62 = vpop.permute.xlu1 %1597 }
 0x238   : > { %v1839_v30 = vsub.f32 %v1325_v13, %v1775_v53  ;;  %v1111_v58 = vmul.f32 0.6931472, %v3434_v63  ;;  %3463 = vlog2.f32 %v6413_v11  ;;  %v1133_v16 = vmul.f32 0.6931472, %v3446_v26  ;;  %v1637_v1 = vpop.permute.xlu0 %1636  ;;  %v3452_v43 = vpop.eup %3451  ;;  %v6417_v13 = vld [vmem:[#allocation19_spill] sm:$0xff] }
 0x239   : > { %v1826_v5 = vsub.f32 %v6415_v28, %v1762_v42  ;;  %v1327_v47 = vsub.f32 %v1129_v36, %v1257_v45  ;;  %vm1700_vm6 = vcmp.eq.s32.totalorder %v1598_v62, %v4712_v14  ;;  %vm1713_vm7 = vcmp.eq.s32.totalorder %v1637_v1, %v4712_v14  ;;  %v6416_v36 = vld [vmem:[#allocation72_spill] sm:$0xff] }
 0x23a   : > { %v5473_v7 = vmul.f32 %v1839_v30, %v1839_v30  ;;  %v3454_v0 = vpop.eup %3453  ;;  %v1261_v41 = vmul.f32 0.6931472, %v3448_v17  ;;  %v1764_v61 = vsel %vm1700_vm6, 0.6931472, %v6288_v59  ;;  %v1777_v63 = vsel %vm1713_vm7, 0.6931472, %v6288_v59 }
 0x23b   : > { %v5471_v60 = vmul.f32 %v1826_v5, %v1826_v5  ;;  %v1316_v24 = vsub.f32 %v1107_v52, %v5419_v35  ;;  %3465 = vlog2.f32 %v1004_v48  ;;  %v1006_v34 = vadd.f32 %v6417_v13, %v6416_v36  ;;  %v3456_v42 = vpop.eup %3455  ;;  %v1604_v44 = vpop.permute.xlu1 %1603 }
 0x23c   : > { %v1828_v26 = vsub.f32 %v1314_v55, %v1764_v61  ;;  %v1841_v45 = vsub.f32 %v1327_v47, %v1777_v63  ;;  %v1243_v53 = vmul.f32 0.6931472, %v3440_v57  ;;  %3467 = vlog2.f32 %v6416_v36  ;;  %v1643_v17 = vpop.permute.xlu0 %1642  ;;  %v3458_v5 = vpop.eup %3457  ;;  %v6418_v61 = vld [vmem:[#allocation74_spill] sm:$0xff]  ;;  %v6419_v63 = vld [vmem:[#allocation40_spill] sm:$0xff] }
 0x23d   : > { %v1137_v11 = vmul.f32 0.6931472, %v3452_v43  ;;  %v1329_v28 = vsub.f32 %v1133_v16, %v1261_v41  ;;  %vm1702_vm8 = vcmp.eq.s32.totalorder %v1604_v44, %v4712_v14  ;;  %vm1715_vm9 = vcmp.eq.s32.totalorder %v1643_v17, %v4712_v14 }
 0x23e   : > { %v5483_v30 = vmul.f32 %v1828_v26, %v1828_v26  ;;  %v5485_v62 = vmul.f32 %v1841_v45, %v1841_v45  ;;  %v3460_v35 = vpop.eup %3459  ;;  %v1265_v55 = vmul.f32 0.6931472, %v3454_v0  ;;  %v1766_v52 = vsel %vm1702_vm8, 0.6931472, %v6288_v59 }
 0x23f   : > { %v1779_v57 = vsel %vm1715_vm9, 0.6931472, %v6288_v59  ;;  %v1318_v48 = vsub.f32 %v1111_v58, %v5463_v49  ;;  %v1115_v47 = vmul.f32 0.6931472, %v3450_v22  ;;  %3469 = vlog2.f32 %v1006_v34  ;;  %v1610_v26 = vpop.permute.xlu1 %1609 }
 0x240   : > { %v1830_v16 = vsub.f32 %v1316_v24, %v1766_v52  ;;  %v1843_v1 = vsub.f32 %v1329_v28, %v1779_v57  ;;  %v3462_v43 = vpop.eup %3461  ;;  %v1247_v41 = vmul.f32 0.6931472, %v3456_v42  ;;  %v1008_v36 = vadd.f32 %v6419_v63, %v6418_v61  ;;  %v1649_v44 = vpop.permute.xlu0 %1648 }
 0x241   : > { %v1141_v13 = vmul.f32 0.6931472, %v3458_v5  ;;  %v1331_v45 = vsub.f32 %v1137_v11, %v1265_v55  ;;  %vm1704_vm10 = vcmp.eq.s32.totalorder %v1610_v26, %v4712_v14  ;;  %vm1717_vm11 = vcmp.eq.s32.totalorder %v1649_v44, %v4712_v14  ;;  %v6420_v5 = vld [vmem:[#allocation76_spill] sm:$0xff]  ;;  %v6421_v55 = vld [vmem:[#allocation42_spill] sm:$0xff] }
 0x242   : > { %v5494_v0 = vmul.f32 %v1830_v16, %v1830_v16  ;;  %v5496_v17 = vmul.f32 %v1843_v1, %v1843_v1  ;;  %v3464_v49 = vpop.eup %3463  ;;  %v1269_v22 = vmul.f32 0.6931472, %v3460_v35  ;;  %v1768_v58 = vsel %vm1704_vm10, 0.6931472, %v6288_v59 }
 0x243   : > { %v1781_v24 = vsel %vm1717_vm11, 0.6931472, %v6288_v59  ;;  %3471 = vlog2.f32 %v6418_v61  ;;  %v1832_v34 = vsub.f32 %v1318_v48, %v1768_v58  ;;  %v1320_v11 = vsub.f32 %v1115_v47, %v1243_v53  ;;  %v1616_v57 = vpop.permute.xlu1 %1615 }
 0x244   : > { %v1845_v42 = vsub.f32 %v1331_v45, %v1781_v24  ;;  %v1119_v28 = vmul.f32 0.6931472, %v3462_v43  ;;  %3473 = vlog2.f32 %v1008_v36  ;;  %v1010_v52 = vadd.f32 %v6421_v55, %v6420_v5  ;;  %v1655_v1 = vpop.permute.xlu0 %1654  ;;  %v6424_v45 = vld [vmem:[#allocation44_spill] sm:$0xff] }
 0x245   : > { %v1333_v16 = vsub.f32 %v1141_v13, %v1269_v22  ;;  %v3466_v63 = vpop.eup %3465  ;;  %v5505_v26 = vmul.f32 %v1832_v34, %v1832_v34  ;;  %vm1706_vm12 = vcmp.eq.s32.totalorder %v1616_v57, %v4712_v14  ;;  %vm1719_vm13 = vcmp.eq.s32.totalorder %v1655_v1, %v4712_v14  ;;  %v6423_v13 = vld [vmem:[#allocation81_spill] sm:$0xff] }
 0x246   : > { %v5507_v35 = vmul.f32 %v1845_v42, %v1845_v42  ;;  %v3468_v48 = vpop.eup %3467  ;;  %v1770_v53 = vsel %vm1706_vm12, 0.6931472, %v6288_v59  ;;  %v1783_v47 = vsel %vm1719_vm13, 0.6931472, %v6288_v59  ;;  %3475 = vlog2.f32 %v6420_v5 }
 0x247   : > { %v1834_v43 = vsub.f32 %v1320_v11, %v1770_v53  ;;  %v1847_v61 = vsub.f32 %v1333_v16, %v1783_v47  ;;  %v1251_v36 = vmul.f32 0.6931472, %v3464_v49  ;;  %3477 = vlog2.f32 %v1010_v52  ;;  %v1622_v22 = vpop.permute.xlu1 %1621 }
 0x248   : > { %6422 = vst [vmem:[#allocation33_spill] sm:$0xff] %v5507_v35  ;;  %v1012_v44 = vadd.f32 %v6424_v45, %v6423_v13  ;;  %v1322_v58 = vsub.f32 %v1119_v28, %v1247_v41  ;;  %v1123_v34 = vmul.f32 0.6931472, %v3466_v63  ;;  %vm1708_vm14 = vcmp.eq.s32.totalorder %v1622_v22, %v4712_v14 }
 0x249   : > { %v3470_v24 = vpop.eup %3469  ;;  %v5516_v42 = vmul.f32 %v1834_v43, %v1834_v43  ;;  %v5518_v55 = vmul.f32 %v1847_v61, %v1847_v61  ;;  %v1772_v57 = vsel %vm1708_vm14, 0.6931472, %v6288_v59  ;;  %3479 = vlog2.f32 %v6423_v13 }
 0x24a   : > { %v1836_v11 = vsub.f32 %v1322_v58, %v1772_v57  ;;  %v1255_v49 = vmul.f32 0.6931472, %v3468_v48  ;;  %3481 = vlog2.f32 %v1012_v44  ;;  %v1127_v16 = vmul.f32 0.6931472, %v3470_v24 }
 0x24b   : > { %6425 = vst [vmem:[#allocation34_spill] sm:$0xff] %v5518_v55  ;;  %v1628_v5 = vpop.permute.xlu1 %1627  ;;  %v1324_v41 = vsub.f32 %v1123_v34, %v1251_v36 }
 0x24c   : > { %v5523_v1 = vmul.f32 %v1836_v11, %v1836_v11  ;;  %vm1710_vm15 = vcmp.eq.s32.totalorder %v1628_v5, %v4712_v14  ;;  %v1326_v48 = vsub.f32 %v1127_v16, %v1255_v49 }
 0x24d   : > { %v3472_v52 = vpop.eup %3471  ;;  %v1774_v63 = vsel %vm1710_vm15, 0.6931472, %v6288_v59 }
 0x24e   : > { %v3474_v28 = vpop.eup %3473  ;;  %v1838_v53 = vsub.f32 %v1324_v41, %v1774_v63  ;;  %v1259_v47 = vmul.f32 0.6931472, %v3472_v52 }
 0x24f   : > { %v1634_v43 = vpop.permute.xlu1 %1633  ;;  %v1131_v45 = vmul.f32 0.6931472, %v3474_v28 }
 0x250   : > { %v3476_v61 = vpop.eup %3475  ;;  %v5527_v13 = vmul.f32 %v1838_v53, %v1838_v53  ;;  %vm1712_vm1 = vcmp.eq.s32.totalorder %v1634_v43, %v4712_v14 }
 0x251   : > { %v3478_v44 = vpop.eup %3477  ;;  %v1776_v22 = vsel %vm1712_vm1, 0.6931472, %v6288_v59  ;;  %v1263_v36 = vmul.f32 0.6931472, %v3476_v61  ;;  %v1328_v5 = vsub.f32 %v1131_v45, %v1259_v47 }
 0x252   : > { %v1840_v58 = vsub.f32 %v1326_v48, %v1776_v22  ;;  %v1135_v57 = vmul.f32 0.6931472, %v3478_v44 }
 0x253   : > { %v1640_v24 = vpop.permute.xlu1 %1639  ;;  %v3480_v34 = vpop.eup %3479 }
 0x254   : > { %v5531_v11 = vmul.f32 %v1840_v58, %v1840_v58  ;;  %vm1714_vm2 = vcmp.eq.s32.totalorder %v1640_v24, %v4712_v14  ;;  %v3482_v52 = vpop.eup %3481  ;;  %v1267_v49 = vmul.f32 0.6931472, %v3480_v34  ;;  %v1330_v43 = vsub.f32 %v1135_v57, %v1263_v36  ;;  %v1917_v36 = vld [vmem:[#allocation2] sm:$0xff] (!%p2872_p13)  ;;  %v1918_v34 = vld [vmem:[#allocation2 + $0x8] sm:$0xff] (!%p2872_p13)  ;;  %v1919_v57 = vld [vmem:[#allocation2 + $0x10] sm:$0xff] (!%p2872_p13) }
 0x255   : > { %v1778_v41 = vsel %vm1714_vm2, 0.6931472, %v6288_v59  ;;  %v1139_v63 = vmul.f32 0.6931472, %v3482_v52  ;;  %v1982_v52 = vadd.f32 (!%p2872_p13), %v1918_v34, %v4941_v51  ;;  %v1927_v34 = vld [vmem:[#allocation2 + $0x50] sm:$0xff] (!%p2872_p13) }
 0x256   : > { %v1842_v28 = vsub.f32 %v1328_v5, %v1778_v41  ;;  %v1981_v5 = vadd.f32 (!%p2872_p13), %v1917_v36, %v4943_v32  ;;  %v6427_v41 = vld [vmem:[#allocation46_spill] sm:$0xff] (!%p2872_p13)  ;;  %v1926_v36 = vld [vmem:[#allocation2 + $0x48] sm:$0xff] (!%p2872_p13) }
 0x257   : > { %v1646_v16 = vpop.permute.xlu1 %1645  ;;  %v1332_v45 = vsub.f32 %v1139_v63, %v1267_v49  ;;  %v1920_v49 = vld [vmem:[#allocation2 + $0x18] sm:$0xff] (!%p2872_p13)  ;;  %2046 = vst.msk [vmem:[#allocation2 + $0x8] sm:$0xff] (!%p2872_p13), %vm244_vm0, %v1982_v52  ;;  %v1991_v52 = vadd.f32 (!%p2872_p13), %v1927_v34, %v5155_v50  ;;  %v1935_v34 = vld [vmem:[#allocation2 + $0x90] sm:$0xff] (!%p2872_p13) }
 0x258   : > { %v5535_v53 = vmul.f32 %v1842_v28, %v1842_v28  ;;  %vm1716_vm3 = vcmp.eq.s32.totalorder %v1646_v16, %v4712_v14  ;;  %v1983_v28 = vadd.f32 (!%p2872_p13), %v1919_v57, %v6427_v41  ;;  %v1922_v16 = vld [vmem:[#allocation2 + $0x28] sm:$0xff] (!%p2872_p13)  ;;  %2045 = vst.msk [vmem:[#allocation2] sm:$0xff] (!%p2872_p13), %vm244_vm0, %v1981_v5  ;;  %v1928_v57 = vld [vmem:[#allocation2 + $0x58] sm:$0xff] (!%p2872_p13)  ;;  %v6428_v5 = vld [vmem:[#allocation22_spill] sm:$0xff] (!%p2872_p13) }
 0x259   : > { %v1780_v61 = vsel %vm1716_vm3, 0.6931472, %v6288_v59  ;;  %v1990_v41 = vadd.f32 (!%p2872_p13), %v1926_v36, %v6428_v5  ;;  %v1934_v36 = vld [vmem:[#allocation2 + $0x88] sm:$0xff] (!%p2872_p13)  ;;  %2055 = vst.msk [vmem:[#allocation2 + $0x50] sm:$0xff] (!%p2872_p13), %vm244_vm0, %v1991_v52  ;;  %v1937_v5 = vld [vmem:[#allocation2 + $0xa0] sm:$0xff] (!%p2872_p13) }
 0x25a   : > { %v1844_v48 = vsub.f32 %v1330_v43, %v1780_v61  ;;  %v1986_v43 = vadd.f32 (!%p2872_p13), %v1922_v16, %v5049_v15  ;;  %v1923_v61 = vld [vmem:[#allocation2 + $0x30] sm:$0xff] (!%p2872_p13)  ;;  %2047 = vst.msk [vmem:[#allocation2 + $0x10] sm:$0xff] (!%p2872_p13), %vm244_vm0, %v1983_v28  ;;  %v6429_v28 = vld [vmem:[#allocation47_spill] sm:$0xff] (!%p2872_p13)  ;;  %v1930_v16 = vld [vmem:[#allocation2 + $0x68] sm:$0xff] (!%p2872_p13) }
 0x25b   : > { %v1652_v44 = vpop.permute.xlu1 %1651  ;;  %2054 = vst.msk [vmem:[#allocation2 + $0x48] sm:$0xff] (!%p2872_p13), %vm244_vm0, %v1990_v41  ;;  %v1999_v41 = vadd.f32 (!%p2872_p13), %v1935_v34, %v5252_v25  ;;  %v6430_v52 = vld [vmem:[#allocation48_spill] sm:$0xff] (!%p2872_p13)  ;;  %v1942_v25 = vld [vmem:[#allocation2 + $0xc8] sm:$0xff] (!%p2872_p13) }
 0x25c   : > { %v5539_v47 = vmul.f32 %v1844_v48, %v1844_v48  ;;  %vm1718_vm4 = vcmp.eq.s32.totalorder %v1652_v44, %v4712_v14  ;;  %1916 = sbr.rel (%p2872_p13) target bundleno = 638 (0x27e), region = 36  ;;  %v1921_v14 = vld [vmem:[#allocation2 + $0x20] sm:$0xff] (!%p2872_p13)  ;;  %v1924_v48 = vld [vmem:[#allocation2 + $0x38] sm:$0xff] (!%p2872_p13)  ;;  %2050 = vst.msk [vmem:[#allocation2 + $0x28] sm:$0xff] (!%p2872_p13), %vm244_vm0, %v1986_v43 }
 0x25d   : > { %v1782_v22 = vsel %vm1718_vm4, 0.6931472, %v6288_v59  ;;  %v1984_v59 = vadd.f32 (!%p2872_p13), %v1920_v49, %v4994_v37  ;;  %v1985_v63 = vadd.f32 (!%p2872_p13), %v1921_v14, %v5024_v56  ;;  %v1925_v44 = vld [vmem:[#allocation2 + $0x40] sm:$0xff] (!%p2872_p13)  ;;  %v1992_v49 = vadd.f32 (!%p2872_p13), %v1928_v57, %v6429_v28  ;;  %v1936_v57 = vld [vmem:[#allocation2 + $0x98] sm:$0xff] (!%p2872_p13)  ;;  %2063 = vst.msk [vmem:[#allocation2 + $0x90] sm:$0xff] (!%p2872_p13), %vm244_vm0, %v1999_v41  ;;  %v6436_v41 = vld [vmem:[#allocation50_spill] sm:$0xff] (!%p2872_p13) }
 0x25e   : > { %v1846_v58 = vsub.f32 %v1332_v45, %v1782_v22  ;;  %v1987_v45 = vadd.f32 (!%p2872_p13), %v1923_v61, %v5077_v27  ;;  %v1988_v22 = vadd.f32 (!%p2872_p13), %v1924_v48, %v5102_v19  ;;  %v1929_v14 = vld [vmem:[#allocation2 + $0x60] sm:$0xff] (!%p2872_p13)  ;;  %v1931_v61 = vld [vmem:[#allocation2 + $0x70] sm:$0xff] (!%p2872_p13)  ;;  %v1932_v48 = vld [vmem:[#allocation2 + $0x78] sm:$0xff] (!%p2872_p13)  ;;  %v2000_v28 = vadd.f32 (!%p2872_p13), %v1936_v57, %v6430_v52 }
 0x25f   : > { %2048 = vst.msk [vmem:[#allocation2 + $0x18] sm:$0xff] (!%p2872_p13), %vm244_vm0, %v1984_v59  ;;  %2049 = vst.msk [vmem:[#allocation2 + $0x20] sm:$0xff] (!%p2872_p13), %vm244_vm0, %v1985_v63  ;;  %v1993_v59 = vadd.f32 (!%p2872_p13), %v1929_v14, %v5180_v6  ;;  %v1994_v63 = vadd.f32 (!%p2872_p13), %v1930_v16, %v5026_v9  ;;  %v1995_v43 = vadd.f32 (!%p2872_p13), %v1931_v61, %v5205_v10  ;;  %v1938_v16 = vld [vmem:[#allocation2 + $0xa8] sm:$0xff] (!%p2872_p13)  ;;  %v1939_v61 = vld [vmem:[#allocation2 + $0xb0] sm:$0xff] (!%p2872_p13) }
 0x260   : > { %v5543_v24 = vmul.f32 %v1846_v58, %v1846_v58  ;;  %v1989_v58 = vadd.f32 (!%p2872_p13), %v1925_v44, %v5127_v8  ;;  %2051 = vst.msk [vmem:[#allocation2 + $0x30] sm:$0xff] (!%p2872_p13), %vm244_vm0, %v1987_v45  ;;  %2052 = vst.msk [vmem:[#allocation2 + $0x38] sm:$0xff] (!%p2872_p13), %vm244_vm0, %v1988_v22  ;;  %v1933_v44 = vld [vmem:[#allocation2 + $0x80] sm:$0xff] (!%p2872_p13)  ;;  %v1996_v45 = vadd.f32 (!%p2872_p13), %v1932_v48, %v5051_v38  ;;  %v1940_v48 = vld [vmem:[#allocation2 + $0xb8] sm:$0xff] (!%p2872_p13) }
 0x261   : > { %2056 = vst.msk [vmem:[#allocation2 + $0x58] sm:$0xff] (!%p2872_p13), %vm244_vm0, %v1992_v49  ;;  %v1997_v22 = vadd.f32 (!%p2872_p13), %v1933_v44, %v5231_v12  ;;  %2057 = vst.msk [vmem:[#allocation2 + $0x60] sm:$0xff] (!%p2872_p13), %vm244_vm0, %v1993_v59  ;;  %v6431_v49 = vld [vmem:[#allocation52_spill] sm:$0xff] (!%p2872_p13)  ;;  %v1943_v57 = vld [vmem:[#allocation2 + $0xd0] sm:$0xff] (!%p2872_p13) }
 0x262   : > { %6426 = vst [vmem:[#allocation56_spill] sm:$0xff] %v5543_v24  ;;  %2053 = vst.msk [vmem:[#allocation2 + $0x40] sm:$0xff] (!%p2872_p13), %vm244_vm0, %v1989_v58  ;;  %v1998_v58 = vadd.f32 (!%p2872_p13), %v1934_v36, %v5079_v23  ;;  %v2001_v14 = vadd.f32 (!%p2872_p13), %v1937_v5, %v6431_v49  ;;  %v6432_v59 = vld [vmem:[#allocation24_spill] sm:$0xff] (!%p2872_p13)  ;;  %v1944_v52 = vld [vmem:[#allocation2 + $0xd8] sm:$0xff] (!%p2872_p13) }
 0x263   : > { %2058 = vst.msk [vmem:[#allocation2 + $0x68] sm:$0xff] %vm244_vm0, %v1994_v63  ;;  %2059 = vst.msk [vmem:[#allocation2 + $0x70] sm:$0xff] %vm244_vm0, %v1995_v43  ;;  %v2002_v44 = vadd.f32 %v1938_v16, %v6432_v59  ;;  %v6433_v63 = vld [vmem:[#allocation53_spill] sm:$0xff]  ;;  %v1941_v34 = vld [vmem:[#allocation2 + $0xc0] sm:$0xff] }
 0x264   : > { %2060 = vst.msk [vmem:[#allocation2 + $0x78] sm:$0xff] %vm244_vm0, %v1996_v45  ;;  %2061 = vst.msk [vmem:[#allocation2 + $0x80] sm:$0xff] %vm244_vm0, %v1997_v22  ;;  %v2003_v36 = vadd.f32 %v1939_v61, %v6433_v63  ;;  %v6434_v43 = vld [vmem:[#allocation49_spill] sm:$0xff]  ;;  %v2005_v45 = vadd.f32 %v1941_v34, %v5308_v39  ;;  %v1945_v49 = vld [vmem:[#allocation2 + $0xe0] sm:$0xff]  ;;  %v2008_v61 = vadd.f32 %v1944_v52, %v6436_v41 }
 0x265   : > { %2062 = vst.msk [vmem:[#allocation2 + $0x88] sm:$0xff] %vm244_vm0, %v1998_v58  ;;  %v2004_v23 = vadd.f32 %v1940_v48, %v6434_v43  ;;  %2064 = vst.msk [vmem:[#allocation2 + $0x98] sm:$0xff] %vm244_vm0, %v2000_v28  ;;  %v6435_v22 = vld [vmem:[#allocation25_spill] sm:$0xff]  ;;  %v2007_v58 = vadd.f32 %v1943_v57, %v5328_v21  ;;  %v2009_v28 = vadd.f32 %v1945_v49, %v5347_v33  ;;  %v1947_v59 = vld [vmem:[#allocation2 + $0xf0] sm:$0xff] }
 0x266   : > { %2065 = vst.msk [vmem:[#allocation2 + $0xa0] sm:$0xff] %vm244_vm0, %v2001_v14  ;;  %v2006_v5 = vadd.f32 %v1942_v25, %v6435_v22  ;;  %v1946_v16 = vld [vmem:[#allocation2 + $0xe8] sm:$0xff]  ;;  %2066 = vst.msk [vmem:[#allocation2 + $0xa8] sm:$0xff] %vm244_vm0, %v2002_v44  ;;  %v6437_v14 = vld [vmem:[#allocation26_spill] sm:$0xff]  ;;  %v2011_v44 = vadd.f32 %v1947_v59, %v5367_v29 }
 0x267   : > { %2067 = vst.msk [vmem:[#allocation2 + $0xb0] sm:$0xff] %vm244_vm0, %v2003_v36  ;;  %2068 = vst.msk [vmem:[#allocation2 + $0xb8] sm:$0xff] %vm244_vm0, %v2004_v23  ;;  %v2010_v48 = vadd.f32 %v1946_v16, %v6437_v14  ;;  %v1948_v63 = vld [vmem:[#allocation2 + $0xf8] sm:$0xff]  ;;  %v1949_v25 = vld [vmem:[#allocation2 + $0x100] sm:$0xff] }
 0x268   : > { %2069 = vst.msk [vmem:[#allocation2 + $0xc0] sm:$0xff] %vm244_vm0, %v2005_v45  ;;  %2070 = vst.msk [vmem:[#allocation2 + $0xc8] sm:$0xff] %vm244_vm0, %v2006_v5  ;;  %v6438_v36 = vld [vmem:[#allocation27_spill] sm:$0xff]  ;;  %v2013_v23 = vadd.f32 %v1949_v25, %v5385_v4  ;;  %v1950_v34 = vld [vmem:[#allocation2 + $0x108] sm:$0xff] }
 0x269   : > { %2071 = vst.msk [vmem:[#allocation2 + $0xd0] sm:$0xff] %vm244_vm0, %v2007_v58  ;;  %v2012_v43 = vadd.f32 %v1948_v63, %v6438_v36  ;;  %v1951_v57 = vld [vmem:[#allocation2 + $0x110] sm:$0xff]  ;;  %v1952_v22 = vld [vmem:[#allocation2 + $0x118] sm:$0xff]  ;;  %2072 = vst.msk [vmem:[#allocation2 + $0xd8] sm:$0xff] %vm244_vm0, %v2008_v61 }
 0x26a   : > { %2073 = vst.msk [vmem:[#allocation2 + $0xe0] sm:$0xff] %vm244_vm0, %v2009_v28  ;;  %2074 = vst.msk [vmem:[#allocation2 + $0xe8] sm:$0xff] %vm244_vm0, %v2010_v48  ;;  %v6439_v45 = vld [vmem:[#allocation28_spill] sm:$0xff]  ;;  %v2015_v5 = vadd.f32 %v1951_v57, %v5403_v3  ;;  %v6440_v58 = vld [vmem:[#allocation29_spill] sm:$0xff] }
 0x26b   : > { %v2014_v52 = vadd.f32 %v1950_v34, %v6439_v45  ;;  %v2016_v49 = vadd.f32 %v1952_v22, %v6440_v58  ;;  %v1953_v16 = vld [vmem:[#allocation2 + $0x120] sm:$0xff]  ;;  %v1954_v41 = vld [vmem:[#allocation2 + $0x128] sm:$0xff]  ;;  %v1955_v14 = vld [vmem:[#allocation2 + $0x130] sm:$0xff]  ;;  %2075 = vst.msk [vmem:[#allocation2 + $0xf0] sm:$0xff] %vm244_vm0, %v2011_v44 }
 0x26c   : > { %2076 = vst.msk [vmem:[#allocation2 + $0xf8] sm:$0xff] %vm244_vm0, %v2012_v43  ;;  %2077 = vst.msk [vmem:[#allocation2 + $0x100] sm:$0xff] %vm244_vm0, %v2013_v23  ;;  %v2017_v61 = vadd.f32 %v1953_v16, %v5422_v54  ;;  %v6441_v28 = vld [vmem:[#allocation30_spill] sm:$0xff]  ;;  %v2019_v48 = vadd.f32 %v1955_v14, %v5438_v31  ;;  %v1956_v63 = vld [vmem:[#allocation2 + $0x138] sm:$0xff] }
 0x26d   : > { %v2018_v59 = vadd.f32 %v1954_v41, %v6441_v28  ;;  %v1957_v25 = vld [vmem:[#allocation2 + $0x140] sm:$0xff]  ;;  %v1958_v36 = vld [vmem:[#allocation2 + $0x148] sm:$0xff]  ;;  %2078 = vst.msk [vmem:[#allocation2 + $0x108] sm:$0xff] %vm244_vm0, %v2014_v52  ;;  %2079 = vst.msk [vmem:[#allocation2 + $0x110] sm:$0xff] %vm244_vm0, %v2015_v5  ;;  %v2020_v44 = vadd.f32 %v1956_v63, %v5330_v18 }
 0x26e   : > { %2080 = vst.msk [vmem:[#allocation2 + $0x118] sm:$0xff] %vm244_vm0, %v2016_v49  ;;  %v2021_v43 = vadd.f32 %v1957_v25, %v5454_v20  ;;  %v2022_v23 = vadd.f32 %v1958_v36, %v5349_v2  ;;  %v1959_v34 = vld [vmem:[#allocation2 + $0x150] sm:$0xff]  ;;  %v1960_v57 = vld [vmem:[#allocation2 + $0x158] sm:$0xff]  ;;  %v1961_v22 = vld [vmem:[#allocation2 + $0x160] sm:$0xff] }
 0x26f   : > { %2081 = vst.msk [vmem:[#allocation2 + $0x120] sm:$0xff] %vm244_vm0, %v2017_v61  ;;  %2082 = vst.msk [vmem:[#allocation2 + $0x128] sm:$0xff] %vm244_vm0, %v2018_v59  ;;  %v2023_v45 = vadd.f32 %v1959_v34, %v5471_v60  ;;  %v6442_v52 = vld [vmem:[#allocation54_spill] sm:$0xff]  ;;  %v2025_v58 = vadd.f32 %v1961_v22, %v5483_v30  ;;  %v1962_v49 = vld [vmem:[#allocation2 + $0x168] sm:$0xff] }
 0x270   : > { %2083 = vst.msk [vmem:[#allocation2 + $0x130] sm:$0xff] %vm244_vm0, %v2019_v48  ;;  %v2024_v5 = vadd.f32 %v1960_v57, %v6442_v52  ;;  %v1963_v16 = vld [vmem:[#allocation2 + $0x170] sm:$0xff]  ;;  %v1964_v41 = vld [vmem:[#allocation2 + $0x178] sm:$0xff]  ;;  %2084 = vst.msk [vmem:[#allocation2 + $0x138] sm:$0xff] %vm244_vm0, %v2020_v44 }
 0x271   : > { %2085 = vst.msk [vmem:[#allocation2 + $0x140] sm:$0xff] %vm244_vm0, %v2021_v43  ;;  %2086 = vst.msk [vmem:[#allocation2 + $0x148] sm:$0xff] %vm244_vm0, %v2022_v23  ;;  %v6443_v14 = vld [vmem:[#allocation31_spill] sm:$0xff]  ;;  %v2027_v28 = vadd.f32 %v1963_v16, %v5494_v0  ;;  %v6444_v59 = vld [vmem:[#allocation32_spill] sm:$0xff] }
 0x272   : > { %v2026_v61 = vadd.f32 %v1962_v49, %v6443_v14  ;;  %v2028_v48 = vadd.f32 %v1964_v41, %v6444_v59  ;;  %v1965_v63 = vld [vmem:[#allocation2 + $0x180] sm:$0xff]  ;;  %v1966_v25 = vld [vmem:[#allocation2 + $0x188] sm:$0xff]  ;;  %v1967_v36 = vld [vmem:[#allocation2 + $0x190] sm:$0xff]  ;;  %2087 = vst.msk [vmem:[#allocation2 + $0x150] sm:$0xff] %vm244_vm0, %v2023_v45 }
 0x273   : > { %2088 = vst.msk [vmem:[#allocation2 + $0x158] sm:$0xff] %vm244_vm0, %v2024_v5  ;;  %2089 = vst.msk [vmem:[#allocation2 + $0x160] sm:$0xff] %vm244_vm0, %v2025_v58  ;;  %v2029_v44 = vadd.f32 %v1965_v63, %v5505_v26  ;;  %v6445_v43 = vld [vmem:[#allocation55_spill] sm:$0xff]  ;;  %v2031_v23 = vadd.f32 %v1967_v36, %v5516_v42  ;;  %v1969_v22 = vld [vmem:[#allocation2 + $0x1a0] sm:$0xff] }
 0x274   : > { %v2030_v34 = vadd.f32 %v1966_v25, %v6445_v43  ;;  %v1968_v57 = vld [vmem:[#allocation2 + $0x198] sm:$0xff]  ;;  %v1970_v52 = vld [vmem:[#allocation2 + $0x1a8] sm:$0xff]  ;;  %2090 = vst.msk [vmem:[#allocation2 + $0x168] sm:$0xff] %vm244_vm0, %v2026_v61  ;;  %2091 = vst.msk [vmem:[#allocation2 + $0x170] sm:$0xff] %vm244_vm0, %v2027_v28  ;;  %v2033_v5 = vadd.f32 %v1969_v22, %v5523_v1 }
 0x275   : > { %2092 = vst.msk [vmem:[#allocation2 + $0x178] sm:$0xff] %vm244_vm0, %v2028_v48  ;;  %v2032_v45 = vadd.f32 %v1968_v57, %v5440_v46  ;;  %v2034_v58 = vadd.f32 %v1970_v52, %v5456_v40  ;;  %v1971_v49 = vld [vmem:[#allocation2 + $0x1b0] sm:$0xff]  ;;  %v1972_v16 = vld [vmem:[#allocation2 + $0x1b8] sm:$0xff]  ;;  %v1973_v41 = vld [vmem:[#allocation2 + $0x1c0] sm:$0xff] }
 0x276   : > { %2093 = vst.msk [vmem:[#allocation2 + $0x180] sm:$0xff] %vm244_vm0, %v2029_v44  ;;  %2094 = vst.msk [vmem:[#allocation2 + $0x188] sm:$0xff] %vm244_vm0, %v2030_v34  ;;  %v2035_v14 = vadd.f32 %v1971_v49, %v5527_v13  ;;  %v2036_v61 = vadd.f32 %v1972_v16, %v5473_v7  ;;  %v2037_v28 = vadd.f32 %v1973_v41, %v5531_v11  ;;  %v1974_v59 = vld [vmem:[#allocation2 + $0x1c8] sm:$0xff]  ;;  %v1975_v48 = vld [vmem:[#allocation2 + $0x1d0] sm:$0xff] }
 0x277   : > { %2095 = vst.msk [vmem:[#allocation2 + $0x190] sm:$0xff] %vm244_vm0, %v2031_v23  ;;  %v1976_v63 = vld [vmem:[#allocation2 + $0x1d8] sm:$0xff]  ;;  %2096 = vst.msk [vmem:[#allocation2 + $0x198] sm:$0xff] %vm244_vm0, %v2032_v45  ;;  %v2038_v25 = vadd.f32 %v1974_v59, %v5485_v62  ;;  %v2039_v36 = vadd.f32 %v1975_v48, %v5535_v53  ;;  %v1977_v43 = vld [vmem:[#allocation2 + $0x1e0] sm:$0xff] }
 0x278   : > { %2097 = vst.msk [vmem:[#allocation2 + $0x1a0] sm:$0xff] %vm244_vm0, %v2033_v5  ;;  %2098 = vst.msk [vmem:[#allocation2 + $0x1a8] sm:$0xff] %vm244_vm0, %v2034_v58  ;;  %v2040_v44 = vadd.f32 %v1976_v63, %v5496_v17  ;;  %v1978_v34 = vld [vmem:[#allocation2 + $0x1e8] sm:$0xff]  ;;  %v1979_v23 = vld [vmem:[#allocation2 + $0x1f0] sm:$0xff]  ;;  %v2041_v57 = vadd.f32 %v1977_v43, %v5539_v47 }
 0x279   : > { %2099 = vst.msk [vmem:[#allocation2 + $0x1b0] sm:$0xff] %vm244_vm0, %v2035_v14  ;;  %2100 = vst.msk [vmem:[#allocation2 + $0x1b8] sm:$0xff] %vm244_vm0, %v2036_v61  ;;  %v2042_v22 = vadd.f32 %v1978_v34, %v5507_v35  ;;  %v2043_v52 = vadd.f32 %v1979_v23, %v5543_v24  ;;  %v1980_v45 = vld [vmem:[#allocation2 + $0x1f8] sm:$0xff] }
 0x27a   : > { %2101 = vst.msk [vmem:[#allocation2 + $0x1c0] sm:$0xff] %vm244_vm0, %v2037_v28  ;;  %2102 = vst.msk [vmem:[#allocation2 + $0x1c8] sm:$0xff] %vm244_vm0, %v2038_v25  ;;  %v2044_v5 = vadd.f32 %v1980_v45, %v5518_v55 }
 0x27b   : > { %2103 = vst.msk [vmem:[#allocation2 + $0x1d0] sm:$0xff] %vm244_vm0, %v2039_v36  ;;  %2104 = vst.msk [vmem:[#allocation2 + $0x1d8] sm:$0xff] %vm244_vm0, %v2040_v44 }
 0x27c   : > { %2105 = vst.msk [vmem:[#allocation2 + $0x1e0] sm:$0xff] %vm244_vm0, %v2041_v57  ;;  %2106 = vst.msk [vmem:[#allocation2 + $0x1e8] sm:$0xff] %vm244_vm0, %v2042_v22 }
 0x27d   : > { %2107 = vst.msk [vmem:[#allocation2 + $0x1f0] sm:$0xff] %vm244_vm0, %v2043_v52  ;;  %2108 = vst.msk [vmem:[#allocation2 + $0x1f8] sm:$0xff] %vm244_vm0, %v2044_v5 }
 0x27e PF: > { %2112 = sbr.rel (%p209_p11) target bundleno = 727 (0x2d7), region = 40  ;;  %v6446_v58 = vlaneseq (!%p209_p11)  ;;  %s2874_s8 = sshll.u32 (!%p209_p11), %s3553_s12, 9  ;;  %v2308_v59 = vld [vmem:[#allocation2] sm:$0xff] (!%p209_p11)  ;;  %v2309_v57 = vld [vmem:[#allocation2 + $0x8] sm:$0xff] (!%p209_p11)  ;;  %v2310_v22 = vld [vmem:[#allocation2 + $0x10] sm:$0xff] (!%p209_p11) }
 0x27f   : > { %v5681_v16 = vstv (!%p209_p11), %s2874_s8 }
 0x280   : > { %v5678_v49 = vshrl.u32 (!%p209_p11), %v6446_v58, 7 }
 0x281   : > { %v2311_v52 = vld [vmem:[#allocation2 + $0x18] sm:$0xff] (!%p209_p11) }
 0x282   : > { %v2180_v41 = vadd.s32 (!%p209_p11), %v5681_v16, %v5678_v49  ;;  %v2115_v14 = vadd.s32 (!%p209_p11), 8, %v5678_v49  ;;  %v2116_v61 = vadd.s32 (!%p209_p11), 16, %v5678_v49  ;;  %v2117_v28 = vadd.s32 (!%p209_p11), 24, %v5678_v49 }
 0x283   : > { %v2118_v48 = vadd.s32 (!%p209_p11), 32, %v5678_v49  ;;  %v2119_v63 = vadd.s32 (!%p209_p11), 40, %v5678_v49  ;;  %v2120_v25 = vadd.s32 (!%p209_p11), 48, %v5678_v49  ;;  %v2121_v36 = vadd.s32 (!%p209_p11), 56, %v5678_v49 }
 0x284   : > { %vm2244_vm5 = vcmp.lt.s32.totalorder (!%p209_p11), %v2180_v41, 300  ;;  %v2181_v44 = vadd.s32 (!%p209_p11), %v5681_v16, %v2115_v14  ;;  %v2182_v43 = vadd.s32 (!%p209_p11), %v5681_v16, %v2116_v61  ;;  %v2183_v34 = vadd.s32 (!%p209_p11), %v5681_v16, %v2117_v28  ;;  %v2312_v41 = vld [vmem:[#allocation2 + $0x20] sm:$0xff] (!%p209_p11)  ;;  %v6447_v61 = vld [vmem:[#allocation46_spill] sm:$0xff] (!%p209_p11) }
 0x285   : > { %v2372_v23 = vsel %vm2244_vm5, %v4943_v32, 0.0  ;;  %v2184_v45 = vadd.s32 %v5681_v16, %v2118_v48  ;;  %v2185_v5 = vadd.s32 %v5681_v16, %v2119_v63  ;;  %v2186_v58 = vadd.s32 %v5681_v16, %v2120_v25  ;;  %v2313_v25 = vld [vmem:[#allocation2 + $0x28] sm:$0xff] }
 0x286   : > { %v2436_v55 = vadd.f32 %v2372_v23, %v2308_v59  ;;  %vm2245_vm6 = vcmp.lt.s32.totalorder %v2181_v44, 300  ;;  %vm2246_vm7 = vcmp.lt.s32.totalorder %v2182_v43, 300  ;;  %vm2247_vm8 = vcmp.lt.s32.totalorder %v2183_v34, 300  ;;  %v2314_v59 = vld [vmem:[#allocation2 + $0x30] sm:$0xff] }
 0x287   : > { %v2373_v14 = vsel %vm2245_vm6, %v4941_v51, 0.0  ;;  %v2374_v28 = vsel %vm2246_vm7, %v6447_v61, 0.0  ;;  %v2375_v32 = vsel %vm2247_vm8, %v4994_v37, 0.0  ;;  %vm2248_vm9 = vcmp.lt.s32.totalorder %v2184_v45, 300  ;;  %v2317_v45 = vld [vmem:[#allocation2 + $0x48] sm:$0xff] }
 0x288   : > { %2500 = vst.msk [vmem:[#allocation2] sm:$0xff] %vm244_vm0, %v2436_v55  ;;  %v2437_v24 = vadd.f32 %v2373_v14, %v2309_v57  ;;  %v2438_v48 = vadd.f32 %v2374_v28, %v2310_v22  ;;  %v2439_v35 = vadd.f32 %v2375_v32, %v2311_v52  ;;  %v2376_v63 = vsel %vm2248_vm9, %v5024_v56, 0.0  ;;  %v2315_v55 = vld [vmem:[#allocation2 + $0x38] sm:$0xff]  ;;  %v2316_v52 = vld [vmem:[#allocation2 + $0x40] sm:$0xff]  ;;  %v6448_v32 = vld [vmem:[#allocation22_spill] sm:$0xff] }
 0x289   : > { %v2440_v44 = vadd.f32 %v2376_v63, %v2312_v41  ;;  %vm2249_vm10 = vcmp.lt.s32.totalorder %v2185_v5, 300  ;;  %vm2250_vm11 = vcmp.lt.s32.totalorder %v2186_v58, 300  ;;  %v2187_v43 = vadd.s32 %v5681_v16, %v2121_v36  ;;  %v2319_v63 = vld [vmem:[#allocation2 + $0x58] sm:$0xff] }
 0x28a   : > { %2501 = vst.msk [vmem:[#allocation2 + $0x8] sm:$0xff] %vm244_vm0, %v2437_v24  ;;  %2502 = vst.msk [vmem:[#allocation2 + $0x10] sm:$0xff] %vm244_vm0, %v2438_v48  ;;  %v2377_v51 = vsel %vm2249_vm10, %v5049_v15, 0.0  ;;  %v2378_v37 = vsel %vm2250_vm11, %v5077_v27, 0.0  ;;  %v2122_v56 = vadd.s32 64, %v5678_v49  ;;  %v2123_v34 = vadd.s32 72, %v5678_v49 }
 0x28b   : > { %2503 = vst.msk [vmem:[#allocation2 + $0x18] sm:$0xff] %vm244_vm0, %v2439_v35  ;;  %2504 = vst.msk [vmem:[#allocation2 + $0x20] sm:$0xff] %vm244_vm0, %v2440_v44  ;;  %v2441_v23 = vadd.f32 %v2377_v51, %v2313_v25  ;;  %v2442_v57 = vadd.f32 %v2378_v37, %v2314_v59  ;;  %vm2251_vm12 = vcmp.lt.s32.totalorder %v2187_v43, 300  ;;  %v2124_v24 = vadd.s32 80, %v5678_v49  ;;  %v2320_v51 = vld [vmem:[#allocation2 + $0x60] sm:$0xff] }
 0x28c   : > { %v2379_v36 = vsel %vm2251_vm12, %v5102_v19, 0.0  ;;  %v2188_v35 = vadd.s32 %v5681_v16, %v2122_v56  ;;  %v2189_v15 = vadd.s32 %v5681_v16, %v2123_v34  ;;  %v2125_v27 = vadd.s32 88, %v5678_v49  ;;  %v2318_v19 = vld [vmem:[#allocation2 + $0x50] sm:$0xff] }
 0x28d   : > { %2505 = vst.msk [vmem:[#allocation2 + $0x28] sm:$0xff] %vm244_vm0, %v2441_v23  ;;  %2506 = vst.msk [vmem:[#allocation2 + $0x30] sm:$0xff] %vm244_vm0, %v2442_v57  ;;  %v2443_v22 = vadd.f32 %v2379_v36, %v2315_v55  ;;  %v2190_v5 = vadd.s32 %v5681_v16, %v2124_v24  ;;  %v2126_v58 = vadd.s32 96, %v5678_v49  ;;  %v2127_v41 = vadd.s32 104, %v5678_v49  ;;  %v6449_v55 = vld [vmem:[#allocation47_spill] sm:$0xff]  ;;  %v2321_v57 = vld [vmem:[#allocation2 + $0x68] sm:$0xff] }
 0x28e   : > { %vm2252_vm13 = vcmp.lt.s32.totalorder %v2188_v35, 300  ;;  %vm2253_vm14 = vcmp.lt.s32.totalorder %v2189_v15, 300  ;;  %v2191_v14 = vadd.s32 %v5681_v16, %v2125_v27  ;;  %v2128_v61 = vadd.s32 112, %v5678_v49  ;;  %v2322_v35 = vld [vmem:[#allocation2 + $0x70] sm:$0xff] }
 0x28f   : > { %2507 = vst.msk [vmem:[#allocation2 + $0x38] sm:$0xff] %vm244_vm0, %v2443_v22  ;;  %v2380_v28 = vsel %vm2252_vm13, %v5127_v8, 0.0  ;;  %v2381_v48 = vsel %vm2253_vm14, %v6448_v32, 0.0  ;;  %vm2254_vm15 = vcmp.lt.s32.totalorder %v2190_v5, 300  ;;  %v2192_v25 = vadd.s32 %v5681_v16, %v2126_v58  ;;  %v2323_v58 = vld [vmem:[#allocation2 + $0x78] sm:$0xff] }
 0x290   : > { %v2444_v59 = vadd.f32 %v2380_v28, %v2316_v52  ;;  %v2445_v44 = vadd.f32 %v2381_v48, %v2317_v45  ;;  %v2382_v43 = vsel %vm2254_vm15, %v5155_v50, 0.0  ;;  %vm2255_vm1 = vcmp.lt.s32.totalorder %v2191_v14, 300  ;;  %v2325_v28 = vld [vmem:[#allocation2 + $0x88] sm:$0xff] }
 0x291   : > { %v2446_v37 = vadd.f32 %v2382_v43, %v2318_v19  ;;  %v2383_v56 = vsel %vm2255_vm1, %v6449_v55, 0.0  ;;  %vm2256_vm2 = vcmp.lt.s32.totalorder %v2192_v25, 300  ;;  %v2193_v34 = vadd.s32 %v5681_v16, %v2127_v41  ;;  %v6451_v55 = vld [vmem:[#allocation51_spill] sm:$0xff] }
 0x292   : > { %2508 = vst.msk [vmem:[#allocation2 + $0x40] sm:$0xff] %vm244_vm0, %v2444_v59  ;;  %2509 = vst.msk [vmem:[#allocation2 + $0x48] sm:$0xff] %vm244_vm0, %v2445_v44  ;;  %v2447_v8 = vadd.f32 %v2383_v56, %v2319_v63  ;;  %v2384_v23 = vsel %vm2256_vm2, %v5180_v6, 0.0  ;;  %v2194_v24 = vadd.s32 %v5681_v16, %v2128_v61  ;;  %v2129_v50 = vadd.s32 120, %v5678_v49  ;;  %v2324_v61 = vld [vmem:[#allocation2 + $0x80] sm:$0xff]  ;;  %v6450_v44 = vld [vmem:[#allocation23_spill] sm:$0xff] }
 0x293   : > { %2510 = vst.msk [vmem:[#allocation2 + $0x50] sm:$0xff] %vm244_vm0, %v2446_v37  ;;  %v2448_v36 = vadd.f32 %v2384_v23, %v2320_v51  ;;  %vm2257_vm3 = vcmp.lt.s32.totalorder %v2193_v34, 300  ;;  %v2130_v15 = vadd.s32 128, %v5678_v49  ;;  %v2131_v27 = vadd.s32 136, %v5678_v49 }
 0x294   : > { %2511 = vst.msk [vmem:[#allocation2 + $0x58] sm:$0xff] %vm244_vm0, %v2447_v8  ;;  %v2385_v22 = vsel %vm2257_vm3, %v5026_v9, 0.0  ;;  %vm2258_vm4 = vcmp.lt.s32.totalorder %v2194_v24, 300  ;;  %v2195_v6 = vadd.s32 %v5681_v16, %v2129_v50  ;;  %v2132_v52 = vadd.s32 144, %v5678_v49  ;;  %v2327_v8 = vld [vmem:[#allocation2 + $0x98] sm:$0xff] }
 0x295   : > { %2512 = vst.msk [vmem:[#allocation2 + $0x60] sm:$0xff] %vm244_vm0, %v2448_v36  ;;  %v2449_v45 = vadd.f32 %v2385_v22, %v2321_v57  ;;  %v2386_v5 = vsel %vm2258_vm4, %v5205_v10, 0.0  ;;  %v2196_v41 = vadd.s32 %v5681_v16, %v2130_v15  ;;  %v2197_v19 = vadd.s32 %v5681_v16, %v2131_v27  ;;  %v2326_v10 = vld [vmem:[#allocation2 + $0x90] sm:$0xff]  ;;  %v6452_v15 = vld [vmem:[#allocation48_spill] sm:$0xff] }
 0x296   : > { %v2450_v14 = vadd.f32 %v2386_v5, %v2322_v35  ;;  %vm2259_vm5 = vcmp.lt.s32.totalorder %v2195_v6, 300  ;;  %v2198_v9 = vadd.s32 %v5681_v16, %v2132_v52  ;;  %v2133_v32 = vadd.s32 152, %v5678_v49 }
 0x297   : > { %2513 = vst.msk [vmem:[#allocation2 + $0x68] sm:$0xff] %vm244_vm0, %v2449_v45  ;;  %v2387_v48 = vsel %vm2259_vm5, %v5051_v38, 0.0  ;;  %vm2260_vm6 = vcmp.lt.s32.totalorder %v2196_v41, 300  ;;  %vm2261_vm7 = vcmp.lt.s32.totalorder %v2197_v19, 300  ;;  %v2134_v63 = vadd.s32 160, %v5678_v49  ;;  %v6453_v45 = vld [vmem:[#allocation52_spill] sm:$0xff] }
 0x298   : > { %2514 = vst.msk [vmem:[#allocation2 + $0x70] sm:$0xff] %vm244_vm0, %v2450_v14  ;;  %v2451_v25 = vadd.f32 %v2387_v48, %v2323_v58  ;;  %v2388_v59 = vsel %vm2260_vm6, %v5231_v12, 0.0  ;;  %v2389_v43 = vsel %vm2261_vm7, %v6450_v44, 0.0  ;;  %vm2262_vm8 = vcmp.lt.s32.totalorder %v2198_v9, 300  ;;  %v2328_v12 = vld [vmem:[#allocation2 + $0xa0] sm:$0xff]  ;;  %v2329_v58 = vld [vmem:[#allocation2 + $0xa8] sm:$0xff] }
 0x299   : > { %v2452_v51 = vadd.f32 %v2388_v59, %v2324_v61  ;;  %v2453_v37 = vadd.f32 %v2389_v43, %v2325_v28  ;;  %v2390_v56 = vsel %vm2262_vm8, %v6451_v55, 0.0  ;;  %v2199_v34 = vadd.s32 %v5681_v16, %v2133_v32  ;;  %v2330_v41 = vld [vmem:[#allocation2 + $0xb0] sm:$0xff]  ;;  %v2331_v28 = vld [vmem:[#allocation2 + $0xb8] sm:$0xff]  ;;  %v2332_v9 = vld [vmem:[#allocation2 + $0xc0] sm:$0xff] }
 0x29a   : > { %2515 = vst.msk [vmem:[#allocation2 + $0x78] sm:$0xff] %vm244_vm0, %v2451_v25  ;;  %v2454_v38 = vadd.f32 %v2390_v56, %v2326_v10  ;;  %v2200_v23 = vadd.s32 %v5681_v16, %v2134_v63  ;;  %v2135_v57 = vadd.s32 168, %v5678_v49  ;;  %v2136_v24 = vadd.s32 176, %v5678_v49  ;;  %v6454_v48 = vld [vmem:[#allocation24_spill] sm:$0xff]  ;;  %v6455_v63 = vld [vmem:[#allocation53_spill] sm:$0xff] }
 0x29b   : > { %2516 = vst.msk [vmem:[#allocation2 + $0x80] sm:$0xff] %vm244_vm0, %v2452_v51  ;;  %2517 = vst.msk [vmem:[#allocation2 + $0x88] sm:$0xff] %vm244_vm0, %v2453_v37  ;;  %vm2263_vm9 = vcmp.lt.s32.totalorder %v2199_v34, 300  ;;  %v2137_v50 = vadd.s32 184, %v5678_v49  ;;  %v2138_v36 = vadd.s32 192, %v5678_v49  ;;  %v2139_v35 = vadd.s32 200, %v5678_v49 }
 0x29c   : > { %2518 = vst.msk [vmem:[#allocation2 + $0x90] sm:$0xff] %vm244_vm0, %v2454_v38  ;;  %v2391_v27 = vsel %vm2263_vm9, %v6452_v15, 0.0  ;;  %vm2264_vm10 = vcmp.lt.s32.totalorder %v2200_v23, 300  ;;  %v2201_v22 = vadd.s32 %v5681_v16, %v2135_v57  ;;  %v2202_v6 = vadd.s32 %v5681_v16, %v2136_v24  ;;  %v6456_v43 = vld [vmem:[#allocation49_spill] sm:$0xff]  ;;  %v2334_v15 = vld [vmem:[#allocation2 + $0xd0] sm:$0xff] }
 0x29d   : > { %v2455_v52 = vadd.f32 %v2391_v27, %v2327_v8  ;;  %v2392_v5 = vsel %vm2264_vm10, %v6453_v45, 0.0  ;;  %v2203_v19 = vadd.s32 %v5681_v16, %v2137_v50  ;;  %v2204_v14 = vadd.s32 %v5681_v16, %v2138_v36  ;;  %v2333_v55 = vld [vmem:[#allocation2 + $0xc8] sm:$0xff]  ;;  %v2335_v45 = vld [vmem:[#allocation2 + $0xd8] sm:$0xff] }
 0x29e   : > { %v2456_v61 = vadd.f32 %v2392_v5, %v2328_v12  ;;  %vm2265_vm11 = vcmp.lt.s32.totalorder %v2201_v22, 300  ;;  %vm2266_vm12 = vcmp.lt.s32.totalorder %v2202_v6, 300  ;;  %v2205_v32 = vadd.s32 %v5681_v16, %v2139_v35  ;;  %v6457_v8 = vld [vmem:[#allocation25_spill] sm:$0xff]  ;;  %v2336_v5 = vld [vmem:[#allocation2 + $0xe0] sm:$0xff] }
 0x29f   : > { %2519 = vst.msk [vmem:[#allocation2 + $0x98] sm:$0xff] %vm244_vm0, %v2455_v52  ;;  %v2393_v10 = vsel %vm2265_vm11, %v6454_v48, 0.0  ;;  %v2394_v25 = vsel %vm2266_vm12, %v6455_v63, 0.0  ;;  %vm2267_vm13 = vcmp.lt.s32.totalorder %v2203_v19, 300  ;;  %vm2268_vm14 = vcmp.lt.s32.totalorder %v2204_v14, 300 }
 0x2a0   : > { %2520 = vst.msk [vmem:[#allocation2 + $0xa0] sm:$0xff] %vm244_vm0, %v2456_v61  ;;  %v2457_v59 = vadd.f32 %v2393_v10, %v2329_v58  ;;  %v2458_v44 = vadd.f32 %v2394_v25, %v2330_v41  ;;  %v2395_v51 = vsel %vm2267_vm13, %v6456_v43, 0.0  ;;  %v2396_v37 = vsel %vm2268_vm14, %v5308_v39, 0.0  ;;  %v2337_v58 = vld [vmem:[#allocation2 + $0xe8] sm:$0xff]  ;;  %v6459_v10 = vld [vmem:[#allocation26_spill] sm:$0xff] }
 0x2a1   : > { %v2459_v56 = vadd.f32 %v2395_v51, %v2331_v28  ;;  %v2460_v34 = vadd.f32 %v2396_v37, %v2332_v9  ;;  %vm2269_vm15 = vcmp.lt.s32.totalorder %v2205_v32, 300  ;;  %v2140_v38 = vadd.s32 208, %v5678_v49  ;;  %v6458_v9 = vld [vmem:[#allocation50_spill] sm:$0xff]  ;;  %v2339_v51 = vld [vmem:[#allocation2 + $0xf8] sm:$0xff] }
 0x2a2   : > { %2521 = vst.msk [vmem:[#allocation2 + $0xa8] sm:$0xff] %vm244_vm0, %v2457_v59  ;;  %2522 = vst.msk [vmem:[#allocation2 + $0xb0] sm:$0xff] %vm244_vm0, %v2458_v44  ;;  %v2397_v23 = vsel %vm2269_vm15, %v6457_v8, 0.0  ;;  %v2141_v57 = vadd.s32 216, %v5678_v49  ;;  %v2142_v24 = vadd.s32 224, %v5678_v49  ;;  %v2143_v12 = vadd.s32 232, %v5678_v49 }
 0x2a3   : > { %2523 = vst.msk [vmem:[#allocation2 + $0xb8] sm:$0xff] %vm244_vm0, %v2459_v56  ;;  %2524 = vst.msk [vmem:[#allocation2 + $0xc0] sm:$0xff] %vm244_vm0, %v2460_v34  ;;  %v2461_v39 = vadd.f32 %v2397_v23, %v2333_v55  ;;  %v2206_v50 = vadd.s32 %v5681_v16, %v2140_v38  ;;  %v2144_v36 = vadd.s32 240, %v5678_v49  ;;  %v2145_v35 = vadd.s32 248, %v5678_v49  ;;  %v2338_v25 = vld [vmem:[#allocation2 + $0xf0] sm:$0xff]  ;;  %v6460_v56 = vld [vmem:[#allocation27_spill] sm:$0xff] }
 0x2a4   : > { %v2207_v27 = vadd.s32 %v5681_v16, %v2141_v57  ;;  %v2208_v22 = vadd.s32 %v5681_v16, %v2142_v24  ;;  %v2209_v6 = vadd.s32 %v5681_v16, %v2143_v12  ;;  %v2146_v52 = vadd.s32 256, %v5678_v49  ;;  %v2340_v38 = vld [vmem:[#allocation2 + $0x100] sm:$0xff]  ;;  %v2341_v8 = vld [vmem:[#allocation2 + $0x108] sm:$0xff] }
 0x2a5   : > { %2525 = vst.msk [vmem:[#allocation2 + $0xc8] sm:$0xff] %vm244_vm0, %v2461_v39  ;;  %vm2270_vm1 = vcmp.lt.s32.totalorder %v2206_v50, 300  ;;  %v2210_v41 = vadd.s32 %v5681_v16, %v2144_v36  ;;  %v2211_v19 = vadd.s32 %v5681_v16, %v2145_v35  ;;  %v2147_v14 = vadd.s32 264, %v5678_v49  ;;  %v6461_v39 = vld [vmem:[#allocation28_spill] sm:$0xff] }
 0x2a6   : > { %v2398_v61 = vsel %vm2270_vm1, %v5328_v21, 0.0  ;;  %vm2271_vm2 = vcmp.lt.s32.totalorder %v2207_v27, 300  ;;  %vm2272_vm3 = vcmp.lt.s32.totalorder %v2208_v22, 300  ;;  %vm2273_vm4 = vcmp.lt.s32.totalorder %v2209_v6, 300  ;;  %v2342_v22 = vld [vmem:[#allocation2 + $0x110] sm:$0xff]  ;;  %v2343_v6 = vld [vmem:[#allocation2 + $0x118] sm:$0xff] }
 0x2a7   : > { %v2462_v28 = vadd.f32 %v2398_v61, %v2334_v15  ;;  %v2399_v32 = vsel %vm2271_vm2, %v6458_v9, 0.0  ;;  %v2400_v48 = vsel %vm2272_vm3, %v5347_v33, 0.0  ;;  %v2401_v63 = vsel %vm2273_vm4, %v6459_v10, 0.0 }
 0x2a8   : > { %v2463_v59 = vadd.f32 %v2399_v32, %v2335_v45  ;;  %v2464_v44 = vadd.f32 %v2400_v48, %v2336_v5  ;;  %v2465_v43 = vadd.f32 %v2401_v63, %v2337_v58  ;;  %vm2274_vm5 = vcmp.lt.s32.totalorder %v2210_v41, 300  ;;  %v2344_v5 = vld [vmem:[#allocation2 + $0x120] sm:$0xff]  ;;  %v2345_v48 = vld [vmem:[#allocation2 + $0x128] sm:$0xff] }
 0x2a9   : > { %2526 = vst.msk [vmem:[#allocation2 + $0xd0] sm:$0xff] %vm244_vm0, %v2462_v28  ;;  %v2402_v21 = vsel %vm2274_vm5, %v5367_v29, 0.0  ;;  %vm2275_vm6 = vcmp.lt.s32.totalorder %v2211_v19, 300  ;;  %v2212_v37 = vadd.s32 %v5681_v16, %v2146_v52  ;;  %v2213_v55 = vadd.s32 %v5681_v16, %v2147_v14  ;;  %v6462_v19 = vld [vmem:[#allocation29_spill] sm:$0xff] }
 0x2aa   : > { %2527 = vst.msk [vmem:[#allocation2 + $0xd8] sm:$0xff] %vm244_vm0, %v2463_v59  ;;  %2528 = vst.msk [vmem:[#allocation2 + $0xe0] sm:$0xff] %vm244_vm0, %v2464_v44  ;;  %v2466_v33 = vadd.f32 %v2402_v21, %v2338_v25  ;;  %v2403_v34 = vsel %vm2275_vm6, %v6460_v56, 0.0  ;;  %v2148_v23 = vadd.s32 272, %v5678_v49  ;;  %v2149_v29 = vadd.s32 280, %v5678_v49  ;;  %v2346_v25 = vld [vmem:[#allocation2 + $0x130] sm:$0xff] }
 0x2ab   : > { %2529 = vst.msk [vmem:[#allocation2 + $0xe8] sm:$0xff] %vm244_vm0, %v2465_v43  ;;  %v2467_v57 = vadd.f32 %v2403_v34, %v2339_v51  ;;  %vm2276_vm7 = vcmp.lt.s32.totalorder %v2212_v37, 300  ;;  %vm2277_vm8 = vcmp.lt.s32.totalorder %v2213_v55, 300  ;;  %v2150_v24 = vadd.s32 288, %v5678_v49  ;;  %v2347_v51 = vld [vmem:[#allocation2 + $0x138] sm:$0xff] }
 0x2ac   : > { %2530 = vst.msk [vmem:[#allocation2 + $0xf0] sm:$0xff] %vm244_vm0, %v2466_v33  ;;  %v2404_v12 = vsel %vm2276_vm7, %v5385_v4, 0.0  ;;  %v2405_v50 = vsel %vm2277_vm8, %v6461_v39, 0.0  ;;  %v2214_v36 = vadd.s32 %v5681_v16, %v2148_v23  ;;  %v2215_v35 = vadd.s32 %v5681_v16, %v2149_v29 }
 0x2ad   : > { %2531 = vst.msk [vmem:[#allocation2 + $0xf8] sm:$0xff] %vm244_vm0, %v2467_v57  ;;  %v2468_v15 = vadd.f32 %v2404_v12, %v2340_v38  ;;  %v2469_v27 = vadd.f32 %v2405_v50, %v2341_v8  ;;  %v2216_v52 = vadd.s32 %v5681_v16, %v2150_v24  ;;  %v2151_v45 = vadd.s32 296, %v5678_v49  ;;  %v2348_v38 = vld [vmem:[#allocation2 + $0x140] sm:$0xff]  ;;  %v2349_v57 = vld [vmem:[#allocation2 + $0x148] sm:$0xff]  ;;  %v2350_v24 = vld [vmem:[#allocation2 + $0x150] sm:$0xff] }
 0x2ae   : > { %vm2278_vm9 = vcmp.lt.s32.totalorder %v2214_v36, 300  ;;  %vm2279_vm10 = vcmp.lt.s32.totalorder %v2215_v35, 300  ;;  %v2152_v4 = vadd.s32 304, %v5678_v49  ;;  %v2153_v58 = vadd.s32 312, %v5678_v49 }
 0x2af   : > { %2532 = vst.msk [vmem:[#allocation2 + $0x100] sm:$0xff] %vm244_vm0, %v2468_v15  ;;  %2533 = vst.msk [vmem:[#allocation2 + $0x108] sm:$0xff] %vm244_vm0, %v2469_v27  ;;  %v2406_v41 = vsel %vm2278_vm9, %v5403_v3, 0.0  ;;  %v2407_v14 = vsel %vm2279_vm10, %v6462_v19, 0.0  ;;  %vm2280_vm11 = vcmp.lt.s32.totalorder %v2216_v52, 300  ;;  %v2217_v61 = vadd.s32 %v5681_v16, %v2151_v45  ;;  %v6463_v3 = vld [vmem:[#allocation30_spill] sm:$0xff] }
 0x2b0   : > { %v2470_v28 = vadd.f32 %v2406_v41, %v2342_v22  ;;  %v2471_v9 = vadd.f32 %v2407_v14, %v2343_v6  ;;  %v2408_v32 = vsel %vm2280_vm11, %v5422_v54, 0.0  ;;  %v2218_v10 = vadd.s32 %v5681_v16, %v2152_v4  ;;  %v2351_v6 = vld [vmem:[#allocation2 + $0x158] sm:$0xff]  ;;  %v2352_v45 = vld [vmem:[#allocation2 + $0x160] sm:$0xff] }
 0x2b1   : > { %v2472_v63 = vadd.f32 %v2408_v32, %v2344_v5  ;;  %vm2281_vm12 = vcmp.lt.s32.totalorder %v2217_v61, 300  ;;  %v2219_v59 = vadd.s32 %v5681_v16, %v2153_v58  ;;  %v2154_v44 = vadd.s32 320, %v5678_v49  ;;  %v2353_v5 = vld [vmem:[#allocation2 + $0x168] sm:$0xff]  ;;  %v6464_v58 = vld [vmem:[#allocation54_spill] sm:$0xff] }
 0x2b2   : > { %2534 = vst.msk [vmem:[#allocation2 + $0x110] sm:$0xff] %vm244_vm0, %v2470_v28  ;;  %2535 = vst.msk [vmem:[#allocation2 + $0x118] sm:$0xff] %vm244_vm0, %v2471_v9  ;;  %v2409_v43 = vsel %vm2281_vm12, %v6463_v3, 0.0  ;;  %vm2282_vm13 = vcmp.lt.s32.totalorder %v2218_v10, 300  ;;  %v2155_v54 = vadd.s32 328, %v5678_v49  ;;  %v2156_v21 = vadd.s32 336, %v5678_v49 }
 0x2b3   : > { %2536 = vst.msk [vmem:[#allocation2 + $0x120] sm:$0xff] %vm244_vm0, %v2472_v63  ;;  %v2473_v37 = vadd.f32 %v2409_v43, %v2345_v48  ;;  %v2410_v55 = vsel %vm2282_vm13, %v5438_v31, 0.0  ;;  %vm2283_vm14 = vcmp.lt.s32.totalorder %v2219_v59, 300  ;;  %v2220_v33 = vadd.s32 %v5681_v16, %v2154_v44  ;;  %v6465_v28 = vld [vmem:[#allocation31_spill] sm:$0xff]  ;;  %v2354_v63 = vld [vmem:[#allocation2 + $0x170] sm:$0xff]  ;;  %v2356_v3 = vld [vmem:[#allocation2 + $0x180] sm:$0xff] }
 0x2b4   : > { %v2474_v56 = vadd.f32 %v2410_v55, %v2346_v25  ;;  %v2411_v34 = vsel %vm2283_vm14, %v5330_v18, 0.0  ;;  %v2221_v8 = vadd.s32 %v5681_v16, %v2155_v54  ;;  %v2222_v23 = vadd.s32 %v5681_v16, %v2156_v21  ;;  %v2355_v44 = vld [vmem:[#allocation2 + $0x178] sm:$0xff]  ;;  %v2357_v21 = vld [vmem:[#allocation2 + $0x188] sm:$0xff] }
 0x2b5   : > { %2537 = vst.msk [vmem:[#allocation2 + $0x128] sm:$0xff] %vm244_vm0, %v2473_v37  ;;  %v2475_v29 = vadd.f32 %v2411_v34, %v2347_v51  ;;  %vm2284_vm15 = vcmp.lt.s32.totalorder %v2220_v33, 300  ;;  %v2157_v12 = vadd.s32 344, %v5678_v49  ;;  %v2158_v31 = vadd.s32 352, %v5678_v49  ;;  %v6466_v33 = vld [vmem:[#allocation32_spill] sm:$0xff] }
 0x2b6   : > { %2538 = vst.msk [vmem:[#allocation2 + $0x130] sm:$0xff] %vm244_vm0, %v2474_v56  ;;  %v2412_v39 = vsel %vm2284_vm15, %v5454_v20, 0.0  ;;  %vm2285_vm1 = vcmp.lt.s32.totalorder %v2221_v8, 300  ;;  %vm2286_vm2 = vcmp.lt.s32.totalorder %v2222_v23, 300  ;;  %v2159_v18 = vadd.s32 360, %v5678_v49  ;;  %v6467_v23 = vld [vmem:[#allocation55_spill] sm:$0xff] }
 0x2b7   : > { %2539 = vst.msk [vmem:[#allocation2 + $0x138] sm:$0xff] %vm244_vm0, %v2475_v29  ;;  %v2476_v50 = vadd.f32 %v2412_v39, %v2348_v38  ;;  %v2413_v36 = vsel %vm2285_vm1, %v5349_v2, 0.0  ;;  %v2414_v35 = vsel %vm2286_vm2, %v5471_v60, 0.0  ;;  %v2223_v15 = vadd.s32 %v5681_v16, %v2157_v12 }
 0x2b8   : > { %v2477_v27 = vadd.f32 %v2413_v36, %v2349_v57  ;;  %v2478_v22 = vadd.f32 %v2414_v35, %v2350_v24  ;;  %v2224_v52 = vadd.s32 %v5681_v16, %v2158_v31  ;;  %v2225_v20 = vadd.s32 %v5681_v16, %v2159_v18  ;;  %v2358_v24 = vld [vmem:[#allocation2 + $0x190] sm:$0xff]  ;;  %v2360_v18 = vld [vmem:[#allocation2 + $0x1a0] sm:$0xff] }
 0x2b9   : > { %2540 = vst.msk [vmem:[#allocation2 + $0x140] sm:$0xff] %vm244_vm0, %v2476_v50  ;;  %vm2287_vm3 = vcmp.lt.s32.totalorder %v2223_v15, 300  ;;  %v2160_v4 = vadd.s32 368, %v5678_v49  ;;  %v2161_v2 = vadd.s32 376, %v5678_v49  ;;  %v2162_v60 = vadd.s32 384, %v5678_v49 }
 0x2ba   : > { %2541 = vst.msk [vmem:[#allocation2 + $0x148] sm:$0xff] %vm244_vm0, %v2477_v27  ;;  %2542 = vst.msk [vmem:[#allocation2 + $0x150] sm:$0xff] %vm244_vm0, %v2478_v22  ;;  %v2415_v41 = vsel %vm2287_vm3, %v6464_v58, 0.0  ;;  %vm2288_vm4 = vcmp.lt.s32.totalorder %v2224_v52, 300  ;;  %vm2289_vm5 = vcmp.lt.s32.totalorder %v2225_v20, 300  ;;  %v2163_v19 = vadd.s32 392, %v5678_v49 }
 0x2bb   : > { %v2479_v14 = vadd.f32 %v2415_v41, %v2351_v6  ;;  %v2416_v61 = vsel %vm2288_vm4, %v5483_v30, 0.0  ;;  %v2417_v9 = vsel %vm2289_vm5, %v6465_v28, 0.0  ;;  %v2226_v32 = vadd.s32 %v5681_v16, %v2160_v4  ;;  %v2361_v20 = vld [vmem:[#allocation2 + $0x1a8] sm:$0xff]  ;;  %v2363_v58 = vld [vmem:[#allocation2 + $0x1b8] sm:$0xff] }
 0x2bc   : > { %v2480_v48 = vadd.f32 %v2416_v61, %v2352_v45  ;;  %v2481_v10 = vadd.f32 %v2417_v9, %v2353_v5  ;;  %v2227_v25 = vadd.s32 %v5681_v16, %v2161_v2  ;;  %v2228_v59 = vadd.s32 %v5681_v16, %v2162_v60  ;;  %v2362_v2 = vld [vmem:[#allocation2 + $0x1b0] sm:$0xff] }
 0x2bd   : > { %2543 = vst.msk [vmem:[#allocation2 + $0x158] sm:$0xff] %vm244_vm0, %v2479_v14  ;;  %vm2290_vm6 = vcmp.lt.s32.totalorder %v2226_v32, 300  ;;  %v2229_v43 = vadd.s32 %v5681_v16, %v2163_v19  ;;  %v2164_v30 = vadd.s32 400, %v5678_v49  ;;  %v2165_v51 = vadd.s32 408, %v5678_v49  ;;  %v2364_v14 = vld [vmem:[#allocation2 + $0x1c0] sm:$0xff] }
 0x2be   : > { %2544 = vst.msk [vmem:[#allocation2 + $0x160] sm:$0xff] %vm244_vm0, %v2480_v48  ;;  %2545 = vst.msk [vmem:[#allocation2 + $0x168] sm:$0xff] %vm244_vm0, %v2481_v10  ;;  %v2418_v54 = vsel %vm2290_vm6, %v5494_v0, 0.0  ;;  %vm2291_vm7 = vcmp.lt.s32.totalorder %v2227_v25, 300  ;;  %vm2292_vm8 = vcmp.lt.s32.totalorder %v2228_v59, 300  ;;  %v2166_v37 = vadd.s32 416, %v5678_v49 }
 0x2bf   : > { %v2482_v55 = vadd.f32 %v2418_v54, %v2354_v63  ;;  %v2419_v56 = vsel %vm2291_vm7, %v6466_v33, 0.0  ;;  %v2420_v34 = vsel %vm2292_vm8, %v5505_v26, 0.0  ;;  %vm2293_vm9 = vcmp.lt.s32.totalorder %v2229_v43, 300  ;;  %v2359_v26 = vld [vmem:[#allocation2 + $0x198] sm:$0xff]  ;;  %v2365_v10 = vld [vmem:[#allocation2 + $0x1c8] sm:$0xff]  ;;  %v2366_v59 = vld [vmem:[#allocation2 + $0x1d0] sm:$0xff] }
 0x2c0   : > { %v2483_v38 = vadd.f32 %v2419_v56, %v2355_v44  ;;  %v2484_v8 = vadd.f32 %v2420_v34, %v2356_v3  ;;  %v2421_v29 = vsel %vm2293_vm9, %v6467_v23, 0.0  ;;  %v2230_v57 = vadd.s32 %v5681_v16, %v2164_v30  ;;  %v2367_v54 = vld [vmem:[#allocation2 + $0x1d8] sm:$0xff]  ;;  %v2368_v33 = vld [vmem:[#allocation2 + $0x1e0] sm:$0xff]  ;;  %v2369_v56 = vld [vmem:[#allocation2 + $0x1e8] sm:$0xff] }
 0x2c1   : > { %2546 = vst.msk [vmem:[#allocation2 + $0x170] sm:$0xff] %vm244_vm0, %v2482_v55  ;;  %v2485_v0 = vadd.f32 %v2421_v29, %v2357_v21  ;;  %v2231_v12 = vadd.s32 %v5681_v16, %v2165_v51  ;;  %v2232_v31 = vadd.s32 %v5681_v16, %v2166_v37  ;;  %v2167_v39 = vadd.s32 424, %v5678_v49  ;;  %v6468_v29 = vld [vmem:[#allocation33_spill] sm:$0xff] }
 0x2c2   : > { %2547 = vst.msk [vmem:[#allocation2 + $0x178] sm:$0xff] %vm244_vm0, %v2483_v38  ;;  %2548 = vst.msk [vmem:[#allocation2 + $0x180] sm:$0xff] %vm244_vm0, %v2484_v8  ;;  %vm2294_vm10 = vcmp.lt.s32.totalorder %v2230_v57, 300  ;;  %v2168_v50 = vadd.s32 432, %v5678_v49  ;;  %v2169_v36 = vadd.s32 440, %v5678_v49  ;;  %v2170_v35 = vadd.s32 448, %v5678_v49 }
 0x2c3   : > { %2549 = vst.msk [vmem:[#allocation2 + $0x188] sm:$0xff] %vm244_vm0, %v2485_v0  ;;  %v2422_v15 = vsel %vm2294_vm10, %v5516_v42, 0.0  ;;  %vm2295_vm11 = vcmp.lt.s32.totalorder %v2231_v12, 300  ;;  %vm2296_vm12 = vcmp.lt.s32.totalorder %v2232_v31, 300  ;;  %v2233_v27 = vadd.s32 %v5681_v16, %v2167_v39  ;;  %v6469_v12 = vld [vmem:[#allocation56_spill] sm:$0xff]  ;;  %v2371_v39 = vld [vmem:[#allocation2 + $0x1f8] sm:$0xff] }
 0x2c4   : > { %v2486_v22 = vadd.f32 %v2422_v15, %v2358_v24  ;;  %v2423_v6 = vsel %vm2295_vm11, %v5440_v46, 0.0  ;;  %v2424_v52 = vsel %vm2296_vm12, %v5523_v1, 0.0  ;;  %v2234_v45 = vadd.s32 %v5681_v16, %v2168_v50 }
 0x2c5   : > { %v2487_v5 = vadd.f32 %v2423_v6, %v2359_v26  ;;  %v2488_v4 = vadd.f32 %v2424_v52, %v2360_v18  ;;  %vm2297_vm13 = vcmp.lt.s32.totalorder %v2233_v27, 300  ;;  %v2235_v60 = vadd.s32 %v5681_v16, %v2169_v36 }
 0x2c6   : > { %2550 = vst.msk [vmem:[#allocation2 + $0x190] sm:$0xff] %vm244_vm0, %v2486_v22  ;;  %v2425_v42 = vsel %vm2297_vm13, %v5456_v40, 0.0  ;;  %vm2298_vm14 = vcmp.lt.s32.totalorder %v2234_v45, 300  ;;  %v2236_v41 = vadd.s32 %v5681_v16, %v2170_v35  ;;  %v2171_v46 = vadd.s32 456, %v5678_v49 }
 0x2c7   : > { %2551 = vst.msk [vmem:[#allocation2 + $0x198] sm:$0xff] %vm244_vm0, %v2487_v5  ;;  %2552 = vst.msk [vmem:[#allocation2 + $0x1a0] sm:$0xff] %vm244_vm0, %v2488_v4  ;;  %v2489_v1 = vadd.f32 %v2425_v42, %v2361_v20  ;;  %v2426_v19 = vsel %vm2298_vm14, %v5527_v13, 0.0  ;;  %vm2299_vm15 = vcmp.lt.s32.totalorder %v2235_v60, 300  ;;  %v2172_v61 = vadd.s32 464, %v5678_v49 }
 0x2c8   : > { %v2490_v28 = vadd.f32 %v2426_v19, %v2362_v2  ;;  %v2427_v40 = vsel %vm2299_vm15, %v5473_v7, 0.0  ;;  %vm2300_vm1 = vcmp.lt.s32.totalorder %v2236_v41, 300  ;;  %v2237_v9 = vadd.s32 %v5681_v16, %v2171_v46 }
 0x2c9   : > { %2553 = vst.msk [vmem:[#allocation2 + $0x1a8] sm:$0xff] %vm244_vm0, %v2489_v1  ;;  %v2491_v32 = vadd.f32 %v2427_v40, %v2363_v58  ;;  %v2428_v48 = vsel %vm2300_vm1, %v5531_v11, 0.0  ;;  %v2238_v63 = vadd.s32 %v5681_v16, %v2172_v61  ;;  %v2173_v13 = vadd.s32 472, %v5678_v49 }
 0x2ca   : > { %2554 = vst.msk [vmem:[#allocation2 + $0x1b0] sm:$0xff] %vm244_vm0, %v2490_v28  ;;  %v2492_v25 = vadd.f32 %v2428_v48, %v2364_v14  ;;  %vm2301_vm2 = vcmp.lt.s32.totalorder %v2237_v9, 300  ;;  %v2174_v7 = vadd.s32 480, %v5678_v49  ;;  %v2175_v44 = vadd.s32 488, %v5678_v49 }
 0x2cb   : > { %2555 = vst.msk [vmem:[#allocation2 + $0x1b8] sm:$0xff] %vm244_vm0, %v2491_v32  ;;  %v2429_v3 = vsel %vm2301_vm2, %v5485_v62, 0.0  ;;  %vm2302_vm3 = vcmp.lt.s32.totalorder %v2238_v63, 300  ;;  %v2239_v11 = vadd.s32 %v5681_v16, %v2173_v13  ;;  %v2176_v43 = vadd.s32 496, %v5678_v49 }
 0x2cc   : > { %2556 = vst.msk [vmem:[#allocation2 + $0x1c0] sm:$0xff] %vm244_vm0, %v2492_v25  ;;  %v2493_v30 = vadd.f32 %v2429_v3, %v2365_v10  ;;  %v2430_v51 = vsel %vm2302_vm3, %v5535_v53, 0.0  ;;  %v2240_v21 = vadd.s32 %v5681_v16, %v2174_v7  ;;  %v2241_v37 = vadd.s32 %v5681_v16, %v2175_v44  ;;  %v2370_v53 = vld [vmem:[#allocation2 + $0x1f0] sm:$0xff] }
 0x2cd   : > { %v2494_v55 = vadd.f32 %v2430_v51, %v2366_v59  ;;  %vm2303_vm4 = vcmp.lt.s32.totalorder %v2239_v11, 300  ;;  %v2242_v62 = vadd.s32 %v5681_v16, %v2176_v43  ;;  %v2177_v34 = vadd.s32 504, %v5678_v49 }
 0x2ce   : > { %2557 = vst.msk [vmem:[#allocation2 + $0x1c8] sm:$0xff] %vm244_vm0, %v2493_v30  ;;  %v2431_v38 = vsel %vm2303_vm4, %v5496_v17, 0.0  ;;  %vm2304_vm5 = vcmp.lt.s32.totalorder %v2240_v21, 300  ;;  %vm2305_vm6 = vcmp.lt.s32.totalorder %v2241_v37, 300 }
 0x2cf   : > { %2558 = vst.msk [vmem:[#allocation2 + $0x1d0] sm:$0xff] %vm244_vm0, %v2494_v55  ;;  %v2495_v8 = vadd.f32 %v2431_v38, %v2367_v54  ;;  %v2432_v23 = vsel %vm2304_vm5, %v5539_v47, 0.0  ;;  %v2433_v57 = vsel %vm2305_vm6, %v6468_v29, 0.0  ;;  %vm2306_vm7 = vcmp.lt.s32.totalorder %v2242_v62, 300  ;;  %v6470_v47 = vld [vmem:[#allocation34_spill] sm:$0xff] }
 0x2d0   : > { %v2496_v0 = vadd.f32 %v2432_v23, %v2368_v33  ;;  %v2497_v24 = vadd.f32 %v2433_v57, %v2369_v56  ;;  %v2434_v31 = vsel %vm2306_vm7, %v6469_v12, 0.0  ;;  %v2243_v49 = vadd.s32 %v5681_v16, %v2177_v34 }
 0x2d1   : > { %2559 = vst.msk [vmem:[#allocation2 + $0x1d8] sm:$0xff] %vm244_vm0, %v2495_v8  ;;  %v2498_v17 = vadd.f32 %v2434_v31, %v2370_v53 }
 0x2d2   : > { %2560 = vst.msk [vmem:[#allocation2 + $0x1e0] sm:$0xff] %vm244_vm0, %v2496_v0  ;;  %2561 = vst.msk [vmem:[#allocation2 + $0x1e8] sm:$0xff] %vm244_vm0, %v2497_v24  ;;  %vm2307_vm8 = vcmp.lt.s32.totalorder %v2243_v49, 300 }
 0x2d3   : > { %2562 = vst.msk [vmem:[#allocation2 + $0x1f0] sm:$0xff] %vm244_vm0, %v2498_v17  ;;  %v2435_v26 = vsel %vm2307_vm8, %v6470_v47, 0.0 }
 0x2d4   : > { %v2499_v18 = vadd.f32 %v2435_v26, %v2371_v39 }
 0x2d6   : > { %2563 = vst.msk [vmem:[#allocation2 + $0x1f8] sm:$0xff] %vm244_vm0, %v2499_v18 }
 0x2d7 PF: > { %v2567_v50 = vld [vmem:[#allocation2] sm:$0xff]  ;;  %v2568_v36 = vld [vmem:[#allocation2 + $0x8] sm:$0xff]  ;;  %v2569_v16 = vld [vmem:[#allocation2 + $0x10] sm:$0xff]  ;;  %s2876_s15 = sshll.u32 %s3553_s12, 7  ;;  %s2783_s16 = sshll.u32 %s207_s7, 4  ;;  %s6011_s16 = int_to_ptr.vmem [resolvable:$true] %s2783_s16 }
 0x2d8   : > { %v2570_v35 = vld [vmem:[#allocation2 + $0x18] sm:$0xff]  ;;  %v2631_v15 = vsel %vm244_vm0, %v2567_v50, 0.0  ;;  %v2632_v27 = vsel %vm244_vm0, %v2568_v36, 0.0  ;;  %v2634_v22 = vsel %vm244_vm0, %v2569_v16, 0.0  ;;  %v2571_v6 = vld [vmem:[#allocation2 + $0x20] sm:$0xff]  ;;  %v2572_v45 = vld [vmem:[#allocation2 + $0x28] sm:$0xff]  ;;  %s6009_s23 = scalar_lea.hbm %s6062_s2, %s2876_s15 }
 0x2d9   : > { %v2633_v52 = vadd.f32 %v2632_v27, %v2631_v15  ;;  %v2636_v20 = vsel %vm244_vm0, %v2570_v35, 0.0  ;;  %v2638_v4 = vsel %vm244_vm0, %v2571_v6, 0.0  ;;  %v2573_v2 = vld [vmem:[#allocation2 + $0x30] sm:$0xff]  ;;  %v2640_v42 = vsel %vm244_vm0, %v2572_v45, 0.0  ;;  %v2574_v58 = vld [vmem:[#allocation2 + $0x38] sm:$0xff]  ;;  %v2575_v1 = vld [vmem:[#allocation2 + $0x40] sm:$0xff] }
 0x2da   : > { %v2642_v46 = vsel %vm244_vm0, %v2573_v2, 0.0  ;;  %v2644_v14 = vsel %vm244_vm0, %v2574_v58, 0.0  ;;  %v2576_v61 = vld [vmem:[#allocation2 + $0x48] sm:$0xff]  ;;  %v2646_v40 = vsel %vm244_vm0, %v2575_v1, 0.0  ;;  %v2577_v9 = vld [vmem:[#allocation2 + $0x50] sm:$0xff]  ;;  %v2578_v10 = vld [vmem:[#allocation2 + $0x58] sm:$0xff] }
 0x2db   : > { %v2635_v5 = vadd.f32 %v2634_v22, %v2633_v52  ;;  %v2648_v48 = vsel %vm244_vm0, %v2576_v61, 0.0  ;;  %v2650_v13 = vsel %vm244_vm0, %v2577_v9, 0.0  ;;  %v2579_v25 = vld [vmem:[#allocation2 + $0x60] sm:$0xff]  ;;  %v2652_v7 = vsel %vm244_vm0, %v2578_v10, 0.0  ;;  %v2580_v44 = vld [vmem:[#allocation2 + $0x68] sm:$0xff]  ;;  %v2581_v43 = vld [vmem:[#allocation2 + $0x70] sm:$0xff] }
 0x2dc   : > { %v2654_v11 = vsel %vm244_vm0, %v2579_v25, 0.0  ;;  %v2656_v51 = vsel %vm244_vm0, %v2580_v44, 0.0  ;;  %v2582_v54 = vld [vmem:[#allocation2 + $0x78] sm:$0xff]  ;;  %v2658_v37 = vsel %vm244_vm0, %v2581_v43, 0.0  ;;  %v2583_v55 = vld [vmem:[#allocation2 + $0x80] sm:$0xff]  ;;  %v2584_v62 = vld [vmem:[#allocation2 + $0x88] sm:$0xff] }
 0x2dd   : > { %v2637_v60 = vadd.f32 %v2636_v20, %v2635_v5  ;;  %v2660_v56 = vsel %vm244_vm0, %v2582_v54, 0.0  ;;  %v2662_v38 = vsel %vm244_vm0, %v2583_v55, 0.0  ;;  %v2585_v53 = vld [vmem:[#allocation2 + $0x90] sm:$0xff]  ;;  %v2664_v23 = vsel %vm244_vm0, %v2584_v62, 0.0  ;;  %v2586_v29 = vld [vmem:[#allocation2 + $0x98] sm:$0xff]  ;;  %v2587_v24 = vld [vmem:[#allocation2 + $0xa0] sm:$0xff] }
 0x2de   : > { %v2666_v0 = vsel %vm244_vm0, %v2585_v53, 0.0  ;;  %v2668_v31 = vsel %vm244_vm0, %v2586_v29, 0.0  ;;  %v2588_v49 = vld [vmem:[#allocation2 + $0xa8] sm:$0xff]  ;;  %v2670_v39 = vsel %vm244_vm0, %v2587_v24, 0.0  ;;  %v2589_v47 = vld [vmem:[#allocation2 + $0xb0] sm:$0xff]  ;;  %v2590_v50 = vld [vmem:[#allocation2 + $0xb8] sm:$0xff] }
 0x2df   : > { %v2639_v41 = vadd.f32 %v2638_v4, %v2637_v60  ;;  %v2672_v18 = vsel %vm244_vm0, %v2588_v49, 0.0  ;;  %v2674_v16 = vsel %vm244_vm0, %v2589_v47, 0.0  ;;  %v2591_v35 = vld [vmem:[#allocation2 + $0xc0] sm:$0xff]  ;;  %v2676_v27 = vsel %vm244_vm0, %v2590_v50, 0.0  ;;  %v2592_v22 = vld [vmem:[#allocation2 + $0xc8] sm:$0xff]  ;;  %v2593_v20 = vld [vmem:[#allocation2 + $0xd0] sm:$0xff] }
 0x2e0   : > { %v2678_v52 = vsel %vm244_vm0, %v2591_v35, 0.0  ;;  %v2680_v5 = vsel %vm244_vm0, %v2592_v22, 0.0  ;;  %v2594_v4 = vld [vmem:[#allocation2 + $0xd8] sm:$0xff]  ;;  %v2682_v60 = vsel %vm244_vm0, %v2593_v20, 0.0  ;;  %s2770_s25 = scalar_lea.sflag [#allocation4], %s205_s5  ;;  %s3483_s26 = scalar_lea.vmem %s6011_s16, 128 }
 0x2e1   : > { %v2641_v19 = vadd.f32 %v2640_v42, %v2639_v41  ;;  %v2595_v42 = vld [vmem:[#allocation2 + $0xe0] sm:$0xff]  ;;  %v2684_v41 = vsel %vm244_vm0, %v2594_v4, 0.0  ;;  %p3484_p0 = scmp.ne.s32.totalorder %s6011_s16, %s3483_s26  ;;  %s3565_s12 = smov [#allocation3]  }
 0x2e2   : > { %s3487_s27 = sshll.u32 %s3565_s12, 4  ;;  %s3488_s27 = int_to_ptr.vmem [resolvable:$false] %s3487_s27 }
 0x2e3   : > { %v2643_v28 = vadd.f32 %v2642_v46, %v2641_v19  ;;  %v2596_v46 = vld [vmem:[#allocation2 + $0xe8] sm:$0xff]  ;;  %v2686_v19 = vsel %vm244_vm0, %v2595_v42, 0.0  ;;  %p3485_p1 = pnand %p3484_p0, %p3621_p4  ;;  %s3489_s28 = scalar_lea.vmem %s3488_s27, 256 }
 0x2e4   : > { %p3490_p3 = scmp.lt.s32.totalorder %s6011_s16, %s3488_s27  ;;  %p3491_p5 = scmp.lt.s32.totalorder %s3489_s28, %s3483_s26 }
 0x2e5   : > { %v2645_v32 = vadd.f32 %v2644_v14, %v2643_v28  ;;  %v2597_v14 = vld [vmem:[#allocation2 + $0xf0] sm:$0xff]  ;;  %v2688_v28 = vsel %vm244_vm0, %v2596_v46, 0.0  ;;  %p3486_p2 = pneg %p3485_p1 }
 0x2e6   : > { %p3492_p6 = por %p3491_p5, %p3490_p3 }
 0x2e7   : > { %v2647_v63 = vadd.f32 %v2646_v40, %v2645_v32  ;;  %v2598_v40 = vld [vmem:[#allocation2 + $0xf8] sm:$0xff]  ;;  %v2690_v32 = vsel %vm244_vm0, %v2597_v14, 0.0 }
 0x2e8   : > { %p3493_p7 = pnand %p3492_p6, %p3486_p2 }
 0x2e9   : > { %v2649_v59 = vadd.f32 %v2648_v48, %v2647_v63  ;;  %v2599_v48 = vld [vmem:[#allocation2 + $0x100] sm:$0xff]  ;;  %v2692_v63 = vsel %vm244_vm0, %v2598_v40, 0.0 }
 0x2eb   : > { %v2651_v3 = vadd.f32 %v2650_v13, %v2649_v59  ;;  %v2600_v13 = vld [vmem:[#allocation2 + $0x108] sm:$0xff]  ;;  %v2694_v59 = vsel %vm244_vm0, %v2599_v48, 0.0 }
 0x2ed   : > { %v2653_v30 = vadd.f32 %v2652_v7, %v2651_v3  ;;  %v2601_v7 = vld [vmem:[#allocation2 + $0x110] sm:$0xff]  ;;  %v2696_v3 = vsel %vm244_vm0, %v2600_v13, 0.0 }
 0x2ef   : > { %v2655_v21 = vadd.f32 %v2654_v11, %v2653_v30  ;;  %v2602_v11 = vld [vmem:[#allocation2 + $0x118] sm:$0xff]  ;;  %v2698_v30 = vsel %vm244_vm0, %v2601_v7, 0.0 }
 0x2f1   : > { %v2657_v33 = vadd.f32 %v2656_v51, %v2655_v21  ;;  %v2603_v51 = vld [vmem:[#allocation2 + $0x120] sm:$0xff]  ;;  %v2700_v21 = vsel %vm244_vm0, %v2602_v11, 0.0 }
 0x2f3   : > { %v2659_v34 = vadd.f32 %v2658_v37, %v2657_v33  ;;  %v2604_v37 = vld [vmem:[#allocation2 + $0x128] sm:$0xff]  ;;  %v2702_v33 = vsel %vm244_vm0, %v2603_v51, 0.0 }
 0x2f5   : > { %v2661_v8 = vadd.f32 %v2660_v56, %v2659_v34  ;;  %v2605_v56 = vld [vmem:[#allocation2 + $0x130] sm:$0xff]  ;;  %v2704_v34 = vsel %vm244_vm0, %v2604_v37, 0.0 }
 0x2f7   : > { %v2663_v57 = vadd.f32 %v2662_v38, %v2661_v8  ;;  %v2606_v38 = vld [vmem:[#allocation2 + $0x138] sm:$0xff]  ;;  %v2706_v8 = vsel %vm244_vm0, %v2605_v56, 0.0 }
 0x2f9   : > { %v2665_v12 = vadd.f32 %v2664_v23, %v2663_v57  ;;  %v2607_v23 = vld [vmem:[#allocation2 + $0x140] sm:$0xff]  ;;  %v2708_v57 = vsel %vm244_vm0, %v2606_v38, 0.0 }
 0x2fb   : > { %v2667_v17 = vadd.f32 %v2666_v0, %v2665_v12  ;;  %v2608_v0 = vld [vmem:[#allocation2 + $0x148] sm:$0xff]  ;;  %v2710_v12 = vsel %vm244_vm0, %v2607_v23, 0.0 }
 0x2fd   : > { %v2669_v26 = vadd.f32 %v2668_v31, %v2667_v17  ;;  %v2609_v31 = vld [vmem:[#allocation2 + $0x150] sm:$0xff]  ;;  %v2712_v17 = vsel %vm244_vm0, %v2608_v0, 0.0 }
 0x2ff   : > { %v2671_v36 = vadd.f32 %v2670_v39, %v2669_v26  ;;  %v2610_v39 = vld [vmem:[#allocation2 + $0x158] sm:$0xff]  ;;  %v2714_v26 = vsel %vm244_vm0, %v2609_v31, 0.0 }
 0x301   : > { %v2673_v15 = vadd.f32 %v2672_v18, %v2671_v36  ;;  %v2611_v18 = vld [vmem:[#allocation2 + $0x160] sm:$0xff]  ;;  %v2716_v36 = vsel %vm244_vm0, %v2610_v39, 0.0 }
 0x303   : > { %v2675_v6 = vadd.f32 %v2674_v16, %v2673_v15  ;;  %v2612_v16 = vld [vmem:[#allocation2 + $0x168] sm:$0xff]  ;;  %v2718_v15 = vsel %vm244_vm0, %v2611_v18, 0.0 }
 0x305   : > { %v2677_v45 = vadd.f32 %v2676_v27, %v2675_v6  ;;  %v2613_v27 = vld [vmem:[#allocation2 + $0x170] sm:$0xff]  ;;  %v2720_v6 = vsel %vm244_vm0, %v2612_v16, 0.0 }
 0x307   : > { %v2679_v2 = vadd.f32 %v2678_v52, %v2677_v45  ;;  %v2614_v52 = vld [vmem:[#allocation2 + $0x178] sm:$0xff]  ;;  %v2722_v45 = vsel %vm244_vm0, %v2613_v27, 0.0 }
 0x309   : > { %v2681_v58 = vadd.f32 %v2680_v5, %v2679_v2  ;;  %v2615_v5 = vld [vmem:[#allocation2 + $0x180] sm:$0xff]  ;;  %v2724_v2 = vsel %vm244_vm0, %v2614_v52, 0.0 }
 0x30b   : > { %v2683_v1 = vadd.f32 %v2682_v60, %v2681_v58  ;;  %v2616_v60 = vld [vmem:[#allocation2 + $0x188] sm:$0xff]  ;;  %v2726_v58 = vsel %vm244_vm0, %v2615_v5, 0.0 }
 0x30d   : > { %v2685_v61 = vadd.f32 %v2684_v41, %v2683_v1  ;;  %v2617_v41 = vld [vmem:[#allocation2 + $0x190] sm:$0xff]  ;;  %v2728_v1 = vsel %vm244_vm0, %v2616_v60, 0.0 }
 0x30f   : > { %v2687_v9 = vadd.f32 %v2686_v19, %v2685_v61  ;;  %v2618_v19 = vld [vmem:[#allocation2 + $0x198] sm:$0xff]  ;;  %v2730_v61 = vsel %vm244_vm0, %v2617_v41, 0.0 }
 0x311   : > { %v2689_v10 = vadd.f32 %v2688_v28, %v2687_v9  ;;  %v2619_v28 = vld [vmem:[#allocation2 + $0x1a0] sm:$0xff]  ;;  %v2732_v9 = vsel %vm244_vm0, %v2618_v19, 0.0 }
 0x313   : > { %v2691_v25 = vadd.f32 %v2690_v32, %v2689_v10  ;;  %v2620_v32 = vld [vmem:[#allocation2 + $0x1a8] sm:$0xff]  ;;  %v2734_v10 = vsel %vm244_vm0, %v2619_v28, 0.0 }
 0x315   : > { %v2693_v44 = vadd.f32 %v2692_v63, %v2691_v25  ;;  %v2621_v63 = vld [vmem:[#allocation2 + $0x1b0] sm:$0xff]  ;;  %v2736_v25 = vsel %vm244_vm0, %v2620_v32, 0.0 }
 0x317   : > { %v2695_v43 = vadd.f32 %v2694_v59, %v2693_v44  ;;  %v2622_v59 = vld [vmem:[#allocation2 + $0x1b8] sm:$0xff]  ;;  %v2738_v44 = vsel %vm244_vm0, %v2621_v63, 0.0 }
 0x319   : > { %v2697_v54 = vadd.f32 %v2696_v3, %v2695_v43  ;;  %v2623_v3 = vld [vmem:[#allocation2 + $0x1c0] sm:$0xff]  ;;  %v2740_v43 = vsel %vm244_vm0, %v2622_v59, 0.0 }
 0x31b   : > { %v2699_v55 = vadd.f32 %v2698_v30, %v2697_v54  ;;  %v2624_v30 = vld [vmem:[#allocation2 + $0x1c8] sm:$0xff]  ;;  %v2742_v54 = vsel %vm244_vm0, %v2623_v3, 0.0 }
 0x31d   : > { %v2701_v62 = vadd.f32 %v2700_v21, %v2699_v55  ;;  %v2625_v21 = vld [vmem:[#allocation2 + $0x1d0] sm:$0xff]  ;;  %v2744_v55 = vsel %vm244_vm0, %v2624_v30, 0.0 }
 0x31f   : > { %v2703_v53 = vadd.f32 %v2702_v33, %v2701_v62  ;;  %v2626_v33 = vld [vmem:[#allocation2 + $0x1d8] sm:$0xff]  ;;  %v2746_v62 = vsel %vm244_vm0, %v2625_v21, 0.0 }
 0x321   : > { %v2705_v29 = vadd.f32 %v2704_v34, %v2703_v53  ;;  %v2627_v34 = vld [vmem:[#allocation2 + $0x1e0] sm:$0xff]  ;;  %v2748_v53 = vsel %vm244_vm0, %v2626_v33, 0.0 }
 0x323   : > { %v2707_v24 = vadd.f32 %v2706_v8, %v2705_v29  ;;  %v2628_v8 = vld [vmem:[#allocation2 + $0x1e8] sm:$0xff]  ;;  %v2750_v29 = vsel %vm244_vm0, %v2627_v34, 0.0 }
 0x325   : > { %v2709_v49 = vadd.f32 %v2708_v57, %v2707_v24  ;;  %v2629_v57 = vld [vmem:[#allocation2 + $0x1f0] sm:$0xff]  ;;  %v2752_v24 = vsel %vm244_vm0, %v2628_v8, 0.0 }
 0x327   : > { %v2711_v47 = vadd.f32 %v2710_v12, %v2709_v49  ;;  %v2630_v12 = vld [vmem:[#allocation2 + $0x1f8] sm:$0xff]  ;;  %v2754_v49 = vsel %vm244_vm0, %v2629_v57, 0.0 }
 0x328   : > { %v2756_v39 = vsel %vm244_vm0, %v2630_v12, 0.0 }
 0x329   : > { %v2713_v50 = vadd.f32 %v2712_v17, %v2711_v47 }
 0x32b   : > { %v2715_v35 = vadd.f32 %v2714_v26, %v2713_v50 }
 0x32d   : > { %v2717_v22 = vadd.f32 %v2716_v36, %v2715_v35 }
 0x32f   : > { %v2719_v20 = vadd.f32 %v2718_v15, %v2717_v22 }
 0x331   : > { %v2721_v4 = vadd.f32 %v2720_v6, %v2719_v20 }
 0x333   : > { %v2723_v42 = vadd.f32 %v2722_v45, %v2721_v4 }
 0x335   : > { %v2725_v46 = vadd.f32 %v2724_v2, %v2723_v42 }
 0x337   : > { %v2727_v14 = vadd.f32 %v2726_v58, %v2725_v46 }
 0x339   : > { %v2729_v40 = vadd.f32 %v2728_v1, %v2727_v14 }
 0x33b   : > { %v2731_v48 = vadd.f32 %v2730_v61, %v2729_v40 }
 0x33d   : > { %v2733_v13 = vadd.f32 %v2732_v9, %v2731_v48 }
 0x33f   : > { %v2735_v7 = vadd.f32 %v2734_v10, %v2733_v13 }
 0x341   : > { %v2737_v11 = vadd.f32 %v2736_v25, %v2735_v7 }
 0x343   : > { %v2739_v51 = vadd.f32 %v2738_v44, %v2737_v11 }
 0x345   : > { %v2741_v37 = vadd.f32 %v2740_v43, %v2739_v51 }
 0x347   : > { %v2743_v56 = vadd.f32 %v2742_v54, %v2741_v37 }
 0x349   : > { %v2745_v38 = vadd.f32 %v2744_v55, %v2743_v56 }
 0x34b   : > { %v2747_v23 = vadd.f32 %v2746_v62, %v2745_v38 }
 0x34d   : > { %v2749_v0 = vadd.f32 %v2748_v53, %v2747_v23 }
 0x34f   : > { %v2751_v31 = vadd.f32 %v2750_v29, %v2749_v0 }
 0x351   : > { %v2753_v17 = vadd.f32 %v2752_v24, %v2751_v31 }
 0x353   : > { %v2755_v47 = vadd.f32 %v2754_v49, %v2753_v17 }
 0x355   : > { %v2757_v26 = vadd.f32 %v2756_v39, %v2755_v47 }
 0x357   : > { %2758 = vadd.xlane.f32.xlu0 %v2757_v26 }
 0x3e4   : > { %v2759_v18 = vpop.xlane.xlu0 %2758 }
 0x3e5   : > { %v2760_v50 = vrot.slane %v2759_v18, 4 }
 0x3e7   : > { %v2761_v36 = vadd.f32 %v2760_v50, %v2759_v18 }
 0x3e9   : > { %v2762_v16 = vrot.slane %v2761_v36, 2 }
 0x3eb   : > { %v2763_v35 = vadd.f32 %v2762_v16, %v2761_v36 }
 0x3ed   : > { %v2764_v15 = vrot.slane %v2763_v35, 1 }
 0x3ef   : > { %v2765_v27 = vadd.f32 %v2764_v15, %v2763_v35 }
 0x3f1   : > { %3038 = vpush %v2765_v27 }
 0x422   : > { %s3039_s24 = spop %3038 }
 0x423   : > { %v2767_v22 = vstv %s3039_s24 }
 0x424   : > { %2768 = vst [vmem:[%s207_s7] sm:$0xff] %v2767_v22 }
 0x425   : > { %3496 = shalt.err (!%p3493_p7)
}
 0x426   : > { %s3497_s29 = scalar_lea.hbm %s6009_s23, 128  ;;  %s3501_s4 = scalar_lea.hbm %s6062_s2, 256 }
 0x427   : > { %p3498_p9 = scmp.ne.s32.totalorder %s6009_s23, %s3497_s29  ;;  %p3502_p12 = scmp.lt.u32.totalorder %s6009_s23, %s6062_s2 }
 0x428   : > { %p3503_p13 = scmp.lt.u32.totalorder %s3501_s4, %s3497_s29  ;;  %p3505_p1 = scmp.lt.u32.totalorder %s3497_s29, %s6009_s23 }
 0x429   : > { %p3499_p10 = pnand %p3498_p9, %p3621_p4 }
 0x42a   : > { %p3504_p0 = por %p3503_p13, %p3502_p12 }
 0x42b   : > { %p3500_p11 = pneg %p3499_p10 }
 0x42c   : > { %p3506_p2 = por %p3505_p1, %p3504_p0 }
 0x42e   : > { %p3507_p3 = pnand %p3506_p2, %p3500_p11 }
 0x430   : > { %3510 = shalt.err (!%p3507_p3)
}
 0x431   : > { %3040 = dma.vmem_to_hbm [thread:$0]  (%p3621_p4), %s6011_s16, 128, %s6009_s23, %s2770_s25  }
 0x432 PF: > { %p3046_p5 = scmp.ge.s32.totalorder %s3561_s14, 2  ;;  %s2795_s7 = sand.u32 1, %s3541_s9  }
 0x433   : > { %s2796_s8 = scalar_lea.sflag [#allocation4], %s2795_s7 }
 0x434   : > { %p3043_p6 = pnand %p3046_p5, %p3628_p8 }
 0x436   : > { %3536 = dma.done.wait (!%p3043_p6), %s2796_s8, 128  }
 0x437   : > { %3538 = vsyncadd (!%p3043_p6), %s2796_s8, 4294967168  ;;  %s15_s14 = sadd.s32 1, %s3561_s14   ;;  %s6471_s9 = smov %s3545_s10 }
 0x438   : > { %p12_p7 = scmp.ge.s32.totalorder %s15_s14, 4   ;;  %s6472_s10 = smov %s3549_s11 }
 0x439   : > { %s6473_s11 = smov %s3634_s22  ;;  %s6474_s12 = smov %s3557_s13 }
 0x43a   : > { %s6475_s13 = smov %s6477_s17  ;;  %14 = sbr.rel (!%p12_p7) target bundleno = 4 (0x4), region = 82 }
 0x441   :  { %2801 = vsyncpa [#allocation4], 1 }
 0x442   :  { %2803 = vsyncpa [#allocation4 + $0x1], 1 }

</bundles_post_ra>
